<compile_context>
chip_gen: v6e
topology: v6e:2x2x1
jax: 0.10.0
libtpu: 0.0.40
codegen_flags: <defaults>
</compile_context>

<pallas_src>
import jax
import jax.numpy as jnp
from jax import lax
from jax.experimental import pallas as pl
from jax.experimental.pallas import tpu as pltpu


def prepare_params(params, Bg, F, D, M):
    """One-time host-side repack of the PyTorch parameters.

    Batch group (Bg samples) is packed along the lane axis, so every weight is a
    batch-block-diagonal matrix.  Everything that is Bg*M*8 lanes wide goes into
    `a_pack` (conv1), everything that is Bg*8 lanes wide goes into `n_pack`
    (conv2 taps, conv3 taps, fc per-pooled-step weights, all biases), stacked
    along rows at static 8-aligned offsets.
    """
    w1, b1, w2, b2, w3, b3, wfc, bfc = params
    f32 = jnp.float32
    dc2 = D - 2
    np1 = dc2 // 2
    dc3 = np1 - 2
    np2 = dc3 // 2
    assert wfc.shape[1] == 8 * np2
    K1 = Bg * M * F          # conv1 contraction width
    N1 = Bg * M * 8          # conv1 output width (lanes)
    NC = Bg * 8              # conv2/conv3/fc width (lanes)

    eye_bm = jnp.eye(Bg * M, dtype=f32)
    eye_b = jnp.eye(Bg, dtype=f32)

    # ---- a_pack: conv1 block-diagonal weight (K1, N1) + bias row, 8-row padded.
    w1bd = jnp.kron(eye_bm, w1[:, :, 0, 0].T.astype(f32))            # (K1, N1)
    b1row = jnp.tile(b1.astype(f32), Bg * M).reshape(1, N1)
    a_pack = jnp.concatenate([w1bd, b1row, jnp.zeros((7, N1), f32)], axis=0)

    # ---- n_pack: NC-lane-wide weights + biases, row-stacked.
    w2t = jnp.transpose(w2.astype(f32), (2, 3, 1, 0)).reshape(3, M * 8, 8)
    w2rows = [jnp.kron(eye_b, w2t[kh]) for kh in range(3)]           # 3 x (N1, NC)

    def bias_block(vec):  # one (8, NC) block; bias in row 0, zero-padded
        row = jnp.zeros((1, NC), f32).at[0, : vec.shape[0]].set(vec)
        return jnp.concatenate([row, jnp.zeros((7, NC), f32)], axis=0)

    b2blk = bias_block(jnp.tile(b2.astype(f32), Bg))                 # (8, NC)
    b3blk = bias_block(jnp.tile(b3.astype(f32), Bg))                 # (8, NC)
    bfcblk = bias_block(jnp.tile(bfc.astype(f32), Bg))               # (8, NC)

    w3t = jnp.transpose(w3[:, :, :, 0].astype(f32), (2, 1, 0))       # (3, 8, 8)
    w3rows = [jnp.kron(eye_b, w3t[kh]) for kh in range(3)]           # 3 x (NC, NC)

    wfcr = jnp.transpose(wfc.astype(f32).reshape(2, 8, np2), (2, 1, 0))  # (np2,8,2)
    fcrows = [jnp.pad(jnp.kron(eye_b, wfcr[h]), ((0, 0), (0, NC - 2 * Bg)))
              for h in range(np2)]                                    # np2 x (NC, NC)

    n_pack = jnp.concatenate(w2rows + [b2blk, b3blk, bfcblk] + w3rows + fcrows,
                             axis=0)
    return a_pack, n_pack


@jax.jit
def cnnpred_pallas(x, a_pack, n_pack):
    B, F, D, M = x.shape
    N1 = a_pack.shape[1]
    Bg = N1 // (M * 8)                 # lane-packed batch-group size
    assert B % Bg == 0, "batch must be a multiple of the group size"
    G = B // Bg
    NC = Bg * 8
    K1 = Bg * M * F
    K2 = N1
    dc2 = D - 2
    np1 = dc2 // 2
    dc3 = np1 - 2
    np2 = dc3 // 2
    # static row offsets inside n_pack (all multiples of 8)
    OFF_B2 = 3 * K2
    OFF_B3 = OFF_B2 + 8
    OFF_BFC = OFF_B3 + 8
    OFF_W3 = OFF_BFC + 8
    OFF_FC = OFF_W3 + 3 * NC

    def kernel(x_ref, wa_ref, wn_ref, out_ref):
        f32 = jnp.float32

        def shift_up(v, k):
            # row i of result = row i+k of v (circular; wrapped rows never read)
            return v if k == 0 else pltpu.roll(v, v.shape[0] - k, axis=0)

        # conv1 (1x1) + ReLU: one lane-dense matmul over batch*markets*features.
        h1 = jnp.dot(x_ref[...], wa_ref[0:K1, :], preferred_element_type=f32)
        h1 = jnp.maximum(h1 + wa_ref[K1:K1 + 1, :], 0.0)              # (D, N1)

        # conv2 (3, markets): per-tap matmuls, taps combined with sublane rolls.
        q = [jnp.dot(h1, wn_ref[kh * K2:(kh + 1) * K2, :],
                     preferred_element_type=f32) for kh in range(3)]
        h2 = (q[0] + shift_up(q[1], 1) + shift_up(q[2], 2)
              + wn_ref[OFF_B2:OFF_B2 + 1, :])                         # rows < dc2 valid

        # maxpool1 (2,1)/2 + ReLU: pooled value u lives at row 2u.
        m1 = jnp.maximum(jnp.maximum(h2, shift_up(h2, 1)), 0.0)       # (D, NC)

        # conv3 (3,1): per-tap matmuls; tap shift + pool stride fused as shift 2*kh.
        r = [jnp.dot(m1, wn_ref[OFF_W3 + kh * NC:OFF_W3 + (kh + 1) * NC, :],
                     preferred_element_type=f32) for kh in range(3)]
        e = r[0] + shift_up(r[1], 2) + shift_up(r[2], 4)              # conv3[t] = e[2t]+b3

        # maxpool2 (2,1)/2: pooled value h lives at row 4h; then bias + ReLU.
        fmax = jnp.maximum(e, shift_up(e, 2))
        b3row = wn_ref[OFF_B3:OFF_B3 + 1, :]

        # fc (torch channel-major flatten folded into per-h weights) + sigmoid.
        logit = wn_ref[OFF_BFC:OFF_BFC + 1, :]
        for h in range(np2):
            p2h = jnp.maximum(fmax[4 * h:4 * h + 1, :] + b3row, 0.0)   # (1, NC)
            logit = logit + jnp.dot(
                p2h, wn_ref[OFF_FC + h * NC:OFF_FC + (h + 1) * NC, :],
                preferred_element_type=f32)
        out_ref[0] = (1.0 / (1.0 + jnp.exp(-logit))).astype(out_ref.dtype)

    # Input repack: time -> sublanes, (batch, markets, features) -> lanes.
    # Kept as a single XLA transpose outside the kernel (a 4-D in-kernel
    # transpose has no clean Mosaic lowering); it fuses with the pallas_call input.
    x_t = jnp.transpose(x, (2, 0, 3, 1)).reshape(D, B * M * F)

    out = pl.pallas_call(
        kernel,
        out_shape=jax.ShapeDtypeStruct((G, 1, NC), jnp.float32),
        grid=(G,),
        in_specs=[
            pl.BlockSpec((D, Bg * M * F), lambda g: (0, g)),   # per-group input slab
            pl.BlockSpec(a_pack.shape, lambda g: (0, 0)),      # resident conv1 pack
            pl.BlockSpec(n_pack.shape, lambda g: (0, 0)),      # resident narrow pack
        ],
        out_specs=pl.BlockSpec((1, 1, NC), lambda g: (g, 0, 0)),
        compiler_params=pltpu.CompilerParams(
            dimension_semantics=("parallel",)),                # v7x: 2 TCs over groups
    )(x_t, a_pack, n_pack)

    # group g, lane b_local*2 + o  ->  (B, 2)
    return out[:, 0, :2 * Bg].reshape(B, 2)


def cnnpred_ref(x, params):
    """Pure-JAX reference mirroring the PyTorch forward exactly (NCHW)."""
    w1, b1, w2, b2, w3, b3, wfc, bfc = params
    dn = ('NCHW', 'OIHW', 'NCHW')
    hp = lax.Precision.HIGHEST
    y = lax.conv_general_dilated(x, w1, (1, 1), 'VALID',
                                 dimension_numbers=dn, precision=hp)
    y = jnp.maximum(y + b1[None, :, None, None], 0.0)
    y = lax.conv_general_dilated(y, w2, (1, 1), 'VALID',
                                 dimension_numbers=dn, precision=hp)
    y = y + b2[None, :, None, None]
    y = lax.reduce_window(y, -jnp.inf, lax.max, (1, 1, 2, 1), (1, 1, 2, 2), 'VALID')
    y = jnp.maximum(y, 0.0)
    y = lax.conv_general_dilated(y, w3, (1, 1), 'VALID',
                                 dimension_numbers=dn, precision=hp)
    y = y + b3[None, :, None, None]
    y = lax.reduce_window(y, -jnp.inf, lax.max, (1, 1, 2, 1), (1, 1, 2, 2), 'VALID')
    y = jnp.maximum(y, 0.0)
    y = y.reshape(y.shape[0], -1)
    return jax.nn.sigmoid(y @ wfc.T + bfc[None, :])


if __name__ == "__main__":
    # batch, features, days, markets; Bg=16 -> 128-lane tensors, 2 grid groups.
    B, F, D, M = 32, 4, 16, 8
    Bg = 16
    np2 = ((D - 2) // 2 - 2) // 2
    key = jax.random.PRNGKey(0)
    ks = jax.random.split(key, 9)
    params = (
        0.2 * jax.random.normal(ks[0], (8, F, 1, 1), jnp.float32),   # conv1.weight
        0.1 * jax.random.normal(ks[1], (8,), jnp.float32),           # conv1.bias
        0.2 * jax.random.normal(ks[2], (8, 8, 3, M), jnp.float32),   # conv2.weight
        0.1 * jax.random.normal(ks[3], (8,), jnp.float32),           # conv2.bias
        0.2 * jax.random.normal(ks[4], (8, 8, 3, 1), jnp.float32),   # conv3.weight
        0.1 * jax.random.normal(ks[5], (8,), jnp.float32),           # conv3.bias
        0.2 * jax.random.normal(ks[6], (2, 8 * np2), jnp.float32),   # fc.weight
        0.1 * jax.random.normal(ks[7], (2,), jnp.float32),           # fc.bias
    )
    x = jax.random.normal(ks[8], (B, F, D, M), jnp.float32)

    a_pack, n_pack = prepare_params(params, Bg, F, D, M)   # one-time repack

    out = jax.block_until_ready(cnnpred_pallas(x, a_pack, n_pack))
    ref = jax.block_until_ready(cnnpred_ref(x, params))
    assert out.shape == (B, 2), out.shape
    if not jnp.allclose(out, ref, atol=3e-3, rtol=3e-3):
        raise AssertionError(f"mismatch:\n{out[:4]}\nvs\n{ref[:4]}")
    print("KERNEL_OK")
</pallas_src>

<mosaic_0001>
module attributes {stable_mosaic.version = 11 : i64} {
  func.func @kernel(%arg0: i32, %arg1: memref<16x512xf32, #tpu.memory_space<vmem>>, %arg2: memref<520x1024xf32, #tpu.memory_space<vmem>>, %arg3: memref<3736x128xf32, #tpu.memory_space<vmem>>, %arg4: memref<1x1x128xf32, #tpu.memory_space<vmem>>) attributes {dimension_semantics = [#tpu.dimension_semantics<parallel>], iteration_bounds = array<i64: 2>, scalar_prefetch = 0 : i64, scratch_operands = 0 : i64, tpu.core_type = #tpu.core_type<tc>, window_params = [{transform_indices = @transform_0, window_bounds = array<i64: 16, 512>}, {pipeline_mode = #tpu.pipeline_mode<synchronous>, transform_indices = @transform_1, window_bounds = array<i64: 520, 1024>}, {pipeline_mode = #tpu.pipeline_mode<synchronous>, transform_indices = @transform_2, window_bounds = array<i64: 3736, 128>}, {transform_indices = @transform_3, window_bounds = array<i64: 1, 1, 128>}]} {
    %c0 = arith.constant 0 : index
    %c0_0 = arith.constant 0 : index
    %0 = vector.load %arg1[%c0, %c0_0] : memref<16x512xf32, #tpu.memory_space<vmem>>, vector<16x512xf32>
    %c0_1 = arith.constant 0 : index
    %c0_2 = arith.constant 0 : index
    %1 = vector.load %arg2[%c0_1, %c0_2] : memref<520x1024xf32, #tpu.memory_space<vmem>>, vector<512x1024xf32>
    %cst = arith.constant dense<0.000000e+00> : vector<16x1024xf32>
    %2 = tpu.matmul %0, %1, %cst {dimension_numbers = #tpu.dot_dimension_numbers<[1], [0], [0], [1], [0, 0, 1, 1], [], []>} : vector<16x512xf32>, vector<512x1024xf32>, vector<16x1024xf32> -> vector<16x1024xf32>
    %c512 = arith.constant 512 : index
    %c0_3 = arith.constant 0 : index
    %3 = vector.load %arg2[%c512, %c0_3] : memref<520x1024xf32, #tpu.memory_space<vmem>>, vector<1x1024xf32>
    %4 = vector.broadcast %3 : vector<1x1024xf32> to vector<16x1024xf32>
    %5 = arith.addf %2, %4 : vector<16x1024xf32>
    %cst_4 = arith.constant 0.000000e+00 : f32
    %6 = vector.broadcast %cst_4 : f32 to vector<16x1024xf32>
    %7 = arith.maximumf %5, %6 : vector<16x1024xf32>
    %c0_5 = arith.constant 0 : index
    %c0_6 = arith.constant 0 : index
    %8 = vector.load %arg3[%c0_5, %c0_6] : memref<3736x128xf32, #tpu.memory_space<vmem>>, vector<1024x128xf32>
    %cst_7 = arith.constant dense<0.000000e+00> : vector<16x128xf32>
    %9 = tpu.matmul %7, %8, %cst_7 {dimension_numbers = #tpu.dot_dimension_numbers<[1], [0], [0], [1], [0, 0, 1, 1], [], []>} : vector<16x1024xf32>, vector<1024x128xf32>, vector<16x128xf32> -> vector<16x128xf32>
    %c1024 = arith.constant 1024 : index
    %c0_8 = arith.constant 0 : index
    %10 = vector.load %arg3[%c1024, %c0_8] : memref<3736x128xf32, #tpu.memory_space<vmem>>, vector<1024x128xf32>
    %cst_9 = arith.constant dense<0.000000e+00> : vector<16x128xf32>
    %11 = tpu.matmul %7, %10, %cst_9 {dimension_numbers = #tpu.dot_dimension_numbers<[1], [0], [0], [1], [0, 0, 1, 1], [], []>} : vector<16x1024xf32>, vector<1024x128xf32>, vector<16x128xf32> -> vector<16x128xf32>
    %c2048 = arith.constant 2048 : index
    %c0_10 = arith.constant 0 : index
    %12 = vector.load %arg3[%c2048, %c0_10] : memref<3736x128xf32, #tpu.memory_space<vmem>>, vector<1024x128xf32>
    %cst_11 = arith.constant dense<0.000000e+00> : vector<16x128xf32>
    %13 = tpu.matmul %7, %12, %cst_11 {dimension_numbers = #tpu.dot_dimension_numbers<[1], [0], [0], [1], [0, 0, 1, 1], [], []>} : vector<16x1024xf32>, vector<1024x128xf32>, vector<16x128xf32> -> vector<16x128xf32>
    %c15_i32 = arith.constant 15 : i32
    %14 = tpu.dynamic_rotate %11 by %c15_i32 dim 0 : vector<16x128xf32>, i32 -> vector<16x128xf32>
    %15 = arith.addf %9, %14 : vector<16x128xf32>
    %c14_i32 = arith.constant 14 : i32
    %16 = tpu.dynamic_rotate %13 by %c14_i32 dim 0 : vector<16x128xf32>, i32 -> vector<16x128xf32>
    %17 = arith.addf %15, %16 : vector<16x128xf32>
    %c3072 = arith.constant 3072 : index
    %c0_12 = arith.constant 0 : index
    %18 = vector.load %arg3[%c3072, %c0_12] : memref<3736x128xf32, #tpu.memory_space<vmem>>, vector<1x128xf32>
    %19 = vector.broadcast %18 : vector<1x128xf32> to vector<16x128xf32>
    %20 = arith.addf %17, %19 : vector<16x128xf32>
    %c15_i32_13 = arith.constant 15 : i32
    %21 = tpu.dynamic_rotate %20 by %c15_i32_13 dim 0 : vector<16x128xf32>, i32 -> vector<16x128xf32>
    %22 = arith.maximumf %20, %21 : vector<16x128xf32>
    %cst_14 = arith.constant 0.000000e+00 : f32
    %23 = vector.broadcast %cst_14 : f32 to vector<16x128xf32>
    %24 = arith.maximumf %22, %23 : vector<16x128xf32>
    %c3096 = arith.constant 3096 : index
    %c0_15 = arith.constant 0 : index
    %25 = vector.load %arg3[%c3096, %c0_15] : memref<3736x128xf32, #tpu.memory_space<vmem>>, vector<128x128xf32>
    %cst_16 = arith.constant dense<0.000000e+00> : vector<16x128xf32>
    %26 = tpu.matmul %24, %25, %cst_16 {dimension_numbers = #tpu.dot_dimension_numbers<[1], [0], [0], [1], [0, 0, 1, 1], [], []>} : vector<16x128xf32>, vector<128x128xf32>, vector<16x128xf32> -> vector<16x128xf32>
    %c3224 = arith.constant 3224 : index
    %c0_17 = arith.constant 0 : index
    %27 = vector.load %arg3[%c3224, %c0_17] : memref<3736x128xf32, #tpu.memory_space<vmem>>, vector<128x128xf32>
    %cst_18 = arith.constant dense<0.000000e+00> : vector<16x128xf32>
    %28 = tpu.matmul %24, %27, %cst_18 {dimension_numbers = #tpu.dot_dimension_numbers<[1], [0], [0], [1], [0, 0, 1, 1], [], []>} : vector<16x128xf32>, vector<128x128xf32>, vector<16x128xf32> -> vector<16x128xf32>
    %c3352 = arith.constant 3352 : index
    %c0_19 = arith.constant 0 : index
    %29 = vector.load %arg3[%c3352, %c0_19] : memref<3736x128xf32, #tpu.memory_space<vmem>>, vector<128x128xf32>
    %cst_20 = arith.constant dense<0.000000e+00> : vector<16x128xf32>
    %30 = tpu.matmul %24, %29, %cst_20 {dimension_numbers = #tpu.dot_dimension_numbers<[1], [0], [0], [1], [0, 0, 1, 1], [], []>} : vector<16x128xf32>, vector<128x128xf32>, vector<16x128xf32> -> vector<16x128xf32>
    %c14_i32_21 = arith.constant 14 : i32
    %31 = tpu.dynamic_rotate %28 by %c14_i32_21 dim 0 : vector<16x128xf32>, i32 -> vector<16x128xf32>
    %32 = arith.addf %26, %31 : vector<16x128xf32>
    %c12_i32 = arith.constant 12 : i32
    %33 = tpu.dynamic_rotate %30 by %c12_i32 dim 0 : vector<16x128xf32>, i32 -> vector<16x128xf32>
    %34 = arith.addf %32, %33 : vector<16x128xf32>
    %c14_i32_22 = arith.constant 14 : i32
    %35 = tpu.dynamic_rotate %34 by %c14_i32_22 dim 0 : vector<16x128xf32>, i32 -> vector<16x128xf32>
    %36 = arith.maximumf %34, %35 : vector<16x128xf32>
    %c3080 = arith.constant 3080 : index
    %c0_23 = arith.constant 0 : index
    %37 = vector.load %arg3[%c3080, %c0_23] : memref<3736x128xf32, #tpu.memory_space<vmem>>, vector<1x128xf32>
    %c3088 = arith.constant 3088 : index
    %c0_24 = arith.constant 0 : index
    %38 = vector.load %arg3[%c3088, %c0_24] : memref<3736x128xf32, #tpu.memory_space<vmem>>, vector<1x128xf32>
    %39 = vector.extract_strided_slice %36 {offsets = [0, 0], sizes = [1, 128], strides = [1, 1]} : vector<16x128xf32> to vector<1x128xf32>
    %40 = arith.addf %39, %37 : vector<1x128xf32>
    %cst_25 = arith.constant 0.000000e+00 : f32
    %41 = vector.broadcast %cst_25 : f32 to vector<1x128xf32>
    %42 = arith.maximumf %40, %41 : vector<1x128xf32>
    %c3480 = arith.constant 3480 : index
    %c0_26 = arith.constant 0 : index
    %43 = vector.load %arg3[%c3480, %c0_26] : memref<3736x128xf32, #tpu.memory_space<vmem>>, vector<128x128xf32>
    %cst_27 = arith.constant dense<0.000000e+00> : vector<1x128xf32>
    %44 = tpu.matmul %42, %43, %cst_27 {dimension_numbers = #tpu.dot_dimension_numbers<[1], [0], [0], [1], [0, 0, 1, 1], [], []>} : vector<1x128xf32>, vector<128x128xf32>, vector<1x128xf32> -> vector<1x128xf32>
    %45 = arith.addf %38, %44 : vector<1x128xf32>
    %46 = vector.extract_strided_slice %36 {offsets = [4, 0], sizes = [1, 128], strides = [1, 1]} : vector<16x128xf32> to vector<1x128xf32>
    %47 = arith.addf %46, %37 : vector<1x128xf32>
    %cst_28 = arith.constant 0.000000e+00 : f32
    %48 = vector.broadcast %cst_28 : f32 to vector<1x128xf32>
    %49 = arith.maximumf %47, %48 : vector<1x128xf32>
    %c3608 = arith.constant 3608 : index
    %c0_29 = arith.constant 0 : index
    %50 = vector.load %arg3[%c3608, %c0_29] : memref<3736x128xf32, #tpu.memory_space<vmem>>, vector<128x128xf32>
    %cst_30 = arith.constant dense<0.000000e+00> : vector<1x128xf32>
    %51 = tpu.matmul %49, %50, %cst_30 {dimension_numbers = #tpu.dot_dimension_numbers<[1], [0], [0], [1], [0, 0, 1, 1], [], []>} : vector<1x128xf32>, vector<128x128xf32>, vector<1x128xf32> -> vector<1x128xf32>
    %52 = arith.addf %45, %51 : vector<1x128xf32>
    %cst_31 = arith.constant 0.000000e+00 : f32
    %53 = vector.broadcast %cst_31 : f32 to vector<1x128xf32>
    %54 = arith.subf %53, %52 : vector<1x128xf32>
    %55 = math.exp %54 : vector<1x128xf32>
    %cst_32 = arith.constant 1.000000e+00 : f32
    %56 = vector.broadcast %cst_32 : f32 to vector<1x128xf32>
    %57 = arith.addf %56, %55 : vector<1x128xf32>
    %cst_33 = arith.constant 1.000000e+00 : f32
    %58 = vector.broadcast %cst_33 : f32 to vector<1x128xf32>
    %59 = arith.divf %58, %57 : vector<1x128xf32>
    %c0_34 = arith.constant 0 : index
    %c0_35 = arith.constant 0 : index
    %c0_36 = arith.constant 0 : index
    %60 = vector.load %arg4[%c0_34, %c0_35, %c0_36] : memref<1x1x128xf32, #tpu.memory_space<vmem>>, vector<1x1x128xf32>
    %61 = vector.shape_cast %60 : vector<1x1x128xf32> to vector<1x128xf32>
    %62 = vector.shape_cast %59 : vector<1x128xf32> to vector<1x1x128xf32>
    tpu.vector_store %arg4[%c0_34, %c0_35, %c0_36], %62 {strides = array<i32>} : memref<1x1x128xf32, #tpu.memory_space<vmem>>, vector<1x1x128xf32>,
    return
  }
  func.func @transform_0(%arg0: i32) -> (i32, i32) {
    %c0_i32 = arith.constant 0 : i32
    %c0_i32_0 = arith.constant 0 : i32
    return %c0_i32, %arg0 : i32, i32
  }
  func.func @transform_1(%arg0: i32) -> (i32, i32) {
    %c0_i32 = arith.constant 0 : i32
    %c0_i32_0 = arith.constant 0 : i32
    %c0_i32_1 = arith.constant 0 : i32
    return %c0_i32, %c0_i32_0 : i32, i32
  }
  func.func @transform_2(%arg0: i32) -> (i32, i32) {
    %c0_i32 = arith.constant 0 : i32
    %c0_i32_0 = arith.constant 0 : i32
    %c0_i32_1 = arith.constant 0 : i32
    return %c0_i32, %c0_i32_0 : i32, i32
  }
  func.func @transform_3(%arg0: i32) -> (i32, i32, i32) {
    %c0_i32 = arith.constant 0 : i32
    %c0_i32_0 = arith.constant 0 : i32
    %c0_i32_1 = arith.constant 0 : i32
    return %arg0, %c0_i32, %c0_i32_0 : i32, i32, i32
  }
}

</mosaic_0001>

<bundles_post_ra>
// kernel: squeeze.1
= control target key start
LH: loop header
LB: loop body
LE: loop exit
PB: predicated region body
PF: predicated region fallthrough
CT: control target
= control target key end

     0   :  { %s131_s8 = smov 122   ;;  %s132_s9 = smov 124   ;;  %vm8_vm0 = vcmask 15360   ;;  %s222_s0 = inlined_call_operand.vmem [shape: f32[2,32], index: 0, kind: input, shape index: {}]   ;;  %s223_s1 = inlined_call_operand.vmem [shape: f32[32,2], index: 1, kind: output, shape index: {}]  }
   0x1   :  { %v5_v0 = vld [vmem:[%s222_s0] sm:$0x3]  ;;  %s130_s0 = smov 126   ;;  %s133_s10 = smov 120  }
   0x2   :  { %6 = vst [vmem:[#allocation0] sm:$0x3] %v5_v0  ;;  %s134_s11 = smov 118   ;;  %s135_s12 = smov 116  }
   0x3   :  { %s136_s13 = smov 114   ;;  %s137_s14 = smov 112  }
   0x4   :  { %s138_s17 = smov 110   ;;  %s139_s18 = smov 108  }
   0x5   :  { %s140_s19 = smov 106   ;;  %s141_s20 = smov 104  }
   0x6   :  { %s142_s21 = smov 102   ;;  %s143_s22 = smov 100  }
   0x7   :  { %s144_s23 = smov 98  }
   0x9   :  { %v10_v1 = vld [vmem:[#allocation0] sm:$0x3]  }
   0xa   :  { %v22_v2 = vld [vmem:[#allocation0] sm:$0x3]   ;;  %11 = vrot.lane.b32.xlu0 %v10_v1, %s130_s0 }
   0xb   :  { %23 = vrot.lane.b32.xlu1 %v22_v2, %s131_s8  ;;  %v16_v3 = vld [vmem:[#allocation0] sm:$0x3]  }
   0xc   :  { %v28_v4 = vld [vmem:[#allocation0] sm:$0x3]  }
   0xd   :  { %v34_v5 = vld [vmem:[#allocation0] sm:$0x3]  }
   0xe   :  { %17 = vrot.lane.b32.xlu0 %v16_v3, %s132_s9  ;;  %v40_v6 = vld [vmem:[#allocation0] sm:$0x3]  }
   0xf   :  { %29 = vrot.lane.b32.xlu1 %v28_v4, %s133_s10  ;;  %v46_v7 = vld [vmem:[#allocation0] sm:$0x3]  }
  0x10   :  { %v52_v8 = vld [vmem:[#allocation0] sm:$0x3]  }
  0x11   :  { %v58_v9 = vld [vmem:[#allocation0] sm:$0x3]  }
  0x12   :  { %35 = vrot.lane.b32.xlu0 %v34_v5, %s134_s11  ;;  %v64_v10 = vld [vmem:[#allocation0] sm:$0x3]  }
  0x13   :  { %41 = vrot.lane.b32.xlu1 %v40_v6, %s135_s12  ;;  %v7_v11 = vld [vmem:[#allocation0] sm:$0x3]  }
  0x14   :  { %9 = vst.msk [vmem:[%s223_s1] ss:$16 sm:$0x3] %vm8_vm0, %v7_v11   ;;  %v70_v12 = vld [vmem:[#allocation0] sm:$0x3]  }
  0x15   :  { %v76_v13 = vld [vmem:[#allocation0] sm:$0x3]  }
  0x16   :  { %47 = vrot.lane.b32.xlu0 %v46_v7, %s136_s13  ;;  %v82_v14 = vld [vmem:[#allocation0] sm:$0x3]  }
  0x17   :  { %53 = vrot.lane.b32.xlu1 %v52_v8, %s137_s14  ;;  %v88_v15 = vld [vmem:[#allocation0] sm:$0x3]  }
  0x18   :  { %v94_v16 = vld [vmem:[#allocation0] sm:$0x3]  }
  0x1a   :  { %59 = vrot.lane.b32.xlu0 %v58_v9, %s138_s17 }
  0x1b   :  { %65 = vrot.lane.b32.xlu1 %v64_v10, %s139_s18 }
  0x1e   :  { %71 = vrot.lane.b32.xlu0 %v70_v12, %s140_s19 }
  0x1f   :  { %77 = vrot.lane.b32.xlu1 %v76_v13, %s141_s20 }
  0x22   :  { %83 = vrot.lane.b32.xlu0 %v82_v14, %s142_s21 }
  0x23   :  { %89 = vrot.lane.b32.xlu1 %v88_v15, %s143_s22 }
  0x26   :  { %95 = vrot.lane.b32.xlu0 %v94_v16, %s144_s23 }
  0x7c   :  { %v12_v17 = vpop.permute.xlu0 %11  }
  0x7d   :  { %v24_v18 = vpop.permute.xlu1 %23   ;;  %100 = vst.msk [vmem:[%s223_s1 + $0x1] ss:$16 sm:$0x3] %vm8_vm0, %v12_v17  }
  0x7e   :  { %102 = vst.msk [vmem:[%s223_s1 + $0x3] ss:$16 sm:$0x3] %vm8_vm0, %v24_v18  }
  0x80   :  { %v18_v19 = vpop.permute.xlu0 %17  }
  0x81   :  { %v30_v20 = vpop.permute.xlu1 %29   ;;  %101 = vst.msk [vmem:[%s223_s1 + $0x2] ss:$16 sm:$0x3] %vm8_vm0, %v18_v19  }
  0x82   :  { %103 = vst.msk [vmem:[%s223_s1 + $0x4] ss:$16 sm:$0x3] %vm8_vm0, %v30_v20  }
  0x84   :  { %v36_v21 = vpop.permute.xlu0 %35  }
  0x85   :  { %v42_v22 = vpop.permute.xlu1 %41   ;;  %104 = vst.msk [vmem:[%s223_s1 + $0x5] ss:$16 sm:$0x3] %vm8_vm0, %v36_v21  }
  0x86   :  { %105 = vst.msk [vmem:[%s223_s1 + $0x6] ss:$16 sm:$0x3] %vm8_vm0, %v42_v22  }
  0x88   :  { %v48_v23 = vpop.permute.xlu0 %47  }
  0x89   :  { %v54_v24 = vpop.permute.xlu1 %53   ;;  %106 = vst.msk [vmem:[%s223_s1 + $0x7] ss:$16 sm:$0x3] %vm8_vm0, %v48_v23  }
  0x8a   :  { %107 = vst.msk [vmem:[%s223_s1 + $0x8] ss:$16 sm:$0x3] %vm8_vm0, %v54_v24  }
  0x8c   :  { %v60_v25 = vpop.permute.xlu0 %59  }
  0x8d   :  { %v66_v26 = vpop.permute.xlu1 %65   ;;  %108 = vst.msk [vmem:[%s223_s1 + $0x9] ss:$16 sm:$0x3] %vm8_vm0, %v60_v25  }
  0x8e   :  { %109 = vst.msk [vmem:[%s223_s1 + $0xa] ss:$16 sm:$0x3] %vm8_vm0, %v66_v26  }
  0x90   :  { %v72_v27 = vpop.permute.xlu0 %71  }
  0x91   :  { %v78_v28 = vpop.permute.xlu1 %77   ;;  %110 = vst.msk [vmem:[%s223_s1 + $0xb] ss:$16 sm:$0x3] %vm8_vm0, %v72_v27  }
  0x92   :  { %111 = vst.msk [vmem:[%s223_s1 + $0xc] ss:$16 sm:$0x3] %vm8_vm0, %v78_v28  }
  0x94   :  { %v84_v29 = vpop.permute.xlu0 %83  }
  0x95   :  { %v90_v30 = vpop.permute.xlu1 %89   ;;  %112 = vst.msk [vmem:[%s223_s1 + $0xd] ss:$16 sm:$0x3] %vm8_vm0, %v84_v29  }
  0x96   :  { %113 = vst.msk [vmem:[%s223_s1 + $0xe] ss:$16 sm:$0x3] %vm8_vm0, %v90_v30  }
  0x98   :  { %v96_v31 = vpop.permute.xlu0 %95  }
  0x99   :  { %114 = vst.msk [vmem:[%s223_s1 + $0xf] ss:$16 sm:$0x3] %vm8_vm0, %v96_v31  }

// kernel: cnnpred_pallas.1
= control target key start
LH: loop header
LB: loop body
LE: loop exit
PB: predicated region body
PF: predicated region fallthrough
CT: control target
= control target key end

     0   :  { %8 = vsyncpa [#allocation4], 0  ;;  %s4553_s0 = inlined_call_operand.vmem [shape: f32[16,1024], index: 0, kind: input, shape index: {}]   ;;  %s4554_s1 = inlined_call_operand.hbm [shape: f32[520,1024], index: 1, kind: input, shape index: {}]   ;;  %s4555_s2 = inlined_call_operand.hbm [shape: f32[3736,128], index: 2, kind: input, shape index: {}]   ;;  %s4556_s3 = inlined_call_operand.vmem [shape: f32[2,1,128], index: 3, kind: output, shape index: {}]  }
   0x1   :  { %9 = vsyncpa [#allocation6], 0  ;;  %s4209_s12 = smov 0   ;;  %s4211_s13 = smov 0  }
   0x2   :  { %s4213_s14 = smov 0  }
   0x3 LB: > { %s4225_s15 = sadd.s32 4294967295, %s4179_s14   ;;  %s4228_s16 = sadd.s32 1, %s4179_s14   ;;  %s4179_s14 = sphi %s4213_s14, %s4567_s14   ;;  %s4175_s13 = sphi %s4211_s13, %s4566_s13   ;;  %s4171_s12 = sphi %s4209_s12, %s4565_s12  }
   0x4   : > { %s19_s17 = ssub.s32 %s4179_s14, %s4228_s16  ;;  %s22_s18 = sadd.s32 1, %s4175_s13 }
   0x5   : > { %p20_p0 = scmp.eq.s32.totalorder %s19_s17, 0  ;;  %p29_p1 = scmp.ne.s32.totalorder %s4175_s13, %s4171_s12 }
   0x6   : > { %p30_p2 = scmp.eq.s32.totalorder %s4179_s14, 0  ;;  %p3300_p3 = scmp.ge.s32.totalorder %s4179_s14, 1 }
   0x7   : > { %s4238_s19 = scalar_select %p20_p0, %s4175_s13, %s22_s18  }
   0x8   : > { %p4240_p4 = por %p30_p2, %p29_p1  ;;  %p114_p5 = scmp.lt.s32.totalorder %s4179_s14, 3 }
   0x9   : > { %p4557_p6 = scmp.eq.s32.totalorder %s4225_s15, 0  ;;  %s4181_s22 = smov [#allocation3]  }
   0xa   : > { %p4246_p7 = pnand %p3300_p3, %p114_p5  ;;  %s126_s23 = sshll.u32 %s4181_s22, 4  ;;  %s127_s23 = int_to_ptr.vmem [resolvable:$true] %s126_s23 }
   0xb   : > { %s4182_s25 = smov [#allocation5]   ;;  %s4108_s27 = scalar_lea.vmem %s127_s23, 66560 }
   0xc   : > { %p4042_p8 = pneg %p4246_p7  ;;  %s139_s26 = sshll.u32 %s4182_s25, 4  ;;  %s140_s26 = int_to_ptr.vmem [resolvable:$true] %s139_s26 }
   0xd   : > { %p4109_p11 = scmp.ne.s32.totalorder %s127_s23, %s4108_s27  ;;  %p4116_p0 = scmp.lt.s32.totalorder %s127_s23, %s127_s23 }
   0xe   : > { %p4254_p9 = pnand %p4557_p6, %p4042_p8  ;;  %p4117_p1 = scmp.lt.s32.totalorder %s4108_s27, %s4108_s27 }
  0x10   : > { %p4099_p10 = pneg %p4254_p9  ;;  %p4118_p2 = por %p4117_p1, %p4116_p0 }
  0x12   : > { %p4111_p12 = pnand %p4109_p11, %p4099_p10 }
  0x14   : > { %p4112_p13 = pneg %p4111_p12 }
  0x16   : > { %p4119_p3 = pnand %p4118_p2, %p4112_p13 }
  0x18   : > { %4122 = shalt.err (!%p4119_p3)
}
  0x19   : > { %s4183_s28 = smov 1024   ;;  %s4184_s29 = smov 64  }
  0x1a   : > { %4045 = dma.hbm_to_vmem [thread:$0]  (!%p4254_p9), %s4554_s1, 66560, %s127_s23, [#allocation4], %s4183_s28, %s4183_s28, %s4184_s29  }
  0x1b   : > { %s4134_s5 = scalar_lea.vmem %s140_s26, 59776  ;;  %p4142_p12 = scmp.lt.s32.totalorder %s140_s26, %s140_s26 }
  0x1c   : > { %p4135_p5 = scmp.ne.s32.totalorder %s140_s26, %s4134_s5  ;;  %p4143_p6 = scmp.lt.s32.totalorder %s4134_s5, %s4134_s5 }
  0x1e   : > { %p4137_p8 = pnand %p4135_p5, %p4099_p10  ;;  %p4144_p0 = por %p4143_p6, %p4142_p12 }
  0x20   : > { %p4138_p11 = pneg %p4137_p8 }
  0x22   : > { %p4145_p13 = pnand %p4144_p0, %p4138_p11 }
  0x24   : > { %4148 = shalt.err (!%p4145_p13)
}
  0x25   : > { %s4185_s6 = smov 128   ;;  %s4186_s7 = smov 8  }
  0x26   : > { %4048 = dma.hbm_to_vmem [thread:$0]  (!%p4254_p9), %s4555_s2, 59776, %s140_s26, [#allocation6], %s4185_s6, %s4185_s6, %s4186_s7  }
  0x27   : > { %p3303_p1 = scmp.ge.s32.totalorder %s4179_s14, 2 }
  0x29   : > { %149 = sbr.rel (%p3303_p1) target bundleno = 54 (0x36), region = 24 }
  0x2e   : > { %152 = sbr.rel (!%p4240_p4) target bundleno = 54 (0x36), region = 28  ;;  %s154_s10 = sand.u32 (%p4240_p4), 1, %s4175_s13  }
  0x2f   : > { %s3314_s11 = sshll.u32 (%p4240_p4), %s4179_s14, 5  ;;  %s3304_s17 = sshll.u32 (%p4240_p4), %s154_s10, 6 }
  0x30   : > { %s159_s23 = scalar_lea.vmem (%p4240_p4), %s4553_s0, %s3314_s11  ;;  %s156_s24 = scalar_lea.vmem (%p4240_p4), [#allocation2], %s3304_s17 }
  0x31   : > { %v172_v0 = vld [vmem:[%s159_s23] sm:$0xff] (%p4240_p4)  ;;  %v174_v1 = vld [vmem:[%s159_s23 + $0x8] sm:$0xff] (%p4240_p4)  ;;  %v176_v2 = vld [vmem:[%s159_s23 + $0x10] sm:$0xff] (%p4240_p4) }
  0x32   : > { %173 = vst [vmem:[%s156_s24] sm:$0xff] (%p4240_p4), %v172_v0  ;;  %175 = vst [vmem:[%s156_s24 + $0x8] sm:$0xff] (%p4240_p4), %v174_v1  ;;  %v178_v3 = vld [vmem:[%s159_s23 + $0x18] sm:$0xff] (%p4240_p4)  ;;  %v180_v4 = vld [vmem:[%s159_s23 + $0x40] sm:$0xff] (%p4240_p4) }
  0x33   : > { %177 = vst [vmem:[%s156_s24 + $0x10] sm:$0xff] %v176_v2  ;;  %v182_v5 = vld [vmem:[%s159_s23 + $0x48] sm:$0xff]  ;;  %179 = vst [vmem:[%s156_s24 + $0x18] sm:$0xff] %v178_v3  ;;  %v184_v6 = vld [vmem:[%s159_s23 + $0x50] sm:$0xff] }
  0x34   : > { %181 = vst [vmem:[%s156_s24 + $0x20] sm:$0xff] %v180_v4  ;;  %183 = vst [vmem:[%s156_s24 + $0x28] sm:$0xff] %v182_v5  ;;  %v186_v7 = vld [vmem:[%s159_s23 + $0x58] sm:$0xff] }
  0x35   : > { %185 = vst [vmem:[%s156_s24 + $0x30] sm:$0xff] %v184_v6  ;;  %187 = vst [vmem:[%s156_s24 + $0x38] sm:$0xff] %v186_v7 }
  0x36 PF: > { %196 = sbr.rel (%p4246_p7) target bundleno = 1355 (0x54b), region = 51  ;;  %s199_s14 = sand.u32 (!%p4246_p7), 1, %s4171_s12  }
  0x37   : > { %s3308_s20 = sshll.u32 (!%p4246_p7), %s199_s14, 6  ;;  %p4561_p4 = scmp.eq.s32.totalorder (!%p4246_p7), %s4225_s15, 0 }
  0x38   : > { %s4287_s25 = scalar_lea.vmem (!%p4246_p7), [#allocation2], %s3308_s20 }
  0x3b   : > { %4162 = dma.done.wait (%p4561_p4), [#allocation4], 66560   ;;  %p4562_p6 = pmov %p4561_p4 }
  0x3c   : > { %p4563_p9 = pmov %p4561_p4 }
  0x3d   : > { %4164 = vsyncadd (%p4562_p6), [#allocation4], 4294900736 }
  0x3e   : > { %4166 = dma.done.wait (%p4563_p9), [#allocation6], 59776   ;;  %p4564_p10 = pmov %p4561_p4 }
  0x3f   : > { %v361_v8 = vld [vmem:[#allocation3 + $0x3c8] sm:$0xff]  ;;  %v360_v10 = vld [vmem:[#allocation3 + $0x3c0] sm:$0xff]  ;;  %vm4188_vm2 = vmmov 0   ;;  %p229_p7 = scmp.lt.s32.totalorder %s4225_s15, 1 }
  0x40   : > { %4168 = vsyncadd (%p4564_p10), [#allocation6], 4294907520  ;;  %v617_v9 = vld [vmem:[#allocation3 + $0xbc8] sm:$0xff]  ;;  %797 = vmatprep.subr.mxu0 %v361_v8  ;;  %v616_v11 = vld [vmem:[#allocation3 + $0xbc0] sm:$0xff] }
  0x41   : > { %874 = vmatprep.subr.mxu1 %v617_v9  ;;  %v353_v12 = vld [vmem:[#allocation3 + $0x388] sm:$0xff]  ;;  %798 = vmatpush1.msra.mxu0 %v360_v10  ;;  %v352_v14 = vld [vmem:[#allocation3 + $0x380] sm:$0xff]  ;;  %s4569_s15 = smov (!%p229_p7, %s4225_s15), 1 }
  0x42   : > { %v609_v13 = vld [vmem:[#allocation3 + $0xb88] sm:$0xff]  ;;  %875 = vmatpush1.msra.mxu1 %v616_v11  ;;  %v608_v15 = vld [vmem:[#allocation3 + $0xb80] sm:$0xff]  ;;  %799 = vmatprep.subr.mxu0 %v353_v12  ;;  %s231_s26 = scalar_lea.vmem %s4556_s3, %s4569_s15 }
  0x43   : > { %v345_v16 = vld [vmem:[#allocation3 + $0x348] sm:$0xff]  ;;  %876 = vmatprep.subr.mxu1 %v609_v13  ;;  %v344_v18 = vld [vmem:[#allocation3 + $0x340] sm:$0xff]  ;;  %800 = vmatpush1.msra.mxu0 %v352_v14 }
  0x44   : > { %v601_v17 = vld [vmem:[#allocation3 + $0xb48] sm:$0xff]  ;;  %v600_v19 = vld [vmem:[#allocation3 + $0xb40] sm:$0xff]  ;;  %877 = vmatpush1.msra.mxu1 %v608_v15  ;;  %801 = vmatprep.subr.mxu0 %v345_v16 }
  0x45   : > { %v337_v20 = vld [vmem:[#allocation3 + $0x308] sm:$0xff]  ;;  %878 = vmatprep.subr.mxu1 %v601_v17  ;;  %v336_v22 = vld [vmem:[#allocation3 + $0x300] sm:$0xff]  ;;  %802 = vmatpush1.msra.mxu0 %v344_v18 }
  0x46   : > { %v593_v21 = vld [vmem:[#allocation3 + $0xb08] sm:$0xff]  ;;  %v592_v23 = vld [vmem:[#allocation3 + $0xb00] sm:$0xff]  ;;  %879 = vmatpush1.msra.mxu1 %v600_v19  ;;  %803 = vmatprep.subr.mxu0 %v337_v20 }
  0x47   : > { %v329_v24 = vld [vmem:[#allocation3 + $0x2c8] sm:$0xff]  ;;  %880 = vmatprep.subr.mxu1 %v593_v21  ;;  %v328_v26 = vld [vmem:[#allocation3 + $0x2c0] sm:$0xff]  ;;  %804 = vmatpush1.msra.mxu0 %v336_v22 }
  0x48   : > { %v585_v25 = vld [vmem:[#allocation3 + $0xac8] sm:$0xff]  ;;  %v584_v27 = vld [vmem:[#allocation3 + $0xac0] sm:$0xff]  ;;  %881 = vmatpush1.msra.mxu1 %v592_v23  ;;  %805 = vmatprep.subr.mxu0 %v329_v24 }
  0x49   : > { %v321_v28 = vld [vmem:[#allocation3 + $0x288] sm:$0xff]  ;;  %882 = vmatprep.subr.mxu1 %v585_v25  ;;  %v320_v30 = vld [vmem:[#allocation3 + $0x280] sm:$0xff]  ;;  %806 = vmatpush1.msra.mxu0 %v328_v26 }
  0x4a   : > { %v577_v29 = vld [vmem:[#allocation3 + $0xa88] sm:$0xff]  ;;  %v576_v31 = vld [vmem:[#allocation3 + $0xa80] sm:$0xff]  ;;  %883 = vmatpush1.msra.mxu1 %v584_v27  ;;  %807 = vmatprep.subr.mxu0 %v321_v28 }
  0x4b   : > { %v313_v32 = vld [vmem:[#allocation3 + $0x248] sm:$0xff]  ;;  %884 = vmatprep.subr.mxu1 %v577_v29  ;;  %v312_v34 = vld [vmem:[#allocation3 + $0x240] sm:$0xff]  ;;  %808 = vmatpush1.msra.mxu0 %v320_v30 }
  0x4c   : > { %v569_v33 = vld [vmem:[#allocation3 + $0xa48] sm:$0xff]  ;;  %v568_v35 = vld [vmem:[#allocation3 + $0xa40] sm:$0xff]  ;;  %885 = vmatpush1.msra.mxu1 %v576_v31  ;;  %809 = vmatprep.subr.mxu0 %v313_v32 }
  0x4d   : > { %v305_v36 = vld [vmem:[#allocation3 + $0x208] sm:$0xff]  ;;  %886 = vmatprep.subr.mxu1 %v569_v33  ;;  %v304_v38 = vld [vmem:[#allocation3 + $0x200] sm:$0xff]  ;;  %810 = vmatpush1.msra.mxu0 %v312_v34 }
  0x4e   : > { %v561_v37 = vld [vmem:[#allocation3 + $0xa08] sm:$0xff]  ;;  %v560_v39 = vld [vmem:[#allocation3 + $0xa00] sm:$0xff]  ;;  %887 = vmatpush1.msra.mxu1 %v568_v35  ;;  %811 = vmatprep.subr.mxu0 %v305_v36 }
  0x4f   : > { %v297_v40 = vld [vmem:[#allocation3 + $0x1c8] sm:$0xff]  ;;  %888 = vmatprep.subr.mxu1 %v561_v37  ;;  %v296_v42 = vld [vmem:[#allocation3 + $0x1c0] sm:$0xff]  ;;  %812 = vmatpush1.msra.mxu0 %v304_v38 }
  0x50   : > { %v553_v41 = vld [vmem:[#allocation3 + $0x9c8] sm:$0xff]  ;;  %v552_v43 = vld [vmem:[#allocation3 + $0x9c0] sm:$0xff]  ;;  %889 = vmatpush1.msra.mxu1 %v560_v39  ;;  %813 = vmatprep.subr.mxu0 %v297_v40 }
  0x51   : > { %v289_v44 = vld [vmem:[#allocation3 + $0x188] sm:$0xff]  ;;  %890 = vmatprep.subr.mxu1 %v553_v41  ;;  %v288_v46 = vld [vmem:[#allocation3 + $0x180] sm:$0xff]  ;;  %814 = vmatpush1.msra.mxu0 %v296_v42 }
  0x52   : > { %v545_v45 = vld [vmem:[#allocation3 + $0x988] sm:$0xff]  ;;  %v544_v47 = vld [vmem:[#allocation3 + $0x980] sm:$0xff]  ;;  %891 = vmatpush1.msra.mxu1 %v552_v43  ;;  %815 = vmatprep.subr.mxu0 %v289_v44 }
  0x53   : > { %v281_v48 = vld [vmem:[#allocation3 + $0x148] sm:$0xff]  ;;  %892 = vmatprep.subr.mxu1 %v545_v45  ;;  %v280_v50 = vld [vmem:[#allocation3 + $0x140] sm:$0xff]  ;;  %816 = vmatpush1.msra.mxu0 %v288_v46 }
  0x54   : > { %v537_v49 = vld [vmem:[#allocation3 + $0x948] sm:$0xff]  ;;  %v536_v51 = vld [vmem:[#allocation3 + $0x940] sm:$0xff]  ;;  %893 = vmatpush1.msra.mxu1 %v544_v47  ;;  %817 = vmatprep.subr.mxu0 %v281_v48 }
  0x55   : > { %v273_v52 = vld [vmem:[#allocation3 + $0x108] sm:$0xff]  ;;  %894 = vmatprep.subr.mxu1 %v537_v49  ;;  %v272_v54 = vld [vmem:[#allocation3 + $0x100] sm:$0xff]  ;;  %818 = vmatpush1.msra.mxu0 %v280_v50 }
  0x56   : > { %v529_v53 = vld [vmem:[#allocation3 + $0x908] sm:$0xff]  ;;  %v528_v55 = vld [vmem:[#allocation3 + $0x900] sm:$0xff]  ;;  %895 = vmatpush1.msra.mxu1 %v536_v51  ;;  %819 = vmatprep.subr.mxu0 %v273_v52 }
  0x57   : > { %v265_v56 = vld [vmem:[#allocation3 + $0xc8] sm:$0xff]  ;;  %896 = vmatprep.subr.mxu1 %v529_v53  ;;  %v264_v58 = vld [vmem:[#allocation3 + $0xc0] sm:$0xff]  ;;  %820 = vmatpush1.msra.mxu0 %v272_v54 }
  0x58   : > { %v521_v57 = vld [vmem:[#allocation3 + $0x8c8] sm:$0xff]  ;;  %v520_v59 = vld [vmem:[#allocation3 + $0x8c0] sm:$0xff]  ;;  %897 = vmatpush1.msra.mxu1 %v528_v55  ;;  %821 = vmatprep.subr.mxu0 %v265_v56 }
  0x59   : > { %v257_v60 = vld [vmem:[#allocation3 + $0x88] sm:$0xff]  ;;  %898 = vmatprep.subr.mxu1 %v521_v57  ;;  %v256_v62 = vld [vmem:[#allocation3 + $0x80] sm:$0xff]  ;;  %822 = vmatpush1.msra.mxu0 %v264_v58 }
  0x5a   : > { %v513_v61 = vld [vmem:[#allocation3 + $0x888] sm:$0xff]  ;;  %v512_v63 = vld [vmem:[#allocation3 + $0x880] sm:$0xff]  ;;  %899 = vmatpush1.msra.mxu1 %v520_v59  ;;  %823 = vmatprep.subr.mxu0 %v257_v60 }
  0x5b   : > { %v249_v0 = vld [vmem:[#allocation3 + $0x48] sm:$0xff]  ;;  %900 = vmatprep.subr.mxu1 %v513_v61  ;;  %v248_v2 = vld [vmem:[#allocation3 + $0x40] sm:$0xff]  ;;  %824 = vmatpush1.msra.mxu0 %v256_v62 }
  0x5c   : > { %v505_v1 = vld [vmem:[#allocation3 + $0x848] sm:$0xff]  ;;  %v504_v3 = vld [vmem:[#allocation3 + $0x840] sm:$0xff]  ;;  %901 = vmatpush1.msra.mxu1 %v512_v63  ;;  %825 = vmatprep.subr.mxu0 %v249_v0 }
  0x5d   : > { %v241_v4 = vld [vmem:[#allocation3 + $0x8] sm:$0xff]  ;;  %902 = vmatprep.subr.mxu1 %v505_v1  ;;  %v240_v6 = vld [vmem:[#allocation3] sm:$0xff]  ;;  %826 = vmatpush1.msra.mxu0 %v248_v2 }
  0x5e   : > { %v497_v5 = vld [vmem:[#allocation3 + $0x808] sm:$0xff]  ;;  %v496_v7 = vld [vmem:[#allocation3 + $0x800] sm:$0xff]  ;;  %903 = vmatpush1.msra.mxu1 %v504_v3  ;;  %827 = vmatprep.subr.mxu0 %v241_v4 }
  0x5f   : > { %v489_v8 = vld [vmem:[#allocation3 + $0x7c8] sm:$0xff]  ;;  %904 = vmatprep.subr.mxu1 %v497_v5  ;;  %v488_v10 = vld [vmem:[#allocation3 + $0x7c0] sm:$0xff]  ;;  %828 = vmatpush1.msra.mxu0 %v240_v6 }
  0x60   : > { %v745_v9 = vld [vmem:[#allocation3 + $0xfc8] sm:$0xff]  ;;  %v744_v11 = vld [vmem:[#allocation3 + $0xfc0] sm:$0xff]  ;;  %905 = vmatpush1.msra.mxu1 %v496_v7  ;;  %829 = vmatprep.subr.mxu0 %v489_v8 }
  0x61   : > { %v481_v12 = vld [vmem:[#allocation3 + $0x788] sm:$0xff]  ;;  %906 = vmatprep.subr.mxu1 %v745_v9  ;;  %v480_v14 = vld [vmem:[#allocation3 + $0x780] sm:$0xff]  ;;  %830 = vmatpush2.msra.mxu0 %v488_v10  ;;  %v4304_v10 = vld [vmem:[%s4287_s25 + $0x18] sm:$0xff] }
  0x62   : > { %v737_v13 = vld [vmem:[#allocation3 + $0xf88] sm:$0xff]  ;;  %v736_v15 = vld [vmem:[#allocation3 + $0xf80] sm:$0xff]  ;;  %907 = vmatpush2.msra.mxu1 %v744_v11  ;;  %831 = vmatprep.subr.mxu0 %v481_v12  ;;  %v363_v11 = vld [vmem:[#allocation3 + $0x3d8] sm:$0xff] }
  0x63   : > { %v473_v16 = vld [vmem:[#allocation3 + $0x748] sm:$0xff]  ;;  %908 = vmatprep.subr.mxu1 %v737_v13  ;;  %v472_v18 = vld [vmem:[#allocation3 + $0x740] sm:$0xff]  ;;  %832 = vmatpush2.msra.mxu0 %v480_v14  ;;  %v619_v12 = vld [vmem:[#allocation3 + $0xbd8] sm:$0xff] }
  0x64   : > { %v729_v17 = vld [vmem:[#allocation3 + $0xf48] sm:$0xff]  ;;  %v728_v19 = vld [vmem:[#allocation3 + $0xf40] sm:$0xff]  ;;  %909 = vmatpush2.msra.mxu1 %v736_v15  ;;  %833 = vmatprep.subr.mxu0 %v473_v16  ;;  %v4308_v13 = vld [vmem:[%s4287_s25 + $0x10] sm:$0xff] }
  0x65   : > { %v465_v20 = vld [vmem:[#allocation3 + $0x708] sm:$0xff]  ;;  %910 = vmatprep.subr.mxu1 %v729_v17  ;;  %v464_v22 = vld [vmem:[#allocation3 + $0x700] sm:$0xff]  ;;  %834 = vmatpush2.msra.mxu0 %v472_v18  ;;  %v362_v14 = vld [vmem:[#allocation3 + $0x3d0] sm:$0xff] }
  0x66   : > { %v721_v21 = vld [vmem:[#allocation3 + $0xf08] sm:$0xff]  ;;  %v720_v23 = vld [vmem:[#allocation3 + $0xf00] sm:$0xff]  ;;  %911 = vmatpush2.msra.mxu1 %v728_v19  ;;  %835 = vmatprep.subr.mxu0 %v465_v20  ;;  %v618_v15 = vld [vmem:[#allocation3 + $0xbd0] sm:$0xff] }
  0x67   : > { %v457_v24 = vld [vmem:[#allocation3 + $0x6c8] sm:$0xff]  ;;  %912 = vmatprep.subr.mxu1 %v721_v21  ;;  %v456_v26 = vld [vmem:[#allocation3 + $0x6c0] sm:$0xff]  ;;  %836 = vmatpush2.msra.mxu0 %v464_v22  ;;  %v355_v16 = vld [vmem:[#allocation3 + $0x398] sm:$0xff] }
  0x68   : > { %v713_v25 = vld [vmem:[#allocation3 + $0xec8] sm:$0xff]  ;;  %v712_v27 = vld [vmem:[#allocation3 + $0xec0] sm:$0xff]  ;;  %913 = vmatpush2.msra.mxu1 %v720_v23  ;;  %837 = vmatprep.subr.mxu0 %v457_v24  ;;  %v611_v17 = vld [vmem:[#allocation3 + $0xb98] sm:$0xff] }
  0x69   : > { %v449_v28 = vld [vmem:[#allocation3 + $0x688] sm:$0xff]  ;;  %914 = vmatprep.subr.mxu1 %v713_v25  ;;  %v448_v30 = vld [vmem:[#allocation3 + $0x680] sm:$0xff]  ;;  %838 = vmatpush2.msra.mxu0 %v456_v26  ;;  %v354_v18 = vld [vmem:[#allocation3 + $0x390] sm:$0xff] }
  0x6a   : > { %v705_v29 = vld [vmem:[#allocation3 + $0xe88] sm:$0xff]  ;;  %v704_v31 = vld [vmem:[#allocation3 + $0xe80] sm:$0xff]  ;;  %915 = vmatpush2.msra.mxu1 %v712_v27  ;;  %839 = vmatprep.subr.mxu0 %v449_v28  ;;  %v610_v19 = vld [vmem:[#allocation3 + $0xb90] sm:$0xff] }
  0x6b   : > { %v441_v32 = vld [vmem:[#allocation3 + $0x648] sm:$0xff]  ;;  %916 = vmatprep.subr.mxu1 %v705_v29  ;;  %v440_v34 = vld [vmem:[#allocation3 + $0x640] sm:$0xff]  ;;  %840 = vmatpush2.msra.mxu0 %v448_v30  ;;  %v347_v20 = vld [vmem:[#allocation3 + $0x358] sm:$0xff] }
  0x6c   : > { %v697_v33 = vld [vmem:[#allocation3 + $0xe48] sm:$0xff]  ;;  %v696_v35 = vld [vmem:[#allocation3 + $0xe40] sm:$0xff]  ;;  %917 = vmatpush2.msra.mxu1 %v704_v31  ;;  %841 = vmatprep.subr.mxu0 %v441_v32  ;;  %v603_v21 = vld [vmem:[#allocation3 + $0xb58] sm:$0xff] }
  0x6d   : > { %v433_v36 = vld [vmem:[#allocation3 + $0x608] sm:$0xff]  ;;  %918 = vmatprep.subr.mxu1 %v697_v33  ;;  %v432_v38 = vld [vmem:[#allocation3 + $0x600] sm:$0xff]  ;;  %842 = vmatpush2.msra.mxu0 %v440_v34  ;;  %v346_v22 = vld [vmem:[#allocation3 + $0x350] sm:$0xff] }
  0x6e   : > { %v689_v37 = vld [vmem:[#allocation3 + $0xe08] sm:$0xff]  ;;  %v688_v39 = vld [vmem:[#allocation3 + $0xe00] sm:$0xff]  ;;  %919 = vmatpush2.msra.mxu1 %v696_v35  ;;  %843 = vmatprep.subr.mxu0 %v433_v36  ;;  %v602_v23 = vld [vmem:[#allocation3 + $0xb50] sm:$0xff] }
  0x6f   : > { %v425_v40 = vld [vmem:[#allocation3 + $0x5c8] sm:$0xff]  ;;  %920 = vmatprep.subr.mxu1 %v689_v37  ;;  %v424_v42 = vld [vmem:[#allocation3 + $0x5c0] sm:$0xff]  ;;  %844 = vmatpush2.msra.mxu0 %v432_v38  ;;  %v339_v24 = vld [vmem:[#allocation3 + $0x318] sm:$0xff] }
  0x70   : > { %v681_v41 = vld [vmem:[#allocation3 + $0xdc8] sm:$0xff]  ;;  %v680_v43 = vld [vmem:[#allocation3 + $0xdc0] sm:$0xff]  ;;  %921 = vmatpush2.msra.mxu1 %v688_v39  ;;  %845 = vmatprep.subr.mxu0 %v425_v40  ;;  %v595_v25 = vld [vmem:[#allocation3 + $0xb18] sm:$0xff] }
  0x71   : > { %v417_v44 = vld [vmem:[#allocation3 + $0x588] sm:$0xff]  ;;  %922 = vmatprep.subr.mxu1 %v681_v41  ;;  %v416_v46 = vld [vmem:[#allocation3 + $0x580] sm:$0xff]  ;;  %846 = vmatpush2.msra.mxu0 %v424_v42  ;;  %v338_v26 = vld [vmem:[#allocation3 + $0x310] sm:$0xff] }
  0x72   : > { %v673_v45 = vld [vmem:[#allocation3 + $0xd88] sm:$0xff]  ;;  %v672_v47 = vld [vmem:[#allocation3 + $0xd80] sm:$0xff]  ;;  %923 = vmatpush2.msra.mxu1 %v680_v43  ;;  %847 = vmatprep.subr.mxu0 %v417_v44  ;;  %v594_v27 = vld [vmem:[#allocation3 + $0xb10] sm:$0xff] }
  0x73   : > { %v409_v48 = vld [vmem:[#allocation3 + $0x548] sm:$0xff]  ;;  %924 = vmatprep.subr.mxu1 %v673_v45  ;;  %v408_v50 = vld [vmem:[#allocation3 + $0x540] sm:$0xff]  ;;  %848 = vmatpush2.msra.mxu0 %v416_v46  ;;  %v331_v28 = vld [vmem:[#allocation3 + $0x2d8] sm:$0xff] }
  0x74   : > { %v665_v49 = vld [vmem:[#allocation3 + $0xd48] sm:$0xff]  ;;  %v664_v51 = vld [vmem:[#allocation3 + $0xd40] sm:$0xff]  ;;  %925 = vmatpush2.msra.mxu1 %v672_v47  ;;  %849 = vmatprep.subr.mxu0 %v409_v48  ;;  %v587_v29 = vld [vmem:[#allocation3 + $0xad8] sm:$0xff] }
  0x75   : > { %v401_v52 = vld [vmem:[#allocation3 + $0x508] sm:$0xff]  ;;  %926 = vmatprep.subr.mxu1 %v665_v49  ;;  %v400_v54 = vld [vmem:[#allocation3 + $0x500] sm:$0xff]  ;;  %850 = vmatpush2.msra.mxu0 %v408_v50  ;;  %v330_v30 = vld [vmem:[#allocation3 + $0x2d0] sm:$0xff] }
  0x76   : > { %v657_v53 = vld [vmem:[#allocation3 + $0xd08] sm:$0xff]  ;;  %v656_v55 = vld [vmem:[#allocation3 + $0xd00] sm:$0xff]  ;;  %927 = vmatpush2.msra.mxu1 %v664_v51  ;;  %851 = vmatprep.subr.mxu0 %v401_v52  ;;  %v586_v31 = vld [vmem:[#allocation3 + $0xad0] sm:$0xff] }
  0x77   : > { %v393_v56 = vld [vmem:[#allocation3 + $0x4c8] sm:$0xff]  ;;  %928 = vmatprep.subr.mxu1 %v657_v53  ;;  %v392_v58 = vld [vmem:[#allocation3 + $0x4c0] sm:$0xff]  ;;  %852 = vmatpush2.msra.mxu0 %v400_v54  ;;  %v323_v32 = vld [vmem:[#allocation3 + $0x298] sm:$0xff] }
  0x78   : > { %v649_v57 = vld [vmem:[#allocation3 + $0xcc8] sm:$0xff]  ;;  %v648_v59 = vld [vmem:[#allocation3 + $0xcc0] sm:$0xff]  ;;  %929 = vmatpush2.msra.mxu1 %v656_v55  ;;  %853 = vmatprep.subr.mxu0 %v393_v56  ;;  %v579_v33 = vld [vmem:[#allocation3 + $0xa98] sm:$0xff] }
  0x79   : > { %v385_v60 = vld [vmem:[#allocation3 + $0x488] sm:$0xff]  ;;  %930 = vmatprep.subr.mxu1 %v649_v57  ;;  %v384_v62 = vld [vmem:[#allocation3 + $0x480] sm:$0xff]  ;;  %854 = vmatpush2.msra.mxu0 %v392_v58  ;;  %v322_v34 = vld [vmem:[#allocation3 + $0x290] sm:$0xff] }
  0x7a   : > { %v641_v61 = vld [vmem:[#allocation3 + $0xc88] sm:$0xff]  ;;  %v640_v63 = vld [vmem:[#allocation3 + $0xc80] sm:$0xff]  ;;  %931 = vmatpush2.msra.mxu1 %v648_v59  ;;  %855 = vmatprep.subr.mxu0 %v385_v60  ;;  %v578_v35 = vld [vmem:[#allocation3 + $0xa90] sm:$0xff] }
  0x7b   : > { %v377_v0 = vld [vmem:[#allocation3 + $0x448] sm:$0xff]  ;;  %932 = vmatprep.subr.mxu1 %v641_v61  ;;  %v376_v2 = vld [vmem:[#allocation3 + $0x440] sm:$0xff]  ;;  %856 = vmatpush2.msra.mxu0 %v384_v62  ;;  %v315_v36 = vld [vmem:[#allocation3 + $0x258] sm:$0xff] }
  0x7c   : > { %v633_v1 = vld [vmem:[#allocation3 + $0xc48] sm:$0xff]  ;;  %v632_v3 = vld [vmem:[#allocation3 + $0xc40] sm:$0xff]  ;;  %933 = vmatpush2.msra.mxu1 %v640_v63  ;;  %857 = vmatprep.subr.mxu0 %v377_v0  ;;  %v571_v37 = vld [vmem:[#allocation3 + $0xa58] sm:$0xff] }
  0x7d   : > { %v369_v4 = vld [vmem:[#allocation3 + $0x408] sm:$0xff]  ;;  %934 = vmatprep.subr.mxu1 %v633_v1  ;;  %v368_v6 = vld [vmem:[#allocation3 + $0x400] sm:$0xff]  ;;  %858 = vmatpush2.msra.mxu0 %v376_v2  ;;  %v314_v38 = vld [vmem:[#allocation3 + $0x250] sm:$0xff] }
  0x7e   : > { %v625_v5 = vld [vmem:[#allocation3 + $0xc08] sm:$0xff]  ;;  %935 = vmatpush2.msra.mxu1 %v632_v3  ;;  %v624_v8 = vld [vmem:[#allocation3 + $0xc00] sm:$0xff]  ;;  %859 = vmatprep.subr.mxu0 %v369_v4  ;;  %v570_v39 = vld [vmem:[#allocation3 + $0xa50] sm:$0xff] }
  0x7f   : > { %v4298_v7 = vld [vmem:[%s4287_s25 + $0x8] sm:$0xff]  ;;  %v4301_v9 = vld [vmem:[%s4287_s25] sm:$0xff]  ;;  %936 = vmatprep.subr.mxu1 %v625_v5  ;;  %860 = vmatpush2.msra.mxu0 %v368_v6  ;;  %v307_v40 = vld [vmem:[#allocation3 + $0x218] sm:$0xff] }
  0x80   : > { %861 = vmatprep.mubr.f32.mxu0 %v4298_v7  ;;  %937 = vmatpush2.msra.mxu1 %v624_v8  ;;  %v563_v41 = vld [vmem:[#allocation3 + $0xa18] sm:$0xff]  ;;  %v306_v42 = vld [vmem:[#allocation3 + $0x210] sm:$0xff] }
  0x81   : > { %862 = vmatmul.mubr.f32.vlgmr.msra.gmra.mxu0 %v4301_v9  ;;  %938 = vmatprep.mubr.f32.mxu1 %v4304_v10  ;;  %v562_v43 = vld [vmem:[#allocation3 + $0xa10] sm:$0xff]  ;;  %v299_v44 = vld [vmem:[#allocation3 + $0x1d8] sm:$0xff] }
  0x82   : > { %951 = vmatprep.subr.mxu0 %v363_v11  ;;  %1028 = vmatprep.subr.mxu1 %v619_v12  ;;  %v555_v45 = vld [vmem:[#allocation3 + $0x9d8] sm:$0xff]  ;;  %v298_v46 = vld [vmem:[#allocation3 + $0x1d0] sm:$0xff] }
  0x83   : > { %939 = vmatmul.mubr.f32.vlgmr.msra.gmra.mxu1 %v4308_v13  ;;  %952 = vmatpush1.msra.mxu0 %v362_v14  ;;  %v554_v47 = vld [vmem:[#allocation3 + $0x9d0] sm:$0xff]  ;;  %v291_v48 = vld [vmem:[#allocation3 + $0x198] sm:$0xff] }
  0x84   : > { %1029 = vmatpush1.msra.mxu1 %v618_v15  ;;  %953 = vmatprep.subr.mxu0 %v355_v16  ;;  %v547_v49 = vld [vmem:[#allocation3 + $0x998] sm:$0xff]  ;;  %v290_v50 = vld [vmem:[#allocation3 + $0x190] sm:$0xff] }
  0x85   : > { %1030 = vmatprep.subr.mxu1 %v611_v17  ;;  %954 = vmatpush1.msra.mxu0 %v354_v18  ;;  %v546_v51 = vld [vmem:[#allocation3 + $0x990] sm:$0xff]  ;;  %v283_v52 = vld [vmem:[#allocation3 + $0x158] sm:$0xff] }
  0x86   : > { %1031 = vmatpush1.msra.mxu1 %v610_v19  ;;  %955 = vmatprep.subr.mxu0 %v347_v20  ;;  %v539_v53 = vld [vmem:[#allocation3 + $0x958] sm:$0xff]  ;;  %v282_v54 = vld [vmem:[#allocation3 + $0x150] sm:$0xff] }
  0x87   : > { %1032 = vmatprep.subr.mxu1 %v603_v21  ;;  %956 = vmatpush1.msra.mxu0 %v346_v22  ;;  %v538_v55 = vld [vmem:[#allocation3 + $0x950] sm:$0xff]  ;;  %v275_v56 = vld [vmem:[#allocation3 + $0x118] sm:$0xff] }
  0x88   : > { %1033 = vmatpush1.msra.mxu1 %v602_v23  ;;  %957 = vmatprep.subr.mxu0 %v339_v24  ;;  %v531_v57 = vld [vmem:[#allocation3 + $0x918] sm:$0xff]  ;;  %v274_v58 = vld [vmem:[#allocation3 + $0x110] sm:$0xff] }
  0x89   : > { %1034 = vmatprep.subr.mxu1 %v595_v25  ;;  %958 = vmatpush1.msra.mxu0 %v338_v26  ;;  %v530_v59 = vld [vmem:[#allocation3 + $0x910] sm:$0xff]  ;;  %v267_v60 = vld [vmem:[#allocation3 + $0xd8] sm:$0xff] }
  0x8a   : > { %1035 = vmatpush1.msra.mxu1 %v594_v27  ;;  %959 = vmatprep.subr.mxu0 %v331_v28  ;;  %v523_v61 = vld [vmem:[#allocation3 + $0x8d8] sm:$0xff]  ;;  %v266_v62 = vld [vmem:[#allocation3 + $0xd0] sm:$0xff] }
  0x8b   : > { %1036 = vmatprep.subr.mxu1 %v587_v29  ;;  %960 = vmatpush1.msra.mxu0 %v330_v30  ;;  %v522_v63 = vld [vmem:[#allocation3 + $0x8d0] sm:$0xff]  ;;  %v259_v0 = vld [vmem:[#allocation3 + $0x98] sm:$0xff] }
  0x8c   : > { %1037 = vmatpush1.msra.mxu1 %v586_v31  ;;  %961 = vmatprep.subr.mxu0 %v323_v32  ;;  %v515_v1 = vld [vmem:[#allocation3 + $0x898] sm:$0xff]  ;;  %v258_v2 = vld [vmem:[#allocation3 + $0x90] sm:$0xff] }
  0x8d   : > { %1038 = vmatprep.subr.mxu1 %v579_v33  ;;  %962 = vmatpush1.msra.mxu0 %v322_v34  ;;  %v514_v3 = vld [vmem:[#allocation3 + $0x890] sm:$0xff]  ;;  %v251_v4 = vld [vmem:[#allocation3 + $0x58] sm:$0xff] }
  0x8e   : > { %1039 = vmatpush1.msra.mxu1 %v578_v35  ;;  %963 = vmatprep.subr.mxu0 %v315_v36  ;;  %v507_v5 = vld [vmem:[#allocation3 + $0x858] sm:$0xff]  ;;  %v250_v6 = vld [vmem:[#allocation3 + $0x50] sm:$0xff] }
  0x8f   : > { %1040 = vmatprep.subr.mxu1 %v571_v37  ;;  %964 = vmatpush1.msra.mxu0 %v314_v38  ;;  %v506_v8 = vld [vmem:[#allocation3 + $0x850] sm:$0xff]  ;;  %v243_v11 = vld [vmem:[#allocation3 + $0x18] sm:$0xff] }
  0x90   : > { %1041 = vmatpush1.msra.mxu1 %v570_v39  ;;  %965 = vmatprep.subr.mxu0 %v307_v40  ;;  %v499_v12 = vld [vmem:[#allocation3 + $0x818] sm:$0xff]  ;;  %v242_v14 = vld [vmem:[#allocation3 + $0x10] sm:$0xff] }
  0x91   : > { %1042 = vmatprep.subr.mxu1 %v563_v41  ;;  %966 = vmatpush1.msra.mxu0 %v306_v42  ;;  %v498_v15 = vld [vmem:[#allocation3 + $0x810] sm:$0xff]  ;;  %v491_v16 = vld [vmem:[#allocation3 + $0x7d8] sm:$0xff] }
  0x92   : > { %1043 = vmatpush1.msra.mxu1 %v562_v43  ;;  %967 = vmatprep.subr.mxu0 %v299_v44  ;;  %v747_v17 = vld [vmem:[#allocation3 + $0xfd8] sm:$0xff]  ;;  %v490_v18 = vld [vmem:[#allocation3 + $0x7d0] sm:$0xff] }
  0x93   : > { %1044 = vmatprep.subr.mxu1 %v555_v45  ;;  %968 = vmatpush1.msra.mxu0 %v298_v46  ;;  %v746_v19 = vld [vmem:[#allocation3 + $0xfd0] sm:$0xff]  ;;  %v483_v20 = vld [vmem:[#allocation3 + $0x798] sm:$0xff] }
  0x94   : > { %1045 = vmatpush1.msra.mxu1 %v554_v47  ;;  %969 = vmatprep.subr.mxu0 %v291_v48  ;;  %v739_v21 = vld [vmem:[#allocation3 + $0xf98] sm:$0xff]  ;;  %v482_v22 = vld [vmem:[#allocation3 + $0x790] sm:$0xff] }
  0x95   : > { %1046 = vmatprep.subr.mxu1 %v547_v49  ;;  %970 = vmatpush1.msra.mxu0 %v290_v50  ;;  %v738_v23 = vld [vmem:[#allocation3 + $0xf90] sm:$0xff]  ;;  %v475_v24 = vld [vmem:[#allocation3 + $0x758] sm:$0xff] }
  0x96   : > { %1047 = vmatpush1.msra.mxu1 %v546_v51  ;;  %971 = vmatprep.subr.mxu0 %v283_v52  ;;  %v731_v25 = vld [vmem:[#allocation3 + $0xf58] sm:$0xff]  ;;  %v474_v26 = vld [vmem:[#allocation3 + $0x750] sm:$0xff] }
  0x97   : > { %1048 = vmatprep.subr.mxu1 %v539_v53  ;;  %972 = vmatpush1.msra.mxu0 %v282_v54  ;;  %v730_v27 = vld [vmem:[#allocation3 + $0xf50] sm:$0xff]  ;;  %v467_v28 = vld [vmem:[#allocation3 + $0x718] sm:$0xff] }
  0x98   : > { %1049 = vmatpush1.msra.mxu1 %v538_v55  ;;  %973 = vmatprep.subr.mxu0 %v275_v56  ;;  %v723_v29 = vld [vmem:[#allocation3 + $0xf18] sm:$0xff]  ;;  %v466_v30 = vld [vmem:[#allocation3 + $0x710] sm:$0xff] }
  0x99   : > { %1050 = vmatprep.subr.mxu1 %v531_v57  ;;  %974 = vmatpush1.msra.mxu0 %v274_v58  ;;  %v722_v31 = vld [vmem:[#allocation3 + $0xf10] sm:$0xff]  ;;  %v459_v32 = vld [vmem:[#allocation3 + $0x6d8] sm:$0xff] }
  0x9a   : > { %1051 = vmatpush1.msra.mxu1 %v530_v59  ;;  %975 = vmatprep.subr.mxu0 %v267_v60  ;;  %v715_v33 = vld [vmem:[#allocation3 + $0xed8] sm:$0xff]  ;;  %v458_v34 = vld [vmem:[#allocation3 + $0x6d0] sm:$0xff] }
  0x9b   : > { %1052 = vmatprep.subr.mxu1 %v523_v61  ;;  %976 = vmatpush1.msra.mxu0 %v266_v62  ;;  %v714_v35 = vld [vmem:[#allocation3 + $0xed0] sm:$0xff]  ;;  %v451_v36 = vld [vmem:[#allocation3 + $0x698] sm:$0xff]  ;;  %v4314_v62 = vld [vmem:[%s4287_s25 + $0x28] sm:$0xff] }
  0x9c   : > { %1053 = vmatpush1.msra.mxu1 %v522_v63  ;;  %977 = vmatprep.subr.mxu0 %v259_v0  ;;  %v707_v37 = vld [vmem:[#allocation3 + $0xe98] sm:$0xff]  ;;  %v450_v38 = vld [vmem:[#allocation3 + $0x690] sm:$0xff] }
  0x9d   : > { %1054 = vmatprep.subr.mxu1 %v515_v1  ;;  %978 = vmatpush1.msra.mxu0 %v258_v2  ;;  %v706_v39 = vld [vmem:[#allocation3 + $0xe90] sm:$0xff]  ;;  %v443_v40 = vld [vmem:[#allocation3 + $0x658] sm:$0xff]  ;;  %v4317_v1 = vld [vmem:[%s4287_s25 + $0x20] sm:$0xff] }
  0x9e   : > { %1055 = vmatpush1.msra.mxu1 %v514_v3  ;;  %979 = vmatprep.subr.mxu0 %v251_v4  ;;  %v699_v41 = vld [vmem:[#allocation3 + $0xe58] sm:$0xff]  ;;  %v442_v42 = vld [vmem:[#allocation3 + $0x650] sm:$0xff] }
  0x9f   : > { %1056 = vmatprep.subr.mxu1 %v507_v5  ;;  %980 = vmatpush1.msra.mxu0 %v250_v6  ;;  %v698_v43 = vld [vmem:[#allocation3 + $0xe50] sm:$0xff]  ;;  %v435_v44 = vld [vmem:[#allocation3 + $0x618] sm:$0xff] }
  0xa0   : > { %1057 = vmatpush1.msra.mxu1 %v506_v8  ;;  %981 = vmatprep.subr.mxu0 %v243_v11  ;;  %v691_v45 = vld [vmem:[#allocation3 + $0xe18] sm:$0xff]  ;;  %v434_v46 = vld [vmem:[#allocation3 + $0x610] sm:$0xff] }
  0xa1   : > { %1058 = vmatprep.subr.mxu1 %v499_v12  ;;  %982 = vmatpush1.msra.mxu0 %v242_v14  ;;  %v690_v47 = vld [vmem:[#allocation3 + $0xe10] sm:$0xff]  ;;  %v427_v48 = vld [vmem:[#allocation3 + $0x5d8] sm:$0xff] }
  0xa2   : > { %1059 = vmatpush1.msra.mxu1 %v498_v15  ;;  %983 = vmatprep.subr.mxu0 %v491_v16  ;;  %v683_v49 = vld [vmem:[#allocation3 + $0xdd8] sm:$0xff]  ;;  %v426_v50 = vld [vmem:[#allocation3 + $0x5d0] sm:$0xff] }
  0xa3   : > { %1060 = vmatprep.subr.mxu1 %v747_v17  ;;  %984 = vmatpush2.msra.mxu0 %v490_v18  ;;  %v682_v51 = vld [vmem:[#allocation3 + $0xdd0] sm:$0xff]  ;;  %v419_v52 = vld [vmem:[#allocation3 + $0x598] sm:$0xff] }
  0xa4   : > { %1061 = vmatpush2.msra.mxu1 %v746_v19  ;;  %985 = vmatprep.subr.mxu0 %v483_v20  ;;  %v675_v53 = vld [vmem:[#allocation3 + $0xd98] sm:$0xff]  ;;  %v418_v54 = vld [vmem:[#allocation3 + $0x590] sm:$0xff] }
  0xa5   : > { %1062 = vmatprep.subr.mxu1 %v739_v21  ;;  %986 = vmatpush2.msra.mxu0 %v482_v22  ;;  %v674_v55 = vld [vmem:[#allocation3 + $0xd90] sm:$0xff]  ;;  %v411_v56 = vld [vmem:[#allocation3 + $0x558] sm:$0xff] }
  0xa6   : > { %1063 = vmatpush2.msra.mxu1 %v738_v23  ;;  %987 = vmatprep.subr.mxu0 %v475_v24  ;;  %v667_v57 = vld [vmem:[#allocation3 + $0xd58] sm:$0xff]  ;;  %v410_v58 = vld [vmem:[#allocation3 + $0x550] sm:$0xff]  ;;  %v365_v24 = vld [vmem:[#allocation3 + $0x3e8] sm:$0xff] }
  0xa7   : > { %1064 = vmatprep.subr.mxu1 %v731_v25  ;;  %988 = vmatpush2.msra.mxu0 %v474_v26  ;;  %v666_v59 = vld [vmem:[#allocation3 + $0xd50] sm:$0xff]  ;;  %v403_v60 = vld [vmem:[#allocation3 + $0x518] sm:$0xff]  ;;  %v621_v25 = vld [vmem:[#allocation3 + $0xbe8] sm:$0xff] }
  0xa8   : > { %1065 = vmatpush2.msra.mxu1 %v730_v27  ;;  %989 = vmatprep.subr.mxu0 %v467_v28  ;;  %v659_v61 = vld [vmem:[#allocation3 + $0xd18] sm:$0xff]  ;;  %v402_v63 = vld [vmem:[#allocation3 + $0x510] sm:$0xff]  ;;  %v364_v26 = vld [vmem:[#allocation3 + $0x3e0] sm:$0xff] }
  0xa9   : > { %1066 = vmatprep.subr.mxu1 %v723_v29  ;;  %990 = vmatpush2.msra.mxu0 %v466_v30  ;;  %v658_v0 = vld [vmem:[#allocation3 + $0xd10] sm:$0xff]  ;;  %v395_v2 = vld [vmem:[#allocation3 + $0x4d8] sm:$0xff]  ;;  %v620_v27 = vld [vmem:[#allocation3 + $0xbe0] sm:$0xff] }
  0xaa   : > { %1067 = vmatpush2.msra.mxu1 %v722_v31  ;;  %991 = vmatprep.subr.mxu0 %v459_v32  ;;  %v651_v3 = vld [vmem:[#allocation3 + $0xcd8] sm:$0xff]  ;;  %v394_v5 = vld [vmem:[#allocation3 + $0x4d0] sm:$0xff]  ;;  %v357_v28 = vld [vmem:[#allocation3 + $0x3a8] sm:$0xff] }
  0xab   : > { %1068 = vmatprep.subr.mxu1 %v715_v33  ;;  %992 = vmatpush2.msra.mxu0 %v458_v34  ;;  %v4321_v4 = vld [vmem:[%s4287_s25 + $0x38] sm:$0xff]  ;;  %v650_v6 = vld [vmem:[#allocation3 + $0xcd0] sm:$0xff]  ;;  %v613_v29 = vld [vmem:[#allocation3 + $0xba8] sm:$0xff] }
  0xac   : > { %1069 = vmatpush2.msra.mxu1 %v714_v35  ;;  %993 = vmatprep.subr.mxu0 %v451_v36  ;;  %v387_v8 = vld [vmem:[#allocation3 + $0x498] sm:$0xff]  ;;  %v4325_v11 = vld [vmem:[%s4287_s25 + $0x30] sm:$0xff]  ;;  %v356_v30 = vld [vmem:[#allocation3 + $0x3a0] sm:$0xff] }
  0xad   : > { %1070 = vmatprep.subr.mxu1 %v707_v37  ;;  %994 = vmatpush2.msra.mxu0 %v450_v38  ;;  %v643_v12 = vld [vmem:[#allocation3 + $0xc98] sm:$0xff]  ;;  %v386_v14 = vld [vmem:[#allocation3 + $0x490] sm:$0xff]  ;;  %v612_v31 = vld [vmem:[#allocation3 + $0xba0] sm:$0xff] }
  0xae   : > { %1071 = vmatpush2.msra.mxu1 %v706_v39  ;;  %995 = vmatprep.subr.mxu0 %v443_v40  ;;  %v642_v15 = vld [vmem:[#allocation3 + $0xc90] sm:$0xff]  ;;  %v379_v16 = vld [vmem:[#allocation3 + $0x458] sm:$0xff]  ;;  %v605_v32 = vld [vmem:[#allocation3 + $0xb68] sm:$0xff] }
  0xaf   : > { %1072 = vmatprep.subr.mxu1 %v699_v41  ;;  %996 = vmatpush2.msra.mxu0 %v442_v42  ;;  %v635_v17 = vld [vmem:[#allocation3 + $0xc58] sm:$0xff]  ;;  %v378_v18 = vld [vmem:[#allocation3 + $0x450] sm:$0xff]  ;;  %v341_v33 = vld [vmem:[#allocation3 + $0x328] sm:$0xff] }
  0xb0   : > { %1073 = vmatpush2.msra.mxu1 %v698_v43  ;;  %997 = vmatprep.subr.mxu0 %v435_v44  ;;  %v634_v19 = vld [vmem:[#allocation3 + $0xc50] sm:$0xff]  ;;  %v371_v20 = vld [vmem:[#allocation3 + $0x418] sm:$0xff]  ;;  %v340_v34 = vld [vmem:[#allocation3 + $0x320] sm:$0xff] }
  0xb1   : > { %1074 = vmatprep.subr.mxu1 %v691_v45  ;;  %998 = vmatpush2.msra.mxu0 %v434_v46  ;;  %v627_v21 = vld [vmem:[#allocation3 + $0xc18] sm:$0xff]  ;;  %v370_v22 = vld [vmem:[#allocation3 + $0x410] sm:$0xff]  ;;  %v596_v35 = vld [vmem:[#allocation3 + $0xb20] sm:$0xff] }
  0xb2   : > { %1075 = vmatpush2.msra.mxu1 %v690_v47  ;;  %999 = vmatprep.subr.mxu0 %v427_v48  ;;  %v626_v23 = vld [vmem:[#allocation3 + $0xc10] sm:$0xff]  ;;  %v333_v36 = vld [vmem:[#allocation3 + $0x2e8] sm:$0xff]  ;;  %v332_v38 = vld [vmem:[#allocation3 + $0x2e0] sm:$0xff] }
  0xb3   : > { %1076 = vmatprep.subr.mxu1 %v683_v49  ;;  %1000 = vmatpush2.msra.mxu0 %v426_v50  ;;  %v589_v37 = vld [vmem:[#allocation3 + $0xae8] sm:$0xff]  ;;  %v588_v39 = vld [vmem:[#allocation3 + $0xae0] sm:$0xff] }
  0xb4   : > { %1077 = vmatpush2.msra.mxu1 %v682_v51  ;;  %1001 = vmatprep.subr.mxu0 %v419_v52  ;;  %v325_v40 = vld [vmem:[#allocation3 + $0x2a8] sm:$0xff]  ;;  %v324_v42 = vld [vmem:[#allocation3 + $0x2a0] sm:$0xff] }
  0xb5   : > { %1078 = vmatprep.subr.mxu1 %v675_v53  ;;  %1002 = vmatpush2.msra.mxu0 %v418_v54  ;;  %v581_v41 = vld [vmem:[#allocation3 + $0xaa8] sm:$0xff]  ;;  %v580_v43 = vld [vmem:[#allocation3 + $0xaa0] sm:$0xff] }
  0xb6   : > { %1079 = vmatpush2.msra.mxu1 %v674_v55  ;;  %1003 = vmatprep.subr.mxu0 %v411_v56  ;;  %v317_v44 = vld [vmem:[#allocation3 + $0x268] sm:$0xff]  ;;  %v316_v46 = vld [vmem:[#allocation3 + $0x260] sm:$0xff] }
  0xb7   : > { %1080 = vmatprep.subr.mxu1 %v667_v57  ;;  %1004 = vmatpush2.msra.mxu0 %v410_v58  ;;  %v573_v45 = vld [vmem:[#allocation3 + $0xa68] sm:$0xff]  ;;  %v572_v47 = vld [vmem:[#allocation3 + $0xa60] sm:$0xff] }
  0xb8   : > { %1081 = vmatpush2.msra.mxu1 %v666_v59  ;;  %1005 = vmatprep.subr.mxu0 %v403_v60  ;;  %v309_v48 = vld [vmem:[#allocation3 + $0x228] sm:$0xff]  ;;  %v308_v50 = vld [vmem:[#allocation3 + $0x220] sm:$0xff] }
  0xb9   : > { %1082 = vmatprep.subr.mxu1 %v659_v61  ;;  %867 = vmatprep.mubr.f32.mxu0 %v4314_v62  ;;  %v565_v49 = vld [vmem:[#allocation3 + $0xa28] sm:$0xff]  ;;  %v564_v51 = vld [vmem:[#allocation3 + $0xa20] sm:$0xff] }
  0xba   : > { %1006 = vmatpush2.msra.mxu0 %v402_v63  ;;  %1083 = vmatpush2.msra.mxu1 %v658_v0  ;;  %v301_v52 = vld [vmem:[#allocation3 + $0x1e8] sm:$0xff]  ;;  %v300_v54 = vld [vmem:[#allocation3 + $0x1e0] sm:$0xff] }
  0xbb   : > { %868 = vmatmul.mubr.f32.gmra.mxu0 %v4317_v1  ;;  %1007 = vmatprep.subr.mxu0 %v395_v2  ;;  %v557_v53 = vld [vmem:[#allocation3 + $0x9e8] sm:$0xff]  ;;  %v556_v55 = vld [vmem:[#allocation3 + $0x9e0] sm:$0xff] }
  0xbc   : > { %1084 = vmatprep.subr.mxu1 %v651_v3  ;;  %944 = vmatprep.mubr.f32.mxu1 %v4321_v4  ;;  %v293_v56 = vld [vmem:[#allocation3 + $0x1a8] sm:$0xff]  ;;  %v292_v58 = vld [vmem:[#allocation3 + $0x1a0] sm:$0xff] }
  0xbd   : > { %1008 = vmatpush2.msra.mxu0 %v394_v5  ;;  %1085 = vmatpush2.msra.mxu1 %v650_v6  ;;  %v549_v57 = vld [vmem:[#allocation3 + $0x9a8] sm:$0xff]  ;;  %v548_v59 = vld [vmem:[#allocation3 + $0x9a0] sm:$0xff] }
  0xbe   : > { %1009 = vmatprep.subr.mxu0 %v387_v8  ;;  %945 = vmatmul.mubr.f32.gmra.mxu1 %v4325_v11  ;;  %v285_v60 = vld [vmem:[#allocation3 + $0x168] sm:$0xff]  ;;  %v284_v63 = vld [vmem:[#allocation3 + $0x160] sm:$0xff] }
  0xbf   : > { %1086 = vmatprep.subr.mxu1 %v643_v12  ;;  %1010 = vmatpush2.msra.mxu0 %v386_v14  ;;  %v541_v61 = vld [vmem:[#allocation3 + $0x968] sm:$0xff]  ;;  %v540_v0 = vld [vmem:[#allocation3 + $0x960] sm:$0xff] }
  0xc0   : > { %1087 = vmatpush2.msra.mxu1 %v642_v15  ;;  %1011 = vmatprep.subr.mxu0 %v379_v16  ;;  %v277_v2 = vld [vmem:[#allocation3 + $0x128] sm:$0xff]  ;;  %v276_v5 = vld [vmem:[#allocation3 + $0x120] sm:$0xff] }
  0xc1   : > { %1088 = vmatprep.subr.mxu1 %v635_v17  ;;  %1012 = vmatpush2.msra.mxu0 %v378_v18  ;;  %v533_v3 = vld [vmem:[#allocation3 + $0x928] sm:$0xff]  ;;  %v532_v6 = vld [vmem:[#allocation3 + $0x920] sm:$0xff] }
  0xc2   : > { %1089 = vmatpush2.msra.mxu1 %v634_v19  ;;  %1013 = vmatprep.subr.mxu0 %v371_v20  ;;  %v269_v8 = vld [vmem:[#allocation3 + $0xe8] sm:$0xff]  ;;  %v268_v14 = vld [vmem:[#allocation3 + $0xe0] sm:$0xff] }
  0xc3   : > { %1090 = vmatprep.subr.mxu1 %v627_v21  ;;  %1014 = vmatpush2.msra.mxu0 %v370_v22  ;;  %v525_v12 = vld [vmem:[#allocation3 + $0x8e8] sm:$0xff]  ;;  %v524_v15 = vld [vmem:[#allocation3 + $0x8e0] sm:$0xff] }
  0xc4   : > { %1015 = vmatprep.mubr.f32.mxu0 %v4298_v7  ;;  %1091 = vmatpush2.msra.mxu1 %v626_v23  ;;  %v349_v7 = vld [vmem:[#allocation3 + $0x368] sm:$0xff]  ;;  %v260_v18 = vld [vmem:[#allocation3 + $0xa0] sm:$0xff] }
  0xc5   : > { %1016 = vmatmul.mubr.f32.vlgmr.msra.gmra.mxu0 %v4301_v9  ;;  %1092 = vmatprep.mubr.f32.mxu1 %v4304_v10  ;;  %v348_v9 = vld [vmem:[#allocation3 + $0x360] sm:$0xff]  ;;  %v261_v16 = vld [vmem:[#allocation3 + $0xa8] sm:$0xff] }
  0xc6   : > { %1105 = vmatprep.subr.mxu0 %v365_v24  ;;  %1182 = vmatprep.subr.mxu1 %v621_v25  ;;  %v604_v10 = vld [vmem:[#allocation3 + $0xb60] sm:$0xff]  ;;  %v517_v17 = vld [vmem:[#allocation3 + $0x8a8] sm:$0xff] }
  0xc7   : > { %1093 = vmatmul.mubr.f32.vlgmr.msra.gmra.mxu1 %v4308_v13  ;;  %1106 = vmatpush1.msra.mxu0 %v364_v26  ;;  %v597_v13 = vld [vmem:[#allocation3 + $0xb28] sm:$0xff]  ;;  %v516_v19 = vld [vmem:[#allocation3 + $0x8a0] sm:$0xff] }
  0xc8   : > { %1183 = vmatpush1.msra.mxu1 %v620_v27  ;;  %1107 = vmatprep.subr.mxu0 %v357_v28  ;;  %v253_v20 = vld [vmem:[#allocation3 + $0x68] sm:$0xff]  ;;  %v252_v22 = vld [vmem:[#allocation3 + $0x60] sm:$0xff] }
  0xc9   : > { %1184 = vmatprep.subr.mxu1 %v613_v29  ;;  %1021 = vmatprep.mubr.f32.mxu0 %v4314_v62  ;;  %v509_v21 = vld [vmem:[#allocation3 + $0x868] sm:$0xff]  ;;  %v508_v23 = vld [vmem:[#allocation3 + $0x860] sm:$0xff] }
  0xca   : > { %1108 = vmatpush1.msra.mxu0 %v356_v30  ;;  %1185 = vmatpush1.msra.mxu1 %v612_v31  ;;  %v245_v24 = vld [vmem:[#allocation3 + $0x28] sm:$0xff]  ;;  %v244_v26 = vld [vmem:[#allocation3 + $0x20] sm:$0xff] }
  0xcb   : > { %1022 = vmatmul.mubr.f32.gmra.mxu0 %v4317_v1  ;;  %1109 = vmatprep.subr.mxu0 %v349_v7  ;;  %v501_v25 = vld [vmem:[#allocation3 + $0x828] sm:$0xff]  ;;  %v500_v27 = vld [vmem:[#allocation3 + $0x820] sm:$0xff] }
  0xcc   : > { %1186 = vmatprep.subr.mxu1 %v605_v32  ;;  %1098 = vmatprep.mubr.f32.mxu1 %v4321_v4  ;;  %v493_v28 = vld [vmem:[#allocation3 + $0x7e8] sm:$0xff]  ;;  %v492_v30 = vld [vmem:[#allocation3 + $0x7e0] sm:$0xff] }
  0xcd   : > { %1110 = vmatpush1.msra.mxu0 %v348_v9  ;;  %1187 = vmatpush1.msra.mxu1 %v604_v10  ;;  %v749_v29 = vld [vmem:[#allocation3 + $0xfe8] sm:$0xff]  ;;  %v748_v31 = vld [vmem:[#allocation3 + $0xfe0] sm:$0xff] }
  0xce   : > { %1111 = vmatprep.subr.mxu0 %v341_v33  ;;  %1099 = vmatmul.mubr.f32.gmra.mxu1 %v4325_v11  ;;  %v485_v7 = vld [vmem:[#allocation3 + $0x7a8] sm:$0xff]  ;;  %v484_v9 = vld [vmem:[#allocation3 + $0x7a0] sm:$0xff] }
  0xcf   : > { %1188 = vmatprep.subr.mxu1 %v597_v13  ;;  %1112 = vmatpush1.msra.mxu0 %v340_v34  ;;  %v741_v32 = vld [vmem:[#allocation3 + $0xfa8] sm:$0xff]  ;;  %v740_v10 = vld [vmem:[#allocation3 + $0xfa0] sm:$0xff] }
  0xd0   : > { %1189 = vmatpush1.msra.mxu1 %v596_v35  ;;  %1113 = vmatprep.subr.mxu0 %v333_v36  ;;  %v477_v33 = vld [vmem:[#allocation3 + $0x768] sm:$0xff]  ;;  %v476_v34 = vld [vmem:[#allocation3 + $0x760] sm:$0xff] }
  0xd1   : > { %1190 = vmatprep.subr.mxu1 %v589_v37  ;;  %1114 = vmatpush1.msra.mxu0 %v332_v38  ;;  %v733_v13 = vld [vmem:[#allocation3 + $0xf68] sm:$0xff]  ;;  %v732_v35 = vld [vmem:[#allocation3 + $0xf60] sm:$0xff] }
  0xd2   : > { %1191 = vmatpush1.msra.mxu1 %v588_v39  ;;  %1115 = vmatprep.subr.mxu0 %v325_v40  ;;  %v469_v36 = vld [vmem:[#allocation3 + $0x728] sm:$0xff]  ;;  %v468_v38 = vld [vmem:[#allocation3 + $0x720] sm:$0xff] }
  0xd3   : > { %1192 = vmatprep.subr.mxu1 %v581_v41  ;;  %1116 = vmatpush1.msra.mxu0 %v324_v42  ;;  %v725_v37 = vld [vmem:[#allocation3 + $0xf28] sm:$0xff]  ;;  %v724_v39 = vld [vmem:[#allocation3 + $0xf20] sm:$0xff] }
  0xd4   : > { %1193 = vmatpush1.msra.mxu1 %v580_v43  ;;  %1117 = vmatprep.subr.mxu0 %v317_v44  ;;  %v461_v40 = vld [vmem:[#allocation3 + $0x6e8] sm:$0xff]  ;;  %v460_v42 = vld [vmem:[#allocation3 + $0x6e0] sm:$0xff] }
  0xd5   : > { %1194 = vmatprep.subr.mxu1 %v573_v45  ;;  %1118 = vmatpush1.msra.mxu0 %v316_v46  ;;  %v717_v41 = vld [vmem:[#allocation3 + $0xee8] sm:$0xff]  ;;  %v716_v43 = vld [vmem:[#allocation3 + $0xee0] sm:$0xff] }
  0xd6   : > { %1195 = vmatpush1.msra.mxu1 %v572_v47  ;;  %1119 = vmatprep.subr.mxu0 %v309_v48  ;;  %v453_v44 = vld [vmem:[#allocation3 + $0x6a8] sm:$0xff]  ;;  %v452_v46 = vld [vmem:[#allocation3 + $0x6a0] sm:$0xff] }
  0xd7   : > { %1196 = vmatprep.subr.mxu1 %v565_v49  ;;  %1120 = vmatpush1.msra.mxu0 %v308_v50  ;;  %v709_v45 = vld [vmem:[#allocation3 + $0xea8] sm:$0xff]  ;;  %v708_v47 = vld [vmem:[#allocation3 + $0xea0] sm:$0xff] }
  0xd8   : > { %1197 = vmatpush1.msra.mxu1 %v564_v51  ;;  %1121 = vmatprep.subr.mxu0 %v301_v52  ;;  %v445_v48 = vld [vmem:[#allocation3 + $0x668] sm:$0xff]  ;;  %v444_v50 = vld [vmem:[#allocation3 + $0x660] sm:$0xff] }
  0xd9   : > { %1198 = vmatprep.subr.mxu1 %v557_v53  ;;  %1122 = vmatpush1.msra.mxu0 %v300_v54  ;;  %v701_v49 = vld [vmem:[#allocation3 + $0xe68] sm:$0xff]  ;;  %v700_v51 = vld [vmem:[#allocation3 + $0xe60] sm:$0xff] }
  0xda   : > { %1199 = vmatpush1.msra.mxu1 %v556_v55  ;;  %1123 = vmatprep.subr.mxu0 %v293_v56  ;;  %v437_v52 = vld [vmem:[#allocation3 + $0x628] sm:$0xff]  ;;  %v436_v54 = vld [vmem:[#allocation3 + $0x620] sm:$0xff] }
  0xdb   : > { %1200 = vmatprep.subr.mxu1 %v549_v57  ;;  %1124 = vmatpush1.msra.mxu0 %v292_v58  ;;  %v693_v53 = vld [vmem:[#allocation3 + $0xe28] sm:$0xff]  ;;  %v692_v55 = vld [vmem:[#allocation3 + $0xe20] sm:$0xff] }
  0xdc   : > { %1201 = vmatpush1.msra.mxu1 %v548_v59  ;;  %1125 = vmatprep.subr.mxu0 %v285_v60  ;;  %v429_v56 = vld [vmem:[#allocation3 + $0x5e8] sm:$0xff]  ;;  %v428_v58 = vld [vmem:[#allocation3 + $0x5e0] sm:$0xff] }
  0xdd   : > { %1202 = vmatprep.subr.mxu1 %v541_v61  ;;  %1126 = vmatpush1.msra.mxu0 %v284_v63  ;;  %v685_v57 = vld [vmem:[#allocation3 + $0xde8] sm:$0xff]  ;;  %v684_v59 = vld [vmem:[#allocation3 + $0xde0] sm:$0xff] }
  0xde   : > { %1203 = vmatpush1.msra.mxu1 %v540_v0  ;;  %1127 = vmatprep.subr.mxu0 %v277_v2  ;;  %v421_v60 = vld [vmem:[#allocation3 + $0x5a8] sm:$0xff]  ;;  %v420_v63 = vld [vmem:[#allocation3 + $0x5a0] sm:$0xff] }
  0xdf   : > { %1204 = vmatprep.subr.mxu1 %v533_v3  ;;  %1128 = vmatpush1.msra.mxu0 %v276_v5  ;;  %v677_v61 = vld [vmem:[#allocation3 + $0xda8] sm:$0xff]  ;;  %v676_v0 = vld [vmem:[#allocation3 + $0xda0] sm:$0xff] }
  0xe0   : > { %1205 = vmatpush1.msra.mxu1 %v532_v6  ;;  %1129 = vmatprep.subr.mxu0 %v269_v8  ;;  %v413_v2 = vld [vmem:[#allocation3 + $0x568] sm:$0xff]  ;;  %v412_v5 = vld [vmem:[#allocation3 + $0x560] sm:$0xff] }
  0xe1   : > { %1206 = vmatprep.subr.mxu1 %v525_v12  ;;  %1130 = vmatpush1.msra.mxu0 %v268_v14  ;;  %v669_v3 = vld [vmem:[#allocation3 + $0xd68] sm:$0xff]  ;;  %v668_v6 = vld [vmem:[#allocation3 + $0xd60] sm:$0xff] }
  0xe2   : > { %1207 = vmatpush1.msra.mxu1 %v524_v15  ;;  %1131 = vmatprep.subr.mxu0 %v261_v16  ;;  %v405_v8 = vld [vmem:[#allocation3 + $0x528] sm:$0xff]  ;;  %v404_v14 = vld [vmem:[#allocation3 + $0x520] sm:$0xff] }
  0xe3   : > { %1208 = vmatprep.subr.mxu1 %v517_v17  ;;  %1132 = vmatpush1.msra.mxu0 %v260_v18  ;;  %v661_v12 = vld [vmem:[#allocation3 + $0xd28] sm:$0xff]  ;;  %v660_v15 = vld [vmem:[#allocation3 + $0xd20] sm:$0xff] }
  0xe4   : > { %1209 = vmatpush1.msra.mxu1 %v516_v19  ;;  %1133 = vmatprep.subr.mxu0 %v253_v20  ;;  %v397_v16 = vld [vmem:[#allocation3 + $0x4e8] sm:$0xff]  ;;  %v396_v18 = vld [vmem:[#allocation3 + $0x4e0] sm:$0xff] }
  0xe5   : > { %1210 = vmatprep.subr.mxu1 %v509_v21  ;;  %1134 = vmatpush1.msra.mxu0 %v252_v22  ;;  %v653_v17 = vld [vmem:[#allocation3 + $0xce8] sm:$0xff]  ;;  %v652_v19 = vld [vmem:[#allocation3 + $0xce0] sm:$0xff] }
  0xe6   : > { %1211 = vmatpush1.msra.mxu1 %v508_v23  ;;  %1135 = vmatprep.subr.mxu0 %v245_v24  ;;  %v389_v20 = vld [vmem:[#allocation3 + $0x4a8] sm:$0xff]  ;;  %v388_v22 = vld [vmem:[#allocation3 + $0x4a0] sm:$0xff] }
  0xe7   : > { %1212 = vmatprep.subr.mxu1 %v501_v25  ;;  %1136 = vmatpush1.msra.mxu0 %v244_v26  ;;  %v645_v21 = vld [vmem:[#allocation3 + $0xca8] sm:$0xff]  ;;  %v644_v23 = vld [vmem:[#allocation3 + $0xca0] sm:$0xff] }
  0xe8   : > { %1213 = vmatpush1.msra.mxu1 %v500_v27  ;;  %1137 = vmatprep.subr.mxu0 %v493_v28  ;;  %v381_v24 = vld [vmem:[#allocation3 + $0x468] sm:$0xff]  ;;  %v380_v26 = vld [vmem:[#allocation3 + $0x460] sm:$0xff] }
  0xe9   : > { %1214 = vmatprep.subr.mxu1 %v749_v29  ;;  %1138 = vmatpush2.msra.mxu0 %v492_v30  ;;  %v637_v25 = vld [vmem:[#allocation3 + $0xc68] sm:$0xff]  ;;  %v636_v27 = vld [vmem:[#allocation3 + $0xc60] sm:$0xff] }
  0xea   : > { %1215 = vmatpush2.msra.mxu1 %v748_v31  ;;  %1139 = vmatprep.subr.mxu0 %v485_v7  ;;  %v373_v28 = vld [vmem:[#allocation3 + $0x428] sm:$0xff]  ;;  %v372_v30 = vld [vmem:[#allocation3 + $0x420] sm:$0xff]  ;;  %v367_v7 = vld [vmem:[#allocation3 + $0x3f8] sm:$0xff] }
  0xeb   : > { %1216 = vmatprep.subr.mxu1 %v741_v32  ;;  %1140 = vmatpush2.msra.mxu0 %v484_v9  ;;  %v629_v29 = vld [vmem:[#allocation3 + $0xc28] sm:$0xff]  ;;  %v628_v31 = vld [vmem:[#allocation3 + $0xc20] sm:$0xff]  ;;  %v623_v9 = vld [vmem:[#allocation3 + $0xbf8] sm:$0xff] }
  0xec   : > { %1217 = vmatpush2.msra.mxu1 %v740_v10  ;;  %1141 = vmatprep.subr.mxu0 %v477_v33  ;;  %v4338_v32 = vld [vmem:[%s4287_s25 + $0x8] sm:$0xff]  ;;  %v4342_v10 = vld [vmem:[%s4287_s25] sm:$0xff]  ;;  %v366_v33 = vld [vmem:[#allocation3 + $0x3f0] sm:$0xff] }
  0xed   : > { %1218 = vmatprep.subr.mxu1 %v733_v13  ;;  %1142 = vmatpush2.msra.mxu0 %v476_v34  ;;  %v622_v13 = vld [vmem:[#allocation3 + $0xbf0] sm:$0xff]  ;;  %v4346_v34 = vld [vmem:[%s4287_s25 + $0x18] sm:$0xff] }
  0xee   : > { %1219 = vmatpush2.msra.mxu1 %v732_v35  ;;  %1143 = vmatprep.subr.mxu0 %v469_v36  ;;  %v359_v35 = vld [vmem:[#allocation3 + $0x3b8] sm:$0xff] }
  0xef   : > { %1220 = vmatprep.subr.mxu1 %v725_v37  ;;  %1144 = vmatpush2.msra.mxu0 %v468_v38  ;;  %v615_v36 = vld [vmem:[#allocation3 + $0xbb8] sm:$0xff]  ;;  %v4350_v37 = vld [vmem:[%s4287_s25 + $0x10] sm:$0xff] }
  0xf0   : > { %1221 = vmatpush2.msra.mxu1 %v724_v39  ;;  %1145 = vmatprep.subr.mxu0 %v461_v40  ;;  %v358_v38 = vld [vmem:[#allocation3 + $0x3b0] sm:$0xff]  ;;  %v351_v40 = vld [vmem:[#allocation3 + $0x378] sm:$0xff] }
  0xf1   : > { %1222 = vmatprep.subr.mxu1 %v717_v41  ;;  %1146 = vmatpush2.msra.mxu0 %v460_v42  ;;  %v614_v39 = vld [vmem:[#allocation3 + $0xbb0] sm:$0xff]  ;;  %v607_v41 = vld [vmem:[#allocation3 + $0xb78] sm:$0xff] }
  0xf2   : > { %1223 = vmatpush2.msra.mxu1 %v716_v43  ;;  %1147 = vmatprep.subr.mxu0 %v453_v44  ;;  %v350_v42 = vld [vmem:[#allocation3 + $0x370] sm:$0xff]  ;;  %v343_v44 = vld [vmem:[#allocation3 + $0x338] sm:$0xff] }
  0xf3   : > { %1224 = vmatprep.subr.mxu1 %v709_v45  ;;  %1148 = vmatpush2.msra.mxu0 %v452_v46  ;;  %v606_v43 = vld [vmem:[#allocation3 + $0xb70] sm:$0xff]  ;;  %v599_v45 = vld [vmem:[#allocation3 + $0xb38] sm:$0xff] }
  0xf4   : > { %1225 = vmatpush2.msra.mxu1 %v708_v47  ;;  %1149 = vmatprep.subr.mxu0 %v445_v48  ;;  %v342_v46 = vld [vmem:[#allocation3 + $0x330] sm:$0xff]  ;;  %v335_v48 = vld [vmem:[#allocation3 + $0x2f8] sm:$0xff] }
  0xf5   : > { %1226 = vmatprep.subr.mxu1 %v701_v49  ;;  %1150 = vmatpush2.msra.mxu0 %v444_v50  ;;  %v598_v47 = vld [vmem:[#allocation3 + $0xb30] sm:$0xff]  ;;  %v591_v49 = vld [vmem:[#allocation3 + $0xaf8] sm:$0xff] }
  0xf6   : > { %1227 = vmatpush2.msra.mxu1 %v700_v51  ;;  %1151 = vmatprep.subr.mxu0 %v437_v52  ;;  %v590_v50 = vld [vmem:[#allocation3 + $0xaf0] sm:$0xff]  ;;  %v583_v51 = vld [vmem:[#allocation3 + $0xab8] sm:$0xff] }
  0xf7   : > { %1228 = vmatprep.subr.mxu1 %v693_v53  ;;  %1152 = vmatpush2.msra.mxu0 %v436_v54  ;;  %v326_v52 = vld [vmem:[#allocation3 + $0x2b0] sm:$0xff]  ;;  %v319_v53 = vld [vmem:[#allocation3 + $0x278] sm:$0xff] }
  0xf8   : > { %1229 = vmatpush2.msra.mxu1 %v692_v55  ;;  %1153 = vmatprep.subr.mxu0 %v429_v56  ;;  %v575_v54 = vld [vmem:[#allocation3 + $0xa78] sm:$0xff]  ;;  %v318_v55 = vld [vmem:[#allocation3 + $0x270] sm:$0xff] }
  0xf9   : > { %1230 = vmatprep.subr.mxu1 %v685_v57  ;;  %1154 = vmatpush2.msra.mxu0 %v428_v58  ;;  %v574_v56 = vld [vmem:[#allocation3 + $0xa70] sm:$0xff]  ;;  %v567_v57 = vld [vmem:[#allocation3 + $0xa38] sm:$0xff] }
  0xfa   : > { %1231 = vmatpush2.msra.mxu1 %v684_v59  ;;  %1155 = vmatprep.subr.mxu0 %v421_v60  ;;  %v310_v58 = vld [vmem:[#allocation3 + $0x230] sm:$0xff]  ;;  %v303_v60 = vld [vmem:[#allocation3 + $0x1f8] sm:$0xff] }
  0xfb   : > { %1232 = vmatprep.subr.mxu1 %v677_v61  ;;  %1156 = vmatpush2.msra.mxu0 %v420_v63  ;;  %v566_v59 = vld [vmem:[#allocation3 + $0xa30] sm:$0xff]  ;;  %v559_v61 = vld [vmem:[#allocation3 + $0x9f8] sm:$0xff] }
  0xfc   : > { %1233 = vmatpush2.msra.mxu1 %v676_v0  ;;  %1157 = vmatprep.subr.mxu0 %v413_v2  ;;  %v302_v63 = vld [vmem:[#allocation3 + $0x1f0] sm:$0xff]  ;;  %v295_v2 = vld [vmem:[#allocation3 + $0x1b8] sm:$0xff] }
  0xfd   : > { %1234 = vmatprep.subr.mxu1 %v669_v3  ;;  %1158 = vmatpush2.msra.mxu0 %v412_v5  ;;  %v558_v0 = vld [vmem:[#allocation3 + $0x9f0] sm:$0xff]  ;;  %v551_v3 = vld [vmem:[#allocation3 + $0x9b8] sm:$0xff] }
  0xfe   : > { %1235 = vmatpush2.msra.mxu1 %v668_v6  ;;  %1159 = vmatprep.subr.mxu0 %v405_v8  ;;  %v294_v5 = vld [vmem:[#allocation3 + $0x1b0] sm:$0xff]  ;;  %v287_v8 = vld [vmem:[#allocation3 + $0x178] sm:$0xff] }
  0xff   : > { %1236 = vmatprep.subr.mxu1 %v661_v12  ;;  %1160 = vmatpush2.msra.mxu0 %v404_v14  ;;  %v550_v6 = vld [vmem:[#allocation3 + $0x9b0] sm:$0xff]  ;;  %v543_v12 = vld [vmem:[#allocation3 + $0x978] sm:$0xff] }
 0x100   : > { %1237 = vmatpush2.msra.mxu1 %v660_v15  ;;  %1161 = vmatprep.subr.mxu0 %v397_v16  ;;  %v286_v14 = vld [vmem:[#allocation3 + $0x170] sm:$0xff]  ;;  %v279_v16 = vld [vmem:[#allocation3 + $0x138] sm:$0xff] }
 0x101   : > { %1238 = vmatprep.subr.mxu1 %v653_v17  ;;  %1162 = vmatpush2.msra.mxu0 %v396_v18  ;;  %v542_v15 = vld [vmem:[#allocation3 + $0x970] sm:$0xff]  ;;  %v535_v17 = vld [vmem:[#allocation3 + $0x938] sm:$0xff] }
 0x102   : > { %1239 = vmatpush2.msra.mxu1 %v652_v19  ;;  %1163 = vmatprep.subr.mxu0 %v389_v20  ;;  %v278_v18 = vld [vmem:[#allocation3 + $0x130] sm:$0xff]  ;;  %v271_v20 = vld [vmem:[#allocation3 + $0xf8] sm:$0xff] }
 0x103   : > { %1240 = vmatprep.subr.mxu1 %v645_v21  ;;  %1164 = vmatpush2.msra.mxu0 %v388_v22  ;;  %v534_v19 = vld [vmem:[#allocation3 + $0x930] sm:$0xff]  ;;  %v527_v21 = vld [vmem:[#allocation3 + $0x8f8] sm:$0xff] }
 0x104   : > { %1241 = vmatpush2.msra.mxu1 %v644_v23  ;;  %1165 = vmatprep.subr.mxu0 %v381_v24  ;;  %v270_v22 = vld [vmem:[#allocation3 + $0xf0] sm:$0xff]  ;;  %v263_v24 = vld [vmem:[#allocation3 + $0xb8] sm:$0xff] }
 0x105   : > { %1242 = vmatprep.subr.mxu1 %v637_v25  ;;  %1166 = vmatpush2.msra.mxu0 %v380_v26  ;;  %v526_v23 = vld [vmem:[#allocation3 + $0x8f0] sm:$0xff]  ;;  %v519_v25 = vld [vmem:[#allocation3 + $0x8b8] sm:$0xff] }
 0x106   : > { %1243 = vmatpush2.msra.mxu1 %v636_v27  ;;  %1167 = vmatprep.subr.mxu0 %v373_v28  ;;  %v262_v26 = vld [vmem:[#allocation3 + $0xb0] sm:$0xff]  ;;  %v255_v28 = vld [vmem:[#allocation3 + $0x78] sm:$0xff] }
 0x107   : > { %1244 = vmatprep.subr.mxu1 %v629_v29  ;;  %1168 = vmatpush2.msra.mxu0 %v372_v30  ;;  %v518_v27 = vld [vmem:[#allocation3 + $0x8b0] sm:$0xff]  ;;  %v511_v29 = vld [vmem:[#allocation3 + $0x878] sm:$0xff] }
 0x108   : > { %1169 = vmatprep.mubr.f32.mxu0 %v4338_v32  ;;  %1245 = vmatpush2.msra.mxu1 %v628_v31  ;;  %v254_v30 = vld [vmem:[#allocation3 + $0x70] sm:$0xff] }
 0x109   : > { %1170 = vmatmul.mubr.f32.vlgmr.msra.gmra.mxu0 %v4342_v10  ;;  %1246 = vmatprep.mubr.f32.mxu1 %v4346_v34  ;;  %v510_v31 = vld [vmem:[#allocation3 + $0x870] sm:$0xff] }
 0x10a   : > { %1259 = vmatprep.subr.mxu0 %v367_v7  ;;  %1336 = vmatprep.subr.mxu1 %v623_v9  ;;  %v247_v7 = vld [vmem:[#allocation3 + $0x38] sm:$0xff] }
 0x10b   : > { %1247 = vmatmul.mubr.f32.vlgmr.msra.gmra.mxu1 %v4350_v37  ;;  %1260 = vmatpush1.msra.mxu0 %v366_v33  ;;  %v503_v9 = vld [vmem:[#allocation3 + $0x838] sm:$0xff]  ;;  %v246_v33 = vld [vmem:[#allocation3 + $0x30] sm:$0xff] }
 0x10c   : > { %1337 = vmatpush1.msra.mxu1 %v622_v13  ;;  %1261 = vmatprep.subr.mxu0 %v359_v35  ;;  %v502_v13 = vld [vmem:[#allocation3 + $0x830] sm:$0xff]  ;;  %v495_v35 = vld [vmem:[#allocation3 + $0x7f8] sm:$0xff] }
 0x10d   : > { %1338 = vmatprep.subr.mxu1 %v615_v36  ;;  %1175 = vmatprep.mubr.f32.mxu0 %v4314_v62  ;;  %v334_v62 = vld [vmem:[#allocation3 + $0x2f0] sm:$0xff]  ;;  %v751_v36 = vld [vmem:[#allocation3 + $0xff8] sm:$0xff] }
 0x10e   : > { %1262 = vmatpush1.msra.mxu0 %v358_v38  ;;  %1339 = vmatpush1.msra.mxu1 %v614_v39  ;;  %v494_v38 = vld [vmem:[#allocation3 + $0x7f0] sm:$0xff] }
 0x10f   : > { %1176 = vmatmul.mubr.f32.gmra.mxu0 %v4317_v1  ;;  %1263 = vmatprep.subr.mxu0 %v351_v40  ;;  %v327_v1 = vld [vmem:[#allocation3 + $0x2b8] sm:$0xff]  ;;  %v750_v39 = vld [vmem:[#allocation3 + $0xff0] sm:$0xff] }
 0x110   : > { %1340 = vmatprep.subr.mxu1 %v607_v41  ;;  %1252 = vmatprep.mubr.f32.mxu1 %v4321_v4  ;;  %v582_v4 = vld [vmem:[#allocation3 + $0xab0] sm:$0xff]  ;;  %v487_v40 = vld [vmem:[#allocation3 + $0x7b8] sm:$0xff] }
 0x111   : > { %1264 = vmatpush1.msra.mxu0 %v350_v42  ;;  %1341 = vmatpush1.msra.mxu1 %v606_v43  ;;  %v743_v41 = vld [vmem:[#allocation3 + $0xfb8] sm:$0xff]  ;;  %v486_v42 = vld [vmem:[#allocation3 + $0x7b0] sm:$0xff] }
 0x112   : > { %1265 = vmatprep.subr.mxu0 %v343_v44  ;;  %1253 = vmatmul.mubr.f32.gmra.mxu1 %v4325_v11  ;;  %v311_v11 = vld [vmem:[#allocation3 + $0x238] sm:$0xff]  ;;  %v742_v43 = vld [vmem:[#allocation3 + $0xfb0] sm:$0xff] }
 0x113   : > { %1342 = vmatprep.subr.mxu1 %v599_v45  ;;  %1266 = vmatpush1.msra.mxu0 %v342_v46  ;;  %v479_v44 = vld [vmem:[#allocation3 + $0x778] sm:$0xff]  ;;  %v478_v46 = vld [vmem:[#allocation3 + $0x770] sm:$0xff] }
 0x114   : > { %1343 = vmatpush1.msra.mxu1 %v598_v47  ;;  %1267 = vmatprep.subr.mxu0 %v335_v48  ;;  %v735_v45 = vld [vmem:[#allocation3 + $0xf78] sm:$0xff]  ;;  %v734_v47 = vld [vmem:[#allocation3 + $0xf70] sm:$0xff] }
 0x115   : > { %1344 = vmatprep.subr.mxu1 %v591_v49  ;;  %1268 = vmatpush1.msra.mxu0 %v334_v62  ;;  %v471_v48 = vld [vmem:[#allocation3 + $0x738] sm:$0xff]  ;;  %v470_v62 = vld [vmem:[#allocation3 + $0x730] sm:$0xff] }
 0x116   : > { %1345 = vmatpush1.msra.mxu1 %v590_v50  ;;  %1269 = vmatprep.subr.mxu0 %v327_v1  ;;  %v727_v49 = vld [vmem:[#allocation3 + $0xf38] sm:$0xff]  ;;  %v726_v50 = vld [vmem:[#allocation3 + $0xf30] sm:$0xff] }
 0x117   : > { %1346 = vmatprep.subr.mxu1 %v583_v51  ;;  %1270 = vmatpush1.msra.mxu0 %v326_v52  ;;  %v463_v1 = vld [vmem:[#allocation3 + $0x6f8] sm:$0xff]  ;;  %v462_v52 = vld [vmem:[#allocation3 + $0x6f0] sm:$0xff] }
 0x118   : > { %1347 = vmatpush1.msra.mxu1 %v582_v4  ;;  %1271 = vmatprep.subr.mxu0 %v319_v53  ;;  %v719_v51 = vld [vmem:[#allocation3 + $0xef8] sm:$0xff]  ;;  %v718_v4 = vld [vmem:[#allocation3 + $0xef0] sm:$0xff] }
 0x119   : > { %1348 = vmatprep.subr.mxu1 %v575_v54  ;;  %1272 = vmatpush1.msra.mxu0 %v318_v55  ;;  %v455_v53 = vld [vmem:[#allocation3 + $0x6b8] sm:$0xff]  ;;  %v454_v55 = vld [vmem:[#allocation3 + $0x6b0] sm:$0xff] }
 0x11a   : > { %1349 = vmatpush1.msra.mxu1 %v574_v56  ;;  %1273 = vmatprep.subr.mxu0 %v311_v11  ;;  %v711_v54 = vld [vmem:[#allocation3 + $0xeb8] sm:$0xff]  ;;  %v710_v56 = vld [vmem:[#allocation3 + $0xeb0] sm:$0xff] }
 0x11b   : > { %1350 = vmatprep.subr.mxu1 %v567_v57  ;;  %1274 = vmatpush1.msra.mxu0 %v310_v58  ;;  %v447_v11 = vld [vmem:[#allocation3 + $0x678] sm:$0xff]  ;;  %v446_v58 = vld [vmem:[#allocation3 + $0x670] sm:$0xff] }
 0x11c   : > { %1351 = vmatpush1.msra.mxu1 %v566_v59  ;;  %1275 = vmatprep.subr.mxu0 %v303_v60  ;;  %v703_v57 = vld [vmem:[#allocation3 + $0xe78] sm:$0xff]  ;;  %v702_v59 = vld [vmem:[#allocation3 + $0xe70] sm:$0xff] }
 0x11d   : > { %1352 = vmatprep.subr.mxu1 %v559_v61  ;;  %1276 = vmatpush1.msra.mxu0 %v302_v63  ;;  %v439_v60 = vld [vmem:[#allocation3 + $0x638] sm:$0xff]  ;;  %v757_v63 = vlaneseq }
 0x11e   : > { %1353 = vmatpush1.msra.mxu1 %v558_v0  ;;  %1277 = vmatprep.subr.mxu0 %v295_v2  ;;  %v695_v61 = vld [vmem:[#allocation3 + $0xe38] sm:$0xff]  ;;  %v438_v0 = vld [vmem:[#allocation3 + $0x630] sm:$0xff] }
 0x11f   : > { %1354 = vmatprep.subr.mxu1 %v551_v3  ;;  %1278 = vmatpush1.msra.mxu0 %v294_v5  ;;  %v694_v2 = vld [vmem:[#allocation3 + $0xe30] sm:$0xff]  ;;  %v431_v3 = vld [vmem:[#allocation3 + $0x5f8] sm:$0xff] }
 0x120   : > { %1355 = vmatpush1.msra.mxu1 %v550_v6  ;;  %1279 = vmatprep.subr.mxu0 %v287_v8  ;;  %v687_v5 = vld [vmem:[#allocation3 + $0xdf8] sm:$0xff]  ;;  %v430_v6 = vld [vmem:[#allocation3 + $0x5f0] sm:$0xff] }
 0x121   : > { %1356 = vmatprep.subr.mxu1 %v543_v12  ;;  %1280 = vmatpush1.msra.mxu0 %v286_v14  ;;  %v686_v8 = vld [vmem:[#allocation3 + $0xdf0] sm:$0xff]  ;;  %v423_v12 = vld [vmem:[#allocation3 + $0x5b8] sm:$0xff] }
 0x122   : > { %1357 = vmatpush1.msra.mxu1 %v542_v15  ;;  %1281 = vmatprep.subr.mxu0 %v279_v16  ;;  %v679_v14 = vld [vmem:[#allocation3 + $0xdb8] sm:$0xff]  ;;  %v422_v15 = vld [vmem:[#allocation3 + $0x5b0] sm:$0xff] }
 0x123   : > { %1358 = vmatprep.subr.mxu1 %v535_v17  ;;  %1282 = vmatpush1.msra.mxu0 %v278_v18  ;;  %v678_v16 = vld [vmem:[#allocation3 + $0xdb0] sm:$0xff]  ;;  %v4357_v17 = vshrl.u32 %v757_v63, 7 }
 0x124   : > { %1359 = vmatpush1.msra.mxu1 %v534_v19  ;;  %1283 = vmatprep.subr.mxu0 %v271_v20  ;;  %v753_v18 = vld [vmem:[#allocation3 + $0x1000] ss:$8 sm:$0xf] }
 0x125   : > { %1360 = vmatprep.subr.mxu1 %v527_v21  ;;  %1284 = vmatpush1.msra.mxu0 %v270_v22  ;;  %v754_v19 = vld [vmem:[#allocation3 + $0x1000] ss:$8 sm:$0xf0]  ;;  %vm2417_vm0 = vcmp.lt.s32.totalorder %v4357_v17, 7  ;;  %vm2722_vm1 = vcmp.lt.s32.totalorder %v4357_v17, 6  ;;  %vm3021_vm3 = vcmp.lt.s32.totalorder %v4357_v17, 4 }
 0x126   : > { %1361 = vmatpush1.msra.mxu1 %v526_v23  ;;  %1285 = vmatprep.subr.mxu0 %v263_v24  ;;  %v415_v20 = vld [vmem:[#allocation3 + $0x578] sm:$0xff]  ;;  %v414_v22 = vld [vmem:[#allocation3 + $0x570] sm:$0xff] }
 0x127   : > { %1362 = vmatprep.subr.mxu1 %v519_v25  ;;  %1286 = vmatpush1.msra.mxu0 %v262_v26  ;;  %v671_v21 = vld [vmem:[#allocation3 + $0xd78] sm:$0xff]  ;;  %v670_v23 = vld [vmem:[#allocation3 + $0xd70] sm:$0xff]  ;;  %v4359_v26 = vor.u32 %v754_v19, %v753_v18  ;;  %v1581_v18 = vld [vmem:[#allocation5 + $0x4c0] sm:$0xff] }
 0x128   : > { %1363 = vmatpush1.msra.mxu1 %v518_v27  ;;  %1287 = vmatprep.subr.mxu0 %v255_v28  ;;  %v407_v24 = vld [vmem:[#allocation3 + $0x538] sm:$0xff]  ;;  %v763_v27 = vsub.s32 1, %v4357_v17  ;;  %v406_v28 = vld [vmem:[#allocation3 + $0x530] sm:$0xff] }
 0x129   : > { %1364 = vmatprep.subr.mxu1 %v511_v29  ;;  %1288 = vmatpush1.msra.mxu0 %v254_v30  ;;  %v663_v25 = vld [vmem:[#allocation3 + $0xd38] sm:$0xff]  ;;  %v662_v29 = vld [vmem:[#allocation3 + $0xd30] sm:$0xff] }
 0x12a   : > { %1365 = vmatpush1.msra.mxu1 %v510_v31  ;;  %1289 = vmatprep.subr.mxu0 %v247_v7  ;;  %v399_v31 = vld [vmem:[#allocation3 + $0x4f8] sm:$0xff]  ;;  %v1603_v63 = vld [vmem:[#allocation5 + $0x570] sm:$0xff] }
 0x12b   : > { %1366 = vmatprep.subr.mxu1 %v503_v9  ;;  %1290 = vmatpush1.msra.mxu0 %v246_v33  ;;  %v655_v7 = vld [vmem:[#allocation3 + $0xcf8] sm:$0xff]  ;;  %v398_v9 = vld [vmem:[#allocation3 + $0x4f0] sm:$0xff] }
 0x12c   : > { %1367 = vmatpush1.msra.mxu1 %v502_v13  ;;  %1291 = vmatprep.subr.mxu0 %v495_v35  ;;  %v654_v33 = vld [vmem:[#allocation3 + $0xcf0] sm:$0xff]  ;;  %v391_v13 = vld [vmem:[#allocation3 + $0x4b8] sm:$0xff] }
 0x12d   : > { %1368 = vmatprep.subr.mxu1 %v751_v36  ;;  %1292 = vmatpush2.msra.mxu0 %v494_v38  ;;  %v647_v35 = vld [vmem:[#allocation3 + $0xcb8] sm:$0xff]  ;;  %v4365_v36 = vrot.slane %v4359_v26, %v763_v27  ;;  %v390_v38 = vld [vmem:[#allocation3 + $0x4b0] sm:$0xff]  ;;  %v1614_v27 = vld [vmem:[#allocation5 + $0x5c8] sm:$0xff] }
 0x12e   : > { %1369 = vmatpush2.msra.mxu1 %v750_v39  ;;  %1293 = vmatprep.subr.mxu0 %v487_v40  ;;  %v646_v39 = vld [vmem:[#allocation3 + $0xcb0] sm:$0xff]  ;;  %v1600_v19 = vld [vmem:[#allocation5 + $0x558] sm:$0xff] }
 0x12f   : > { %1370 = vmatprep.subr.mxu1 %v743_v41  ;;  %1294 = vmatpush2.msra.mxu0 %v486_v42  ;;  %v383_v42 = vld [vmem:[#allocation3 + $0x478] sm:$0xff] }
 0x130   : > { %1371 = vmatpush2.msra.mxu1 %v742_v43  ;;  %1295 = vmatprep.subr.mxu0 %v479_v44  ;;  %v639_v43 = vld [vmem:[#allocation3 + $0xc78] sm:$0xff]  ;;  %v382_v44 = vld [vmem:[#allocation3 + $0x470] sm:$0xff] }
 0x131   : > { %1372 = vmatprep.subr.mxu1 %v735_v45  ;;  %1296 = vmatpush2.msra.mxu0 %v478_v46  ;;  %v638_v45 = vld [vmem:[#allocation3 + $0xc70] sm:$0xff]  ;;  %v375_v46 = vld [vmem:[#allocation3 + $0x438] sm:$0xff] }
 0x132   : > { %1373 = vmatpush2.msra.mxu1 %v734_v47  ;;  %1297 = vmatprep.subr.mxu0 %v471_v48  ;;  %v631_v47 = vld [vmem:[#allocation3 + $0xc38] sm:$0xff] }
 0x133   : > { %1374 = vmatprep.subr.mxu1 %v727_v49  ;;  %1298 = vmatpush2.msra.mxu0 %v470_v62  ;;  %v374_v49 = vld [vmem:[#allocation3 + $0x430] sm:$0xff] }
 0x134   : > { %1375 = vmatpush2.msra.mxu1 %v726_v50  ;;  %1299 = vmatprep.subr.mxu0 %v463_v1  ;;  %v630_v50 = vld [vmem:[#allocation3 + $0xc30] sm:$0xff]  ;;  %v1588_v1 = vld [vmem:[#allocation5 + $0x4f8] sm:$0xff] }
 0x135   : > { %1376 = vmatprep.subr.mxu1 %v719_v51  ;;  %1300 = vmatpush2.msra.mxu0 %v462_v52  ;;  %v1572_v52 = vld [vmem:[#allocation5 + $0x478] sm:$0xff] }
 0x136   : > { %1377 = vmatpush2.msra.mxu1 %v718_v4  ;;  %1301 = vmatprep.subr.mxu0 %v455_v53  ;;  %v1587_v4 = vld [vmem:[#allocation5 + $0x4f0] sm:$0xff]  ;;  %v1620_v53 = vld [vmem:[#allocation5 + $0x5f8] sm:$0xff] }
 0x137   : > { %1378 = vmatprep.subr.mxu1 %v711_v54  ;;  %1302 = vmatpush2.msra.mxu0 %v454_v55  ;;  %v4093_v54 = vld [vmem:[%s4287_s25 + $0x28] sm:$0xff]  ;;  %v1571_v55 = vld [vmem:[#allocation5 + $0x470] sm:$0xff] }
 0x138   : > { %1379 = vmatpush2.msra.mxu1 %v710_v56  ;;  %1303 = vmatprep.subr.mxu0 %v447_v11  ;;  %v1586_v56 = vld [vmem:[#allocation5 + $0x4e8] sm:$0xff]  ;;  %v4094_v11 = vld [vmem:[%s4287_s25 + $0x38] sm:$0xff] }
 0x139   : > { %1380 = vmatprep.subr.mxu1 %v703_v57  ;;  %1304 = vmatpush2.msra.mxu0 %v446_v58  ;;  %v1604_v57 = vld [vmem:[#allocation5 + $0x578] sm:$0xff]  ;;  %v4096_v58 = vld [vmem:[%s4287_s25 + $0x20] sm:$0xff] }
 0x13a   : > { %1381 = vmatpush2.msra.mxu1 %v702_v59  ;;  %1305 = vmatprep.subr.mxu0 %v439_v60  ;;  %v1569_v59 = vld [vmem:[#allocation5 + $0x460] sm:$0xff]  ;;  %v1619_v60 = vld [vmem:[#allocation5 + $0x5f0] sm:$0xff] }
 0x13b   : > { %1382 = vmatprep.subr.mxu1 %v695_v61  ;;  %1306 = vmatpush2.msra.mxu0 %v438_v0  ;;  %v1584_v61 = vld [vmem:[#allocation5 + $0x4d8] sm:$0xff] }
 0x13c   : > { %1383 = vmatpush2.msra.mxu1 %v694_v2  ;;  %1307 = vmatprep.subr.mxu0 %v431_v3  ;;  %v1568_v0 = vld [vmem:[#allocation5 + $0x458] sm:$0xff]  ;;  %v1618_v2 = vld [vmem:[#allocation5 + $0x5e8] sm:$0xff]  ;;  %v1583_v3 = vld [vmem:[#allocation5 + $0x4d0] sm:$0xff] }
 0x13d   : > { %1384 = vmatprep.subr.mxu1 %v687_v5  ;;  %1308 = vmatpush2.msra.mxu0 %v430_v6  ;;  %v1602_v5 = vld [vmem:[#allocation5 + $0x568] sm:$0xff]  ;;  %v1567_v6 = vld [vmem:[#allocation5 + $0x450] sm:$0xff] }
 0x13e   : > { %1385 = vmatpush2.msra.mxu1 %v686_v8  ;;  %1309 = vmatprep.subr.mxu0 %v423_v12  ;;  %v1617_v8 = vld [vmem:[#allocation5 + $0x5e0] sm:$0xff]  ;;  %v1582_v12 = vld [vmem:[#allocation5 + $0x4c8] sm:$0xff] }
 0x13f   : > { %1386 = vmatprep.subr.mxu1 %v679_v14  ;;  %1310 = vmatpush2.msra.mxu0 %v422_v15  ;;  %v1601_v14 = vld [vmem:[#allocation5 + $0x560] sm:$0xff]  ;;  %v1566_v15 = vld [vmem:[#allocation5 + $0x448] sm:$0xff] }
 0x140   : > { %1387 = vmatpush2.msra.mxu1 %v678_v16  ;;  %1311 = vmatprep.subr.mxu0 %v415_v20  ;;  %v1616_v16 = vld [vmem:[#allocation5 + $0x5d8] sm:$0xff]  ;;  %v1565_v20 = vld [vmem:[#allocation5 + $0x440] sm:$0xff] }
 0x141   : > { %1388 = vmatprep.subr.mxu1 %v671_v21  ;;  %v4362_v30 = vpop.f32.mrf.mxu0  ;;  %1312 = vmatpush2.msra.mxu0 %v414_v22  ;;  %v1615_v21 = vld [vmem:[#allocation5 + $0x5d0] sm:$0xff]  ;;  %v1580_v22 = vld [vmem:[#allocation5 + $0x4b8] sm:$0xff] }
 0x142   : > { %1389 = vmatpush2.msra.mxu1 %v670_v23  ;;  %1313 = vmatprep.subr.mxu0 %v407_v24  ;;  %v1599_v23 = vld [vmem:[#allocation5 + $0x550] sm:$0xff]  ;;  %v759_v24 = vsub.s32 0, %v4357_v17 }
 0x143   : > { %1390 = vmatprep.subr.mxu1 %v663_v25  ;;  %1314 = vmatpush2.msra.mxu0 %v406_v28  ;;  %v4367_v40 = vpop.f32.mrf.mxu1  ;;  %v865_v41 = vpop.f32.mrf.mxu0  ;;  %v1564_v25 = vld [vmem:[#allocation5 + $0x438] sm:$0xff]  ;;  %v1579_v28 = vld [vmem:[#allocation5 + $0x4b0] sm:$0xff] }
 0x144   : > { %1391 = vmatpush2.msra.mxu1 %v662_v29  ;;  %1315 = vmatprep.subr.mxu0 %v399_v31  ;;  %v866_v48 = vadd.f32 %v865_v41, %v4365_v36  ;;  %v1598_v29 = vld [vmem:[#allocation5 + $0x548] sm:$0xff]  ;;  %v1563_v31 = vld [vmem:[#allocation5 + $0x430] sm:$0xff]  ;;  %v1596_v41 = vld [vmem:[#allocation5 + $0x538] sm:$0xff] }
 0x145   : > { %1392 = vmatprep.subr.mxu1 %v655_v7  ;;  %1316 = vmatpush2.msra.mxu0 %v398_v9  ;;  %v942_v62 = vpop.f32.mrf.mxu1  ;;  %v1613_v7 = vld [vmem:[#allocation5 + $0x5c0] sm:$0xff]  ;;  %v1578_v9 = vld [vmem:[#allocation5 + $0x4a8] sm:$0xff] }
 0x146   : > { %1393 = vmatpush2.msra.mxu1 %v654_v33  ;;  %1317 = vmatprep.subr.mxu0 %v391_v13  ;;  %v943_v51 = vadd.f32 %v942_v62, %v866_v48  ;;  %v1597_v33 = vld [vmem:[#allocation5 + $0x540] sm:$0xff]  ;;  %v4383_v13 = vrot.slane %v4359_v26, %v759_v24  ;;  %v1610_v48 = vld [vmem:[#allocation5 + $0x5a8] sm:$0xff]  ;;  %v1644_v24 = vld [vmem:[#allocation5 + $0x6b8] sm:$0xff] }
 0x147   : > { %1394 = vmatprep.subr.mxu1 %v647_v35  ;;  %1318 = vmatpush2.msra.mxu0 %v390_v38  ;;  %v1562_v35 = vld [vmem:[#allocation5 + $0x428] sm:$0xff]  ;;  %v1612_v38 = vld [vmem:[#allocation5 + $0x5b8] sm:$0xff] }
 0x148   : > { %1395 = vmatpush2.msra.mxu1 %v646_v39  ;;  %1319 = vmatprep.subr.mxu0 %v383_v42  ;;  %v1577_v39 = vld [vmem:[#allocation5 + $0x4a0] sm:$0xff]  ;;  %v1594_v62 = vld [vmem:[#allocation5 + $0x528] sm:$0xff] }
 0x149   : > { %1396 = vmatprep.subr.mxu1 %v639_v43  ;;  %1320 = vmatpush2.msra.mxu0 %v382_v44  ;;  %v1561_v42 = vld [vmem:[#allocation5 + $0x420] sm:$0xff]  ;;  %v1611_v43 = vld [vmem:[#allocation5 + $0x5b0] sm:$0xff]  ;;  %v1576_v44 = vld [vmem:[#allocation5 + $0x498] sm:$0xff] }
 0x14a   : > { %1397 = vmatpush2.msra.mxu1 %v638_v45  ;;  %1321 = vmatprep.subr.mxu0 %v375_v46  ;;  %v1595_v45 = vld [vmem:[#allocation5 + $0x530] sm:$0xff]  ;;  %v864_v46 = vadd.f32 %v4362_v30, %v4383_v13  ;;  %v1558_v30 = vld [vmem:[#allocation5 + $0x408] sm:$0xff] }
 0x14b   : > { %1398 = vmatprep.subr.mxu1 %v631_v47  ;;  %1322 = vmatpush2.msra.mxu0 %v374_v49  ;;  %v1560_v47 = vld [vmem:[#allocation5 + $0x418] sm:$0xff]  ;;  %v1575_v49 = vld [vmem:[#allocation5 + $0x490] sm:$0xff] }
 0x14c   : > { %1323 = vmatprep.mubr.f32.mxu0 %v4338_v32  ;;  %1399 = vmatpush2.msra.mxu1 %v630_v50  ;;  %v4375_v32 = vmax.f32 %v943_v51, 0.0  ;;  %v1559_v50 = vld [vmem:[#allocation5 + $0x410] sm:$0xff]  ;;  %v1574_v51 = vld [vmem:[#allocation5 + $0x488] sm:$0xff] }
 0x14d   : > { %1400 = vmatprep.mubr.f32.mxu1 %v4346_v34  ;;  %1324 = vmatmul.mubr.f32.vlgmr.msra.gmra.mxu0 %v4342_v10  ;;  %v1570_v34 = vld [vmem:[#allocation5 + $0x468] sm:$0xff]  ;;  %v4095_v10 = vld [vmem:[%s4287_s25 + $0x30] sm:$0xff] }
 0x14e   : > { %1401 = vmatmul.mubr.f32.vlgmr.msra.gmra.mxu1 %v4350_v37  ;;  %3315 = vmatprep.subr.mxu0 %v1588_v1  ;;  %v1585_v37 = vld [vmem:[#allocation5 + $0x4e0] sm:$0xff] }
 0x14f   : > { %1329 = vmatprep.mubr.f32.mxu0 %v4093_v54  ;;  %3316 = vmatpush3.msra.mxu0 %v1572_v52  ;;  %v1609_v1 = vld [vmem:[#allocation5 + $0x5a0] sm:$0xff] }
 0x150   : > { %1406 = vmatprep.mubr.f32.mxu1 %v4094_v11  ;;  %3317 = vmatprep.subr.mxu0 %v1587_v4  ;;  %v1593_v52 = vld [vmem:[#allocation5 + $0x520] sm:$0xff]  ;;  %v941_v4 = vadd.f32 %v4367_v40, %v864_v46  ;;  %v1607_v11 = vld [vmem:[#allocation5 + $0x590] sm:$0xff]  ;;  %v1606_v40 = vld [vmem:[#allocation5 + $0x588] sm:$0xff] }
 0x151   : > { %3353 = vmatprep.subr.mxu1 %v1620_v53  ;;  %3318 = vmatpush3.msra.mxu0 %v1571_v55  ;;  %v1608_v53 = vld [vmem:[#allocation5 + $0x598] sm:$0xff]  ;;  %v1573_v54 = vld [vmem:[#allocation5 + $0x480] sm:$0xff] }
 0x152   : > { %1407 = vmatmul.mubr.f32.gmra.mxu1 %v4095_v10  ;;  %1330 = vmatmul.mubr.f32.gmra.mxu0 %v4096_v58  ;;  %v1592_v55 = vld [vmem:[#allocation5 + $0x518] sm:$0xff]  ;;  %v4388_v10 = vmax.f32 %v941_v4, 0.0  ;;  %v1625_v46 = vld [vmem:[#allocation5 + $0x620] sm:$0xff] }
 0x153   : > { %3319 = vmatprep.subr.mxu0 %v1586_v56  ;;  %1749 = vmatprep.mubr.f32.mxu0 %v4375_v32  ;;  %v1557_v56 = vld [vmem:[#allocation5 + $0x400] sm:$0xff]  ;;  %v1636_v58 = vld [vmem:[#allocation5 + $0x678] sm:$0xff] }
 0x154   : > { %3320 = vmatpush3.msra.mxu0 %v1570_v34  ;;  %3354 = vmatpush3.msra.mxu1 %v1604_v57  ;;  %v1591_v34 = vld [vmem:[#allocation5 + $0x510] sm:$0xff]  ;;  %v1590_v57 = vld [vmem:[#allocation5 + $0x508] sm:$0xff] }
 0x155   : > { %3321 = vmatprep.subr.mxu0 %v1585_v37  ;;  %3355 = vmatprep.subr.mxu1 %v1619_v60  ;;  %v1652_v37 = vld [vmem:[#allocation5 + $0x6f8] sm:$0xff]  ;;  %v1651_v60 = vld [vmem:[#allocation5 + $0x6f0] sm:$0xff] }
 0x156   : > { %3322 = vmatpush3.msra.mxu0 %v1569_v59  ;;  %3356 = vmatpush3.msra.mxu1 %v1603_v63  ;;  %v1605_v59 = vld [vmem:[#allocation5 + $0x580] sm:$0xff]  ;;  %v1635_v63 = vld [vmem:[#allocation5 + $0x670] sm:$0xff] }
 0x157   : > { %3323 = vmatprep.subr.mxu0 %v1584_v61  ;;  %3357 = vmatprep.subr.mxu1 %v1618_v2  ;;  %v1589_v61 = vld [vmem:[#allocation5 + $0x500] sm:$0xff]  ;;  %v1634_v2 = vld [vmem:[#allocation5 + $0x668] sm:$0xff] }
 0x158   : > { %3324 = vmatpush3.msra.mxu0 %v1568_v0  ;;  %3358 = vmatpush3.msra.mxu1 %v1602_v5  ;;  %v1650_v0 = vld [vmem:[#allocation5 + $0x6e8] sm:$0xff]  ;;  %v1649_v5 = vld [vmem:[#allocation5 + $0x6e0] sm:$0xff] }
 0x159   : > { %3325 = vmatprep.subr.mxu0 %v1583_v3  ;;  %3359 = vmatprep.subr.mxu1 %v1617_v8  ;;  %v1684_v3 = vld [vmem:[#allocation5 + $0x7f8] sm:$0xff] }
 0x15a   : > { %3326 = vmatpush3.msra.mxu0 %v1567_v6  ;;  %3360 = vmatpush3.msra.mxu1 %v1601_v14  ;;  %v1633_v6 = vld [vmem:[#allocation5 + $0x660] sm:$0xff]  ;;  %v1648_v8 = vld [vmem:[#allocation5 + $0x6d8] sm:$0xff]  ;;  %v1647_v14 = vld [vmem:[#allocation5 + $0x6d0] sm:$0xff] }
 0x15b   : > { %3327 = vmatprep.subr.mxu0 %v1582_v12  ;;  %3361 = vmatprep.subr.mxu1 %v1616_v16  ;;  %v1632_v12 = vld [vmem:[#allocation5 + $0x658] sm:$0xff]  ;;  %v1646_v16 = vld [vmem:[#allocation5 + $0x6c8] sm:$0xff] }
 0x15c   : > { %3328 = vmatpush3.msra.mxu0 %v1566_v15  ;;  %3362 = vmatpush3.msra.mxu1 %v1600_v19  ;;  %v1631_v15 = vld [vmem:[#allocation5 + $0x650] sm:$0xff] }
 0x15d   : > { %3329 = vmatprep.subr.mxu0 %v1581_v18  ;;  %3363 = vmatprep.subr.mxu1 %v1615_v21  ;;  %v1630_v18 = vld [vmem:[#allocation5 + $0x648] sm:$0xff] }
 0x15e   : > { %3330 = vmatpush3.msra.mxu0 %v1565_v20  ;;  %3364 = vmatpush3.msra.mxu1 %v1599_v23  ;;  %v1645_v20 = vld [vmem:[#allocation5 + $0x6c0] sm:$0xff] }
 0x15f   : > { %3331 = vmatprep.subr.mxu0 %v1580_v22  ;;  %3365 = vmatprep.subr.mxu1 %v1614_v27  ;;  %v1629_v22 = vld [vmem:[#allocation5 + $0x640] sm:$0xff]  ;;  %v767_v27 = vsub.s32 2, %v4357_v17 }
 0x160   : > { %3332 = vmatpush3.msra.mxu0 %v1564_v25  ;;  %3366 = vmatpush3.msra.mxu1 %v1598_v29 }
 0x161   : > { %3333 = vmatprep.subr.mxu0 %v1579_v28  ;;  %3367 = vmatprep.subr.mxu1 %v1613_v7  ;;  %v1628_v28 = vld [vmem:[#allocation5 + $0x638] sm:$0xff] }
 0x162   : > { %3334 = vmatpush3.msra.mxu0 %v1563_v31  ;;  %3368 = vmatpush3.msra.mxu1 %v1597_v33  ;;  %v1643_v31 = vld [vmem:[#allocation5 + $0x6b0] sm:$0xff] }
 0x163   : > { %3335 = vmatprep.subr.mxu0 %v1578_v9  ;;  %3369 = vmatprep.subr.mxu1 %v1612_v38  ;;  %v771_v9 = vsub.s32 3, %v4357_v17  ;;  %v1627_v33 = vld [vmem:[#allocation5 + $0x630] sm:$0xff] }
 0x164   : > { %3336 = vmatpush3.msra.mxu0 %v1562_v35  ;;  %3370 = vmatpush3.msra.mxu1 %v1596_v41  ;;  %v1642_v35 = vld [vmem:[#allocation5 + $0x6a8] sm:$0xff] }
 0x165   : > { %3337 = vmatprep.subr.mxu0 %v1577_v39  ;;  %3371 = vmatprep.subr.mxu1 %v1611_v43  ;;  %v768_v39 = vrot.slane %v4359_v26, %v767_v27  ;;  %v1661_v27 = vld [vmem:[#allocation5 + $0x740] sm:$0xff] }
 0x166   : > { %3338 = vmatpush3.msra.mxu0 %v1561_v42  ;;  %3372 = vmatpush3.msra.mxu1 %v1595_v45  ;;  %v1641_v42 = vld [vmem:[#allocation5 + $0x6a0] sm:$0xff] }
 0x167   : > { %3339 = vmatprep.subr.mxu0 %v1576_v44  ;;  %3373 = vmatprep.subr.mxu1 %v1610_v48  ;;  %v772_v44 = vrot.slane %v4359_v26, %v771_v9  ;;  %v1640_v48 = vld [vmem:[#allocation5 + $0x698] sm:$0xff]  ;;  %v1674_v9 = vld [vmem:[#allocation5 + $0x7a8] sm:$0xff] }
 0x168   : > { %3340 = vmatpush3.msra.mxu0 %v1560_v47  ;;  %3374 = vmatpush3.msra.mxu1 %v1594_v62 }
 0x169   : > { %3341 = vmatprep.subr.mxu0 %v1575_v49  ;;  %3375 = vmatprep.subr.mxu1 %v1609_v1 }
 0x16a   : > { %3342 = vmatpush3.msra.mxu0 %v1559_v50  ;;  %3376 = vmatpush3.msra.mxu1 %v1593_v52  ;;  %v1624_v50 = vld [vmem:[#allocation5 + $0x618] sm:$0xff] }
 0x16b   : > { %3343 = vmatprep.subr.mxu0 %v1574_v51  ;;  %3377 = vmatprep.subr.mxu1 %v1608_v53  ;;  %v1639_v51 = vld [vmem:[#allocation5 + $0x690] sm:$0xff] }
 0x16c   : > { %3344 = vmatpush3.msra.mxu0 %v1558_v30  ;;  %3378 = vmatpush3.msra.mxu1 %v1592_v55  ;;  %v1623_v30 = vld [vmem:[#allocation5 + $0x610] sm:$0xff] }
 0x16d   : > { %3345 = vmatprep.subr.mxu0 %v1573_v54  ;;  %3379 = vmatprep.subr.mxu1 %v1607_v11  ;;  %v1638_v54 = vld [vmem:[#allocation5 + $0x688] sm:$0xff] }
 0x16e   : > { %3346 = vmatpush3.msra.mxu0 %v1557_v56  ;;  %3380 = vmatpush3.msra.mxu1 %v1591_v34  ;;  %v1622_v56 = vld [vmem:[#allocation5 + $0x608] sm:$0xff] }
 0x16f   : > { %1750 = vmatmul.mubr.f32.vlgmr.msra.gmra.mxu0 %v4388_v10  ;;  %3381 = vmatprep.subr.mxu1 %v1606_v40  ;;  %v1637_v40 = vld [vmem:[#allocation5 + $0x680] sm:$0xff] }
 0x170   : > { %3391 = vmatprep.subr.mxu0 %v1652_v37  ;;  %3382 = vmatpush3.msra.mxu1 %v1590_v57 }
 0x171   : > { %3392 = vmatpush3.msra.mxu0 %v1636_v58  ;;  %3383 = vmatprep.subr.mxu1 %v1605_v59  ;;  %v1621_v58 = vld [vmem:[#allocation5 + $0x600] sm:$0xff]  ;;  %v1668_v59 = vld [vmem:[#allocation5 + $0x778] sm:$0xff] }
 0x172   : > { %3393 = vmatprep.subr.mxu0 %v1651_v60  ;;  %3384 = vmatpush3.msra.mxu1 %v1589_v61  ;;  %v2016_v61 = vld [vmem:[#allocation5 + $0x8f8] sm:$0xff] }
 0x173   : > { %3394 = vmatpush3.msra.mxu0 %v1635_v63  ;;  %3429 = vmatprep.subr.mxu1 %v1684_v3  ;;  %v1683_v63 = vld [vmem:[#allocation5 + $0x7f0] sm:$0xff] }
 0x174   : > { %3395 = vmatprep.subr.mxu0 %v1650_v0 }
 0x175   : > { %3396 = vmatpush3.msra.mxu0 %v1634_v2  ;;  %v1667_v2 = vld [vmem:[#allocation5 + $0x770] sm:$0xff] }
 0x176   : > { %3397 = vmatprep.subr.mxu0 %v1649_v5  ;;  %v1682_v5 = vld [vmem:[#allocation5 + $0x7e8] sm:$0xff] }
 0x177   : > { %3398 = vmatpush3.msra.mxu0 %v1633_v6 }
 0x178   : > { %3399 = vmatprep.subr.mxu0 %v1648_v8  ;;  %v1666_v8 = vld [vmem:[#allocation5 + $0x768] sm:$0xff] }
 0x179   : > { %3400 = vmatpush3.msra.mxu0 %v1632_v12 }
 0x17a   : > { %3401 = vmatprep.subr.mxu0 %v1647_v14  ;;  %v1681_v14 = vld [vmem:[#allocation5 + $0x7e0] sm:$0xff] }
 0x17b   : > { %v869_v19 = vpop.f32.mrf.mxu0  ;;  %3402 = vmatpush3.msra.mxu0 %v1631_v15 }
 0x17c   : > { %v870_v21 = vadd.f32 %v869_v19, %v4383_v13  ;;  %3403 = vmatprep.subr.mxu0 %v1646_v16  ;;  %v1665_v16 = vld [vmem:[#allocation5 + $0x760] sm:$0xff]  ;;  %v1680_v19 = vld [vmem:[#allocation5 + $0x7d8] sm:$0xff] }
 0x17d   : > { %v871_v23 = vpop.f32.mrf.mxu0  ;;  %3404 = vmatpush3.msra.mxu0 %v1630_v18 }
 0x17e   : > { %v872_v25 = vadd.f32 %v871_v23, %v4365_v36  ;;  %3405 = vmatprep.subr.mxu0 %v1645_v20  ;;  %v946_v29 = vpop.f32.mrf.mxu1  ;;  %v1626_v36 = vld [vmem:[#allocation5 + $0x628] sm:$0xff]  ;;  %v1664_v20 = vld [vmem:[#allocation5 + $0x758] sm:$0xff] }
 0x17f   : > { %3406 = vmatpush3.msra.mxu0 %v1629_v22  ;;  %v947_v7 = vadd.f32 %v946_v29, %v870_v21  ;;  %v1679_v21 = vld [vmem:[#allocation5 + $0x7d0] sm:$0xff]  ;;  %v1678_v23 = vld [vmem:[#allocation5 + $0x7c8] sm:$0xff]  ;;  %v1660_v29 = vld [vmem:[#allocation5 + $0x738] sm:$0xff] }
 0x180   : > { %3407 = vmatprep.subr.mxu0 %v1644_v24  ;;  %v948_v13 = vpop.f32.mrf.mxu1  ;;  %v1663_v22 = vld [vmem:[#allocation5 + $0x750] sm:$0xff]  ;;  %v1662_v24 = vld [vmem:[#allocation5 + $0x748] sm:$0xff] }
 0x181   : > { %3408 = vmatpush3.msra.mxu0 %v1628_v28  ;;  %v949_v38 = vadd.f32 %v948_v13, %v872_v25  ;;  %v4396_v41 = vmax.f32 %v947_v7, 0.0  ;;  %v1677_v25 = vld [vmem:[#allocation5 + $0x7c0] sm:$0xff]  ;;  %v1676_v28 = vld [vmem:[#allocation5 + $0x7b8] sm:$0xff]  ;;  %v1659_v7 = vld [vmem:[#allocation5 + $0x730] sm:$0xff] }
 0x182   : > { %3409 = vmatprep.subr.mxu0 %v1643_v31  ;;  %v1675_v31 = vld [vmem:[#allocation5 + $0x7b0] sm:$0xff]  ;;  %v1673_v13 = vld [vmem:[#allocation5 + $0x7a0] sm:$0xff] }
 0x183   : > { %3410 = vmatpush3.msra.mxu0 %v1627_v33  ;;  %v4398_v43 = vmax.f32 %v949_v38, 0.0  ;;  %v1658_v33 = vld [vmem:[#allocation5 + $0x728] sm:$0xff]  ;;  %v1672_v38 = vld [vmem:[#allocation5 + $0x798] sm:$0xff] }
 0x184   : > { %3411 = vmatprep.subr.mxu0 %v1642_v35  ;;  %v1657_v35 = vld [vmem:[#allocation5 + $0x720] sm:$0xff] }
 0x185   : > { %v1017_v45 = vpop.f32.mrf.mxu0  ;;  %3412 = vmatpush3.msra.mxu0 %v1626_v36  ;;  %1754 = vmatprep.mubr.f32.mxu0 %v4398_v43  ;;  %v1671_v36 = vld [vmem:[#allocation5 + $0x790] sm:$0xff] }
 0x186   : > { %v1018_v47 = vadd.f32 %v1017_v45, %v768_v39  ;;  %3413 = vmatprep.subr.mxu0 %v1641_v42  ;;  %1755 = vmatmul.mubr.f32.gmra.mxu0 %v4396_v41  ;;  %v1655_v42 = vld [vmem:[#allocation5 + $0x710] sm:$0xff]  ;;  %v1654_v45 = vld [vmem:[#allocation5 + $0x708] sm:$0xff] }
 0x187   : > { %v1094_v49 = vpop.f32.mrf.mxu1  ;;  %v1019_v62 = vpop.f32.mrf.mxu0  ;;  %3414 = vmatpush3.msra.mxu0 %v1625_v46  ;;  %v1669_v46 = vld [vmem:[#allocation5 + $0x780] sm:$0xff] }
 0x188   : > { %v1020_v1 = vadd.f32 %v1019_v62, %v772_v44  ;;  %v1095_v52 = vadd.f32 %v1094_v49, %v1018_v47  ;;  %3415 = vmatprep.subr.mxu0 %v1640_v48  ;;  %v1653_v47 = vld [vmem:[#allocation5 + $0x700] sm:$0xff]  ;;  %v2048_v48 = vld [vmem:[#allocation5 + $0x9f8] sm:$0xff]  ;;  %v775_v49 = vsub.s32 4, %v4357_v17  ;;  %v779_v62 = vsub.s32 5, %v4357_v17 }
 0x189   : > { %v1096_v4 = vpop.f32.mrf.mxu1  ;;  %3416 = vmatpush3.msra.mxu0 %v1624_v50 }
 0x18a   : > { %v1097_v53 = vadd.f32 %v1096_v4, %v1020_v1  ;;  %3417 = vmatprep.subr.mxu0 %v1639_v51  ;;  %v4405_v37 = vmax.f32 %v1095_v52, 0.0  ;;  %v776_v50 = vrot.slane %v4359_v26, %v775_v49  ;;  %v780_v1 = vrot.slane %v4359_v26, %v779_v62  ;;  %v1985_v49 = vld [vmem:[#allocation5 + $0x800] sm:$0xff]  ;;  %v2080_v62 = vld [vmem:[#allocation5 + $0xaf8] sm:$0xff] }
 0x18b   : > { %v1023_v55 = vpop.f32.mrf.mxu0  ;;  %3418 = vmatpush3.msra.mxu0 %v1623_v30 }
 0x18c   : > { %v4403_v11 = vmax.f32 %v1097_v53, 0.0  ;;  %v1024_v34 = vadd.f32 %v1023_v55, %v768_v39  ;;  %3419 = vmatprep.subr.mxu0 %v1638_v54  ;;  %v1656_v39 = vld [vmem:[#allocation5 + $0x718] sm:$0xff] }
 0x18d   : > { %v1025_v57 = vpop.f32.mrf.mxu0  ;;  %3420 = vmatpush3.msra.mxu0 %v1622_v56 }
 0x18e   : > { %v1026_v60 = vadd.f32 %v1025_v57, %v772_v44  ;;  %1824 = vmatprep.mubr.f32.mxu1 %v4403_v11  ;;  %v1100_v0 = vpop.f32.mrf.mxu1  ;;  %3421 = vmatprep.subr.mxu0 %v1637_v40  ;;  %v1670_v44 = vld [vmem:[#allocation5 + $0x788] sm:$0xff] }
 0x18f   : > { %1825 = vmatmul.mubr.f32.vlgmr.msra.gmra.mxu1 %v4405_v37  ;;  %v1101_v3 = vadd.f32 %v1100_v0, %v1024_v34  ;;  %3422 = vmatpush3.msra.mxu0 %v1621_v58 }
 0x190   : > { %3430 = vmatpush3.msra.mxu1 %v1668_v59  ;;  %v1102_v6 = vpop.f32.mrf.mxu1  ;;  %3467 = vmatprep.subr.mxu0 %v2016_v61 }
 0x191   : > { %3431 = vmatprep.subr.mxu1 %v1683_v63  ;;  %v1103_v12 = vadd.f32 %v1102_v6, %v1026_v60  ;;  %v4409_v15 = vmax.f32 %v1101_v3, 0.0  ;;  %v2000_v60 = vld [vmem:[#allocation5 + $0x878] sm:$0xff]  ;;  %v2015_v63 = vld [vmem:[#allocation5 + $0x8f0] sm:$0xff] }
 0x192   : > { %3432 = vmatpush3.msra.mxu1 %v1667_v2  ;;  %v1999_v2 = vld [vmem:[#allocation5 + $0x870] sm:$0xff] }
 0x193   : > { %3433 = vmatprep.subr.mxu1 %v1682_v5  ;;  %v4411_v18 = vmax.f32 %v1103_v12, 0.0  ;;  %v2014_v5 = vld [vmem:[#allocation5 + $0x8e8] sm:$0xff] }
 0x194   : > { %3434 = vmatpush3.msra.mxu1 %v1666_v8  ;;  %v1998_v8 = vld [vmem:[#allocation5 + $0x868] sm:$0xff] }
 0x195   : > { %3435 = vmatprep.subr.mxu1 %v1681_v14  ;;  %1829 = vmatprep.mubr.f32.mxu1 %v4411_v18  ;;  %v2013_v14 = vld [vmem:[#allocation5 + $0x8e0] sm:$0xff] }
 0x196   : > { %3436 = vmatpush3.msra.mxu1 %v1665_v16 }
 0x197   : > { %1830 = vmatmul.mubr.f32.gmra.mxu1 %v4409_v15  ;;  %3437 = vmatprep.subr.mxu1 %v1680_v19  ;;  %v1997_v19 = vld [vmem:[#allocation5 + $0x860] sm:$0xff] }
 0x198   : > { %3438 = vmatpush3.msra.mxu1 %v1664_v20 }
 0x199   : > { %3439 = vmatprep.subr.mxu1 %v1679_v21  ;;  %v2012_v21 = vld [vmem:[#allocation5 + $0x8d8] sm:$0xff] }
 0x19a   : > { %3440 = vmatpush3.msra.mxu1 %v1663_v22  ;;  %v1996_v22 = vld [vmem:[#allocation5 + $0x858] sm:$0xff] }
 0x19b   : > { %3441 = vmatprep.subr.mxu1 %v1678_v23  ;;  %v2011_v23 = vld [vmem:[#allocation5 + $0x8d0] sm:$0xff] }
 0x19c   : > { %3442 = vmatpush3.msra.mxu1 %v1662_v24  ;;  %v1995_v24 = vld [vmem:[#allocation5 + $0x850] sm:$0xff] }
 0x19d   : > { %3443 = vmatprep.subr.mxu1 %v1677_v25  ;;  %v2010_v25 = vld [vmem:[#allocation5 + $0x8c8] sm:$0xff] }
 0x19e   : > { %3444 = vmatpush3.msra.mxu1 %v1661_v27  ;;  %v1994_v27 = vld [vmem:[#allocation5 + $0x848] sm:$0xff] }
 0x19f   : > { %3445 = vmatprep.subr.mxu1 %v1676_v28  ;;  %v2009_v28 = vld [vmem:[#allocation5 + $0x8c0] sm:$0xff] }
 0x1a0   : > { %3446 = vmatpush3.msra.mxu1 %v1660_v29  ;;  %v1993_v29 = vld [vmem:[#allocation5 + $0x840] sm:$0xff] }
 0x1a1   : > { %3447 = vmatprep.subr.mxu1 %v1675_v31  ;;  %v2008_v31 = vld [vmem:[#allocation5 + $0x8b8] sm:$0xff] }
 0x1a2   : > { %3448 = vmatpush3.msra.mxu1 %v1659_v7  ;;  %v1992_v7 = vld [vmem:[#allocation5 + $0x838] sm:$0xff] }
 0x1a3   : > { %3449 = vmatprep.subr.mxu1 %v1674_v9  ;;  %v2007_v9 = vld [vmem:[#allocation5 + $0x8b0] sm:$0xff] }
 0x1a4   : > { %3450 = vmatpush3.msra.mxu1 %v1658_v33  ;;  %v1991_v33 = vld [vmem:[#allocation5 + $0x830] sm:$0xff] }
 0x1a5   : > { %3451 = vmatprep.subr.mxu1 %v1673_v13  ;;  %v2006_v13 = vld [vmem:[#allocation5 + $0x8a8] sm:$0xff] }
 0x1a6   : > { %3452 = vmatpush3.msra.mxu1 %v1657_v35  ;;  %v1990_v35 = vld [vmem:[#allocation5 + $0x828] sm:$0xff] }
 0x1a7   : > { %3453 = vmatprep.subr.mxu1 %v1672_v38  ;;  %v2005_v38 = vld [vmem:[#allocation5 + $0x8a0] sm:$0xff] }
 0x1a8   : > { %3454 = vmatpush3.msra.mxu1 %v1656_v39  ;;  %v1989_v39 = vld [vmem:[#allocation5 + $0x820] sm:$0xff] }
 0x1a9   : > { %3455 = vmatprep.subr.mxu1 %v1671_v36  ;;  %v2004_v36 = vld [vmem:[#allocation5 + $0x898] sm:$0xff] }
 0x1aa   : > { %3456 = vmatpush3.msra.mxu1 %v1655_v42  ;;  %v1988_v42 = vld [vmem:[#allocation5 + $0x818] sm:$0xff] }
 0x1ab   : > { %3457 = vmatprep.subr.mxu1 %v1670_v44  ;;  %v2003_v44 = vld [vmem:[#allocation5 + $0x890] sm:$0xff] }
 0x1ac   : > { %3458 = vmatpush3.msra.mxu1 %v1654_v45  ;;  %v1987_v45 = vld [vmem:[#allocation5 + $0x810] sm:$0xff] }
 0x1ad   : > { %3459 = vmatprep.subr.mxu1 %v1669_v46  ;;  %v2002_v46 = vld [vmem:[#allocation5 + $0x888] sm:$0xff] }
 0x1ae   : > { %3460 = vmatpush3.msra.mxu1 %v1653_v47  ;;  %v1986_v47 = vld [vmem:[#allocation5 + $0x808] sm:$0xff] }
 0x1af   : > { %3505 = vmatprep.subr.mxu1 %v2048_v48  ;;  %v2001_v48 = vld [vmem:[#allocation5 + $0x880] sm:$0xff] }
 0x1c9   : > { %v1171_v51 = vpop.f32.mrf.mxu0 }
 0x1ca   : > { %v1172_v52 = vadd.f32 %v1171_v51, %v776_v50  ;;  %v2063_v51 = vld [vmem:[#allocation5 + $0xa70] sm:$0xff] }
 0x1cb   : > { %v1248_v4 = vpop.f32.mrf.mxu1  ;;  %v1173_v30 = vpop.f32.mrf.mxu0 }
 0x1cc   : > { %v1174_v53 = vadd.f32 %v1173_v30, %v780_v1  ;;  %v1249_v54 = vadd.f32 %v1248_v4, %v1172_v52  ;;  %v2078_v52 = vld [vmem:[#allocation5 + $0xae8] sm:$0xff]  ;;  %v2077_v30 = vld [vmem:[#allocation5 + $0xae0] sm:$0xff] }
 0x1cd   : > { %v1250_v55 = vpop.f32.mrf.mxu1  ;;  %v2062_v4 = vld [vmem:[#allocation5 + $0xa68] sm:$0xff] }
 0x1ce   : > { %v1251_v56 = vadd.f32 %v1250_v55, %v1174_v53  ;;  %v4421_v58 = vmax.f32 %v1249_v54, 0.0  ;;  %v2061_v53 = vld [vmem:[#allocation5 + $0xa60] sm:$0xff]  ;;  %v2076_v54 = vld [vmem:[#allocation5 + $0xad8] sm:$0xff] }
 0x1cf   : > { %v1177_v34 = vpop.f32.mrf.mxu0  ;;  %v2060_v55 = vld [vmem:[#allocation5 + $0xa58] sm:$0xff] }
 0x1d0   : > { %v4419_v40 = vmax.f32 %v1251_v56, 0.0  ;;  %v1178_v57 = vadd.f32 %v1177_v34, %v776_v50  ;;  %v2064_v50 = vld [vmem:[#allocation5 + $0xa78] sm:$0xff]  ;;  %v2075_v56 = vld [vmem:[#allocation5 + $0xad0] sm:$0xff] }
 0x1d1   : > { %v1179_v59 = vpop.f32.mrf.mxu0  ;;  %v2059_v34 = vld [vmem:[#allocation5 + $0xa50] sm:$0xff] }
 0x1d2   : > { %v1180_v61 = vadd.f32 %v1179_v59, %v780_v1  ;;  %1899 = vmatprep.mubr.f32.mxu0 %v4419_v40  ;;  %v1254_v0 = vpop.f32.mrf.mxu1  ;;  %v2079_v1 = vld [vmem:[#allocation5 + $0xaf0] sm:$0xff]  ;;  %v2058_v59 = vld [vmem:[#allocation5 + $0xa48] sm:$0xff] }
 0x1d3   : > { %1900 = vmatmul.mubr.f32.vlgmr.msra.gmra.mxu0 %v4421_v58  ;;  %v1255_v3 = vadd.f32 %v1254_v0, %v1178_v57  ;;  %v2074_v57 = vld [vmem:[#allocation5 + $0xac8] sm:$0xff]  ;;  %v2056_v0 = vld [vmem:[#allocation5 + $0xa38] sm:$0xff] }
 0x1d4   : > { %3468 = vmatpush3.msra.mxu0 %v2000_v60  ;;  %v1256_v6 = vpop.f32.mrf.mxu1  ;;  %v2073_v60 = vld [vmem:[#allocation5 + $0xac0] sm:$0xff] }
 0x1d5   : > { %3469 = vmatprep.subr.mxu0 %v2015_v63  ;;  %v1257_v12 = vadd.f32 %v1256_v6, %v1180_v61  ;;  %v4425_v16 = vmax.f32 %v1255_v3, 0.0  ;;  %v2057_v61 = vld [vmem:[#allocation5 + $0xa40] sm:$0xff]  ;;  %v2072_v63 = vld [vmem:[#allocation5 + $0xab8] sm:$0xff]  ;;  %v2055_v3 = vld [vmem:[#allocation5 + $0xa30] sm:$0xff] }
 0x1d6   : > { %3470 = vmatpush3.msra.mxu0 %v1999_v2  ;;  %v2071_v2 = vld [vmem:[#allocation5 + $0xab0] sm:$0xff]  ;;  %v2054_v6 = vld [vmem:[#allocation5 + $0xa28] sm:$0xff] }
 0x1d7   : > { %3471 = vmatprep.subr.mxu0 %v2014_v5  ;;  %v4427_v20 = vmax.f32 %v1257_v12, 0.0  ;;  %v2070_v5 = vld [vmem:[#allocation5 + $0xaa8] sm:$0xff]  ;;  %v783_v12 = vsub.s32 6, %v4357_v17 }
 0x1d8   : > { %3472 = vmatpush3.msra.mxu0 %v1998_v8  ;;  %v2069_v8 = vld [vmem:[#allocation5 + $0xaa0] sm:$0xff] }
 0x1d9   : > { %3473 = vmatprep.subr.mxu0 %v2013_v14  ;;  %1904 = vmatprep.mubr.f32.mxu0 %v4427_v20  ;;  %v2053_v14 = vld [vmem:[#allocation5 + $0xa20] sm:$0xff] }
 0x1da   : > { %3474 = vmatpush3.msra.mxu0 %v1997_v19  ;;  %v2068_v19 = vld [vmem:[#allocation5 + $0xa98] sm:$0xff] }
 0x1db   : > { %1905 = vmatmul.mubr.f32.gmra.mxu0 %v4425_v16  ;;  %3475 = vmatprep.subr.mxu0 %v2012_v21  ;;  %v787_v21 = vsub.s32 7, %v4357_v17 }
 0x1dc   : > { %2177 = vmatprep.mubr.f32.mxu0 %v4375_v32  ;;  %3476 = vmatpush3.msra.mxu0 %v1996_v22  ;;  %v2052_v22 = vld [vmem:[#allocation5 + $0xa18] sm:$0xff] }
 0x1dd   : > { %3477 = vmatprep.subr.mxu0 %v2011_v23  ;;  %v2067_v23 = vld [vmem:[#allocation5 + $0xa90] sm:$0xff] }
 0x1de   : > { %3478 = vmatpush3.msra.mxu0 %v1995_v24  ;;  %v784_v24 = vrot.slane %v4359_v26, %v783_v12  ;;  %v1455_v12 = vld [vmem:[#allocation5 + $0xd0] sm:$0xff] }
 0x1df   : > { %3479 = vmatprep.subr.mxu0 %v2010_v25  ;;  %v2051_v25 = vld [vmem:[#allocation5 + $0xa10] sm:$0xff] }
 0x1e0   : > { %3480 = vmatpush3.msra.mxu0 %v1994_v27  ;;  %v2066_v27 = vld [vmem:[#allocation5 + $0xa88] sm:$0xff] }
 0x1e1   : > { %3481 = vmatprep.subr.mxu0 %v2009_v28  ;;  %v788_v28 = vrot.slane %v4359_v26, %v787_v21  ;;  %v1459_v26 = vld [vmem:[#allocation5 + $0xf0] sm:$0xff]  ;;  %v1454_v21 = vld [vmem:[#allocation5 + $0xc8] sm:$0xff] }
 0x1e2   : > { %3482 = vmatpush3.msra.mxu0 %v1993_v29  ;;  %v2050_v29 = vld [vmem:[#allocation5 + $0xa08] sm:$0xff] }
 0x1e3   : > { %3483 = vmatprep.subr.mxu0 %v2008_v31 }
 0x1e4   : > { %3484 = vmatpush3.msra.mxu0 %v1992_v7 }
 0x1e5   : > { %3485 = vmatprep.subr.mxu0 %v2007_v9  ;;  %v2065_v9 = vld [vmem:[#allocation5 + $0xa80] sm:$0xff] }
 0x1e6   : > { %3486 = vmatpush3.msra.mxu0 %v1991_v33 }
 0x1e7   : > { %3487 = vmatprep.subr.mxu0 %v2006_v13  ;;  %v2049_v13 = vld [vmem:[#allocation5 + $0xa00] sm:$0xff] }
 0x1e8   : > { %3488 = vmatpush3.msra.mxu0 %v1990_v35 }
 0x1e9   : > { %3489 = vmatprep.subr.mxu0 %v2005_v38 }
 0x1ea   : > { %3490 = vmatpush3.msra.mxu0 %v1989_v39  ;;  %v1460_v39 = vld [vmem:[#allocation5 + $0xf8] sm:$0xff] }
 0x1eb   : > { %3491 = vmatprep.subr.mxu0 %v2004_v36 }
 0x1ec   : > { %3492 = vmatpush3.msra.mxu0 %v1988_v42  ;;  %v1444_v42 = vld [vmem:[#allocation5 + $0x78] sm:$0xff] }
 0x1ed   : > { %3493 = vmatprep.subr.mxu0 %v2003_v44 }
 0x1ee   : > { %3494 = vmatpush3.msra.mxu0 %v1987_v45 }
 0x1ef   : > { %3495 = vmatprep.subr.mxu0 %v2002_v46 }
 0x1f0   : > { %3496 = vmatpush3.msra.mxu0 %v1986_v47 }
 0x1f1   : > { %3497 = vmatprep.subr.mxu0 %v2001_v48  ;;  %v1443_v48 = vld [vmem:[#allocation5 + $0x70] sm:$0xff] }
 0x1f2   : > { %3498 = vmatpush3.msra.mxu0 %v1985_v49 }
 0x1f3   : > { %2178 = vmatmul.mubr.f32.vlgmr.msra.gmra.mxu0 %v4388_v10  ;;  %3543 = vmatprep.subr.mxu0 %v2080_v62 }
 0x1f4   : > { %2182 = vmatprep.mubr.f32.mxu0 %v4398_v43  ;;  %3544 = vmatpush3.msra.mxu0 %v2064_v50 }
 0x1f5   : > { %3545 = vmatprep.subr.mxu0 %v2079_v1 }
 0x1f6   : > { %3546 = vmatpush3.msra.mxu0 %v2063_v51  ;;  %v1458_v51 = vld [vmem:[#allocation5 + $0xe8] sm:$0xff] }
 0x1f7   : > { %2183 = vmatmul.mubr.f32.gmra.mxu0 %v4396_v41  ;;  %3547 = vmatprep.subr.mxu0 %v2078_v52 }
 0x1f8   : > { %3548 = vmatpush3.msra.mxu0 %v2062_v4  ;;  %2327 = vmatprep.mubr.f32.mxu0 %v4419_v40 }
 0x1f9   : > { %3549 = vmatprep.subr.mxu0 %v2077_v30 }
 0x1fa   : > { %3550 = vmatpush3.msra.mxu0 %v2061_v53  ;;  %v2032_v53 = vld [vmem:[#allocation5 + $0x978] sm:$0xff] }
 0x1fb   : > { %3551 = vmatprep.subr.mxu0 %v2076_v54  ;;  %v1442_v54 = vld [vmem:[#allocation5 + $0x68] sm:$0xff] }
 0x1fc   : > { %3552 = vmatpush3.msra.mxu0 %v2060_v55  ;;  %v2047_v55 = vld [vmem:[#allocation5 + $0x9f0] sm:$0xff] }
 0x1fd   : > { %3553 = vmatprep.subr.mxu0 %v2075_v56 }
 0x1fe   : > { %3554 = vmatpush3.msra.mxu0 %v2059_v34  ;;  %v2031_v34 = vld [vmem:[#allocation5 + $0x970] sm:$0xff] }
 0x1ff   : > { %3555 = vmatprep.subr.mxu0 %v2074_v57  ;;  %v1457_v57 = vld [vmem:[#allocation5 + $0xe0] sm:$0xff] }
 0x200   : > { %3556 = vmatpush3.msra.mxu0 %v2058_v59 }
 0x201   : > { %3557 = vmatprep.subr.mxu0 %v2073_v60  ;;  %v2046_v60 = vld [vmem:[#allocation5 + $0x9e8] sm:$0xff] }
 0x202   : > { %3558 = vmatpush3.msra.mxu0 %v2057_v61 }
 0x203   : > { %3559 = vmatprep.subr.mxu0 %v2072_v63  ;;  %v1441_v63 = vld [vmem:[#allocation5 + $0x60] sm:$0xff] }
 0x204   : > { %3560 = vmatpush3.msra.mxu0 %v2056_v0  ;;  %v2030_v0 = vld [vmem:[#allocation5 + $0x968] sm:$0xff] }
 0x205   : > { %3561 = vmatprep.subr.mxu0 %v2071_v2  ;;  %v2045_v2 = vld [vmem:[#allocation5 + $0x9e0] sm:$0xff] }
 0x206   : > { %3562 = vmatpush3.msra.mxu0 %v2055_v3  ;;  %v1456_v3 = vld [vmem:[#allocation5 + $0xd8] sm:$0xff] }
 0x207   : > { %3563 = vmatprep.subr.mxu0 %v2070_v5  ;;  %v2029_v5 = vld [vmem:[#allocation5 + $0x960] sm:$0xff] }
 0x208   : > { %3564 = vmatpush3.msra.mxu0 %v2054_v6  ;;  %v1440_v6 = vld [vmem:[#allocation5 + $0x58] sm:$0xff] }
 0x209   : > { %3565 = vmatprep.subr.mxu0 %v2069_v8  ;;  %v2044_v8 = vld [vmem:[#allocation5 + $0x9d8] sm:$0xff] }
 0x20a   : > { %3566 = vmatpush3.msra.mxu0 %v2053_v14  ;;  %v1439_v14 = vld [vmem:[#allocation5 + $0x50] sm:$0xff] }
 0x20b   : > { %3567 = vmatprep.subr.mxu0 %v2068_v19  ;;  %v2043_v19 = vld [vmem:[#allocation5 + $0x9d0] sm:$0xff] }
 0x20c   : > { %3568 = vmatpush3.msra.mxu0 %v2052_v22  ;;  %v2027_v22 = vld [vmem:[#allocation5 + $0x950] sm:$0xff] }
 0x20d   : > { %3569 = vmatprep.subr.mxu0 %v2067_v23  ;;  %v1325_v31 = vpop.f32.mrf.mxu0  ;;  %v1438_v23 = vld [vmem:[#allocation5 + $0x48] sm:$0xff] }
 0x20e   : > { %v1402_v7 = vpop.f32.mrf.mxu1  ;;  %3570 = vmatpush3.msra.mxu0 %v2051_v25  ;;  %v1326_v33 = vadd.f32 %v1325_v31, %v784_v24  ;;  %v1453_v25 = vld [vmem:[#allocation5 + $0xc0] sm:$0xff]  ;;  %v1452_v31 = vld [vmem:[#allocation5 + $0xb8] sm:$0xff] }
 0x20f   : > { %3571 = vmatprep.subr.mxu0 %v2066_v27  ;;  %v1327_v35 = vpop.f32.mrf.mxu0  ;;  %v2026_v27 = vld [vmem:[#allocation5 + $0x948] sm:$0xff] }
 0x210   : > { %v1404_v38 = vpop.f32.mrf.mxu1  ;;  %3572 = vmatpush3.msra.mxu0 %v2050_v29  ;;  %v1328_v36 = vadd.f32 %v1327_v35, %v788_v28  ;;  %v1403_v44 = vadd.f32 %v1402_v7, %v1326_v33  ;;  %v2041_v29 = vld [vmem:[#allocation5 + $0x9c0] sm:$0xff]  ;;  %v2040_v33 = vld [vmem:[#allocation5 + $0x9b8] sm:$0xff] }
 0x211   : > { %3573 = vmatprep.subr.mxu0 %v2065_v9  ;;  %v2025_v7 = vld [vmem:[#allocation5 + $0x940] sm:$0xff]  ;;  %v1436_v9 = vld [vmem:[#allocation5 + $0x38] sm:$0xff] }
 0x212   : > { %v1408_v45 = vpop.f32.mrf.mxu1  ;;  %3574 = vmatpush3.msra.mxu0 %v2049_v13  ;;  %v1405_v46 = vadd.f32 %v1404_v38, %v1328_v36  ;;  %v1331_v47 = vpop.f32.mrf.mxu0  ;;  %v4444_v52 = vmax.f32 %v1403_v44, 0.0  ;;  %v1451_v13 = vld [vmem:[#allocation5 + $0xb0] sm:$0xff]  ;;  %v2024_v35 = vld [vmem:[#allocation5 + $0x938] sm:$0xff]  ;;  %v1450_v36 = vld [vmem:[#allocation5 + $0xa8] sm:$0xff] }
 0x213   : > { %2328 = vmatmul.mubr.f32.vlgmr.msra.gmra.mxu0 %v4421_v58  ;;  %3619 = vmatprep.subr.mxu0 %v1460_v39  ;;  %v1332_v49 = vadd.f32 %v1331_v47, %v784_v24  ;;  %v2042_v24 = vld [vmem:[#allocation5 + $0x9c8] sm:$0xff]  ;;  %v1435_v38 = vld [vmem:[#allocation5 + $0x30] sm:$0xff]  ;;  %v1433_v47 = vld [vmem:[#allocation5 + $0x20] sm:$0xff] }
 0x214   : > { %2332 = vmatprep.mubr.f32.mxu0 %v4427_v20  ;;  %3620 = vmatpush3.msra.mxu0 %v1444_v42  ;;  %v4442_v62 = vmax.f32 %v1405_v46, 0.0  ;;  %v1333_v50 = vpop.f32.mrf.mxu0  ;;  %v1410_v1 = vpop.f32.mrf.mxu1  ;;  %v2039_v39 = vld [vmem:[#allocation5 + $0x9b0] sm:$0xff]  ;;  %v1434_v44 = vld [vmem:[#allocation5 + $0x28] sm:$0xff] }
 0x215   : > { %3621 = vmatprep.subr.mxu0 %v1459_v26  ;;  %v1334_v4 = vadd.f32 %v1333_v50, %v788_v28  ;;  %v1409_v30 = vadd.f32 %v1408_v45, %v1332_v49  ;;  %v1437_v28 = vld [vmem:[#allocation5 + $0x40] sm:$0xff]  ;;  %v2023_v42 = vld [vmem:[#allocation5 + $0x930] sm:$0xff]  ;;  %v2038_v45 = vld [vmem:[#allocation5 + $0x9a8] sm:$0xff] }
 0x216   : > { %3622 = vmatpush3.msra.mxu0 %v1443_v48  ;;  %1974 = vmatprep.mubr.f32.mxu1 %v4442_v62  ;;  %v1449_v26 = vld [vmem:[#allocation5 + $0xa0] sm:$0xff]  ;;  %v2022_v46 = vld [vmem:[#allocation5 + $0x928] sm:$0xff]  ;;  %v1448_v49 = vld [vmem:[#allocation5 + $0x98] sm:$0xff] }
 0x217   : > { %2333 = vmatmul.mubr.f32.gmra.mxu0 %v4425_v16  ;;  %v1411_v56 = vadd.f32 %v1410_v1, %v1334_v4  ;;  %1975 = vmatmul.mubr.f32.vlgmr.msra.gmra.mxu1 %v4444_v52  ;;  %v4449_v59 = vmax.f32 %v1409_v30, 0.0  ;;  %v2037_v48 = vld [vmem:[#allocation5 + $0x9a0] sm:$0xff]  ;;  %v1432_v1 = vld [vmem:[#allocation5 + $0x18] sm:$0xff]  ;;  %v1447_v4 = vld [vmem:[#allocation5 + $0x90] sm:$0xff] }
 0x218   : > { %3623 = vmatprep.subr.mxu0 %v1458_v51  ;;  %3506 = vmatpush3.msra.mxu1 %v2032_v53  ;;  %v2021_v50 = vld [vmem:[#allocation5 + $0x920] sm:$0xff]  ;;  %v2036_v51 = vld [vmem:[#allocation5 + $0x998] sm:$0xff]  ;;  %v1431_v53 = vld [vmem:[#allocation5 + $0x10] sm:$0xff] }
 0x219   : > { %3624 = vmatpush3.msra.mxu0 %v1442_v54  ;;  %v4451_v61 = vmax.f32 %v1411_v56, 0.0  ;;  %3507 = vmatprep.subr.mxu1 %v2047_v55  ;;  %v2020_v30 = vld [vmem:[#allocation5 + $0x918] sm:$0xff]  ;;  %v2035_v54 = vld [vmem:[#allocation5 + $0x990] sm:$0xff]  ;;  %v1446_v55 = vld [vmem:[#allocation5 + $0x88] sm:$0xff] }
 0x21a   : > { %2484 = vmatprep.mubr.f32.mxu0 %v4375_v32  ;;  %3508 = vmatpush3.msra.mxu1 %v2031_v34  ;;  %v2028_v32 = vld [vmem:[#allocation5 + $0x958] sm:$0xff]  ;;  %v2019_v56 = vld [vmem:[#allocation5 + $0x910] sm:$0xff]  ;;  %v1430_v34 = vld [vmem:[#allocation5 + $0x8] sm:$0xff] }
 0x21b   : > { %3625 = vmatprep.subr.mxu0 %v1457_v57  ;;  %1979 = vmatprep.mubr.f32.mxu1 %v4451_v61  ;;  %v2034_v57 = vld [vmem:[#allocation5 + $0x988] sm:$0xff] }
 0x21c   : > { %3509 = vmatprep.subr.mxu1 %v2046_v60  ;;  %1980 = vmatmul.mubr.f32.gmra.mxu1 %v4449_v59  ;;  %v1445_v60 = vld [vmem:[#allocation5 + $0x80] sm:$0xff] }
 0x21d   : > { %3626 = vmatpush3.msra.mxu0 %v1441_v63  ;;  %3510 = vmatpush3.msra.mxu1 %v2030_v0  ;;  %v2018_v63 = vld [vmem:[#allocation5 + $0x908] sm:$0xff]  ;;  %v1429_v0 = vld [vmem:[#allocation5] sm:$0xff] }
 0x21e   : > { %2252 = vmatprep.mubr.f32.mxu1 %v4403_v11  ;;  %3511 = vmatprep.subr.mxu1 %v2045_v2  ;;  %v2033_v2 = vld [vmem:[#allocation5 + $0x980] sm:$0xff] }
 0x21f   : > { %3627 = vmatprep.subr.mxu0 %v1456_v3  ;;  %3512 = vmatpush3.msra.mxu1 %v2029_v5  ;;  %v2017_v3 = vld [vmem:[#allocation5 + $0x900] sm:$0xff]  ;;  %v1524_v5 = vld [vmem:[#allocation5 + $0x2f8] sm:$0xff] }
 0x220   : > { %3628 = vmatpush3.msra.mxu0 %v1440_v6  ;;  %3513 = vmatprep.subr.mxu1 %v2044_v8  ;;  %v2112_v6 = vld [vmem:[#allocation5 + $0xbf8] sm:$0xff] }
 0x221   : > { %3629 = vmatprep.subr.mxu0 %v1455_v12  ;;  %3514 = vmatpush3.msra.mxu1 %v2028_v32  ;;  %v2096_v8 = vld [vmem:[#allocation5 + $0xb78] sm:$0xff]  ;;  %v2111_v32 = vld [vmem:[#allocation5 + $0xbf0] sm:$0xff] }
 0x222   : > { %3630 = vmatpush3.msra.mxu0 %v1439_v14  ;;  %3515 = vmatprep.subr.mxu1 %v2043_v19  ;;  %v1508_v12 = vld [vmem:[#allocation5 + $0x278] sm:$0xff]  ;;  %v1523_v14 = vld [vmem:[#allocation5 + $0x2f0] sm:$0xff] }
 0x223   : > { %3631 = vmatprep.subr.mxu0 %v1454_v21  ;;  %3516 = vmatpush3.msra.mxu1 %v2027_v22  ;;  %v2095_v19 = vld [vmem:[#allocation5 + $0xb70] sm:$0xff]  ;;  %v2110_v22 = vld [vmem:[#allocation5 + $0xbe8] sm:$0xff] }
 0x224   : > { %3632 = vmatpush3.msra.mxu0 %v1438_v23  ;;  %3517 = vmatprep.subr.mxu1 %v2042_v24  ;;  %v1507_v21 = vld [vmem:[#allocation5 + $0x270] sm:$0xff]  ;;  %v2094_v23 = vld [vmem:[#allocation5 + $0xb68] sm:$0xff] }
 0x225   : > { %3633 = vmatprep.subr.mxu0 %v1453_v25  ;;  %3518 = vmatpush3.msra.mxu1 %v2026_v27  ;;  %v1506_v24 = vld [vmem:[#allocation5 + $0x268] sm:$0xff]  ;;  %v2109_v25 = vld [vmem:[#allocation5 + $0xbe0] sm:$0xff] }
 0x226   : > { %3634 = vmatpush3.msra.mxu0 %v1437_v28  ;;  %3519 = vmatprep.subr.mxu1 %v2041_v29  ;;  %v1521_v27 = vld [vmem:[#allocation5 + $0x2e0] sm:$0xff]  ;;  %v2108_v29 = vld [vmem:[#allocation5 + $0xbd8] sm:$0xff] }
 0x227   : > { %3635 = vmatprep.subr.mxu0 %v1452_v31  ;;  %3520 = vmatpush3.msra.mxu1 %v2025_v7  ;;  %v1505_v28 = vld [vmem:[#allocation5 + $0x260] sm:$0xff]  ;;  %v1520_v31 = vld [vmem:[#allocation5 + $0x2d8] sm:$0xff] }
 0x228   : > { %3636 = vmatpush3.msra.mxu0 %v1436_v9  ;;  %3521 = vmatprep.subr.mxu1 %v2040_v33  ;;  %v2092_v7 = vld [vmem:[#allocation5 + $0xb58] sm:$0xff]  ;;  %v1519_v33 = vld [vmem:[#allocation5 + $0x2d0] sm:$0xff] }
 0x229   : > { %3637 = vmatprep.subr.mxu0 %v1451_v13  ;;  %3522 = vmatpush3.msra.mxu1 %v2024_v35  ;;  %v1504_v9 = vld [vmem:[#allocation5 + $0x258] sm:$0xff]  ;;  %v2091_v13 = vld [vmem:[#allocation5 + $0xb50] sm:$0xff] }
 0x22a   : > { %3638 = vmatpush3.msra.mxu0 %v1435_v38  ;;  %3523 = vmatprep.subr.mxu1 %v2039_v39  ;;  %v1503_v35 = vld [vmem:[#allocation5 + $0x250] sm:$0xff]  ;;  %v2106_v38 = vld [vmem:[#allocation5 + $0xbc8] sm:$0xff] }
 0x22b   : > { %3639 = vmatprep.subr.mxu0 %v1450_v36  ;;  %3524 = vmatpush3.msra.mxu1 %v2023_v42  ;;  %v1518_v39 = vld [vmem:[#allocation5 + $0x2c8] sm:$0xff]  ;;  %v2105_v42 = vld [vmem:[#allocation5 + $0xbc0] sm:$0xff] }
 0x22c   : > { %3640 = vmatpush3.msra.mxu0 %v1434_v44  ;;  %3525 = vmatprep.subr.mxu1 %v2038_v45  ;;  %v1502_v36 = vld [vmem:[#allocation5 + $0x248] sm:$0xff]  ;;  %v1517_v44 = vld [vmem:[#allocation5 + $0x2c0] sm:$0xff] }
 0x22d   : > { %3641 = vmatprep.subr.mxu0 %v1449_v26  ;;  %3526 = vmatpush3.msra.mxu1 %v2022_v46  ;;  %v2089_v45 = vld [vmem:[#allocation5 + $0xb40] sm:$0xff]  ;;  %v2104_v46 = vld [vmem:[#allocation5 + $0xbb8] sm:$0xff] }
 0x22e   : > { %3642 = vmatpush3.msra.mxu0 %v1433_v47  ;;  %3527 = vmatprep.subr.mxu1 %v2037_v48  ;;  %v1501_v26 = vld [vmem:[#allocation5 + $0x240] sm:$0xff]  ;;  %v1516_v47 = vld [vmem:[#allocation5 + $0x2b8] sm:$0xff] }
 0x22f   : > { %3643 = vmatprep.subr.mxu0 %v1448_v49  ;;  %3528 = vmatpush3.msra.mxu1 %v2021_v50  ;;  %v2088_v48 = vld [vmem:[#allocation5 + $0xb38] sm:$0xff]  ;;  %v2103_v50 = vld [vmem:[#allocation5 + $0xbb0] sm:$0xff] }
 0x230   : > { %3644 = vmatpush3.msra.mxu0 %v1432_v1  ;;  %3529 = vmatprep.subr.mxu1 %v2036_v51  ;;  %v1500_v49 = vld [vmem:[#allocation5 + $0x238] sm:$0xff]  ;;  %v1515_v1 = vld [vmem:[#allocation5 + $0x2b0] sm:$0xff] }
 0x231   : > { %3645 = vmatprep.subr.mxu0 %v1447_v4  ;;  %3530 = vmatpush3.msra.mxu1 %v2020_v30  ;;  %v2087_v51 = vld [vmem:[#allocation5 + $0xb30] sm:$0xff]  ;;  %v2102_v30 = vld [vmem:[#allocation5 + $0xba8] sm:$0xff] }
 0x232   : > { %3646 = vmatpush3.msra.mxu0 %v1431_v53  ;;  %3531 = vmatprep.subr.mxu1 %v2035_v54  ;;  %v1499_v4 = vld [vmem:[#allocation5 + $0x230] sm:$0xff]  ;;  %v1514_v53 = vld [vmem:[#allocation5 + $0x2a8] sm:$0xff] }
 0x233   : > { %3647 = vmatprep.subr.mxu0 %v1446_v55  ;;  %3532 = vmatpush3.msra.mxu1 %v2019_v56  ;;  %v2086_v54 = vld [vmem:[#allocation5 + $0xb28] sm:$0xff]  ;;  %v2101_v56 = vld [vmem:[#allocation5 + $0xba0] sm:$0xff] }
 0x234   : > { %3648 = vmatpush3.msra.mxu0 %v1430_v34  ;;  %3533 = vmatprep.subr.mxu1 %v2034_v57  ;;  %v1498_v55 = vld [vmem:[#allocation5 + $0x228] sm:$0xff]  ;;  %v1513_v34 = vld [vmem:[#allocation5 + $0x2a0] sm:$0xff] }
 0x235   : > { %3649 = vmatprep.subr.mxu0 %v1445_v60  ;;  %3534 = vmatpush3.msra.mxu1 %v2018_v63  ;;  %v2085_v57 = vld [vmem:[#allocation5 + $0xb20] sm:$0xff]  ;;  %v2100_v63 = vld [vmem:[#allocation5 + $0xb98] sm:$0xff] }
 0x236   : > { %3650 = vmatpush3.msra.mxu0 %v1429_v0  ;;  %3535 = vmatprep.subr.mxu1 %v2033_v2  ;;  %v1497_v60 = vld [vmem:[#allocation5 + $0x220] sm:$0xff]  ;;  %v1512_v0 = vld [vmem:[#allocation5 + $0x298] sm:$0xff] }
 0x237   : > { %2485 = vmatmul.mubr.f32.vlgmr.msra.gmra.mxu0 %v4388_v10  ;;  %3536 = vmatpush3.msra.mxu1 %v2017_v3  ;;  %v1522_v10 = vld [vmem:[#allocation5 + $0x2e8] sm:$0xff]  ;;  %v2084_v2 = vld [vmem:[#allocation5 + $0xb18] sm:$0xff] }
 0x238   : > { %3695 = vmatprep.subr.mxu0 %v1524_v5  ;;  %2253 = vmatmul.mubr.f32.vlgmr.msra.gmra.mxu1 %v4405_v37  ;;  %v1496_v3 = vld [vmem:[#allocation5 + $0x218] sm:$0xff]  ;;  %v2099_v5 = vld [vmem:[#allocation5 + $0xb90] sm:$0xff] }
 0x239   : > { %3581 = vmatprep.subr.mxu1 %v2112_v6  ;;  %2257 = vmatprep.mubr.f32.mxu1 %v4411_v18  ;;  %v1511_v6 = vld [vmem:[#allocation5 + $0x290] sm:$0xff] }
 0x23a   : > { %3582 = vmatpush3.msra.mxu1 %v2096_v8  ;;  %2489 = vmatprep.mubr.f32.mxu0 %v4398_v43  ;;  %v2093_v43 = vld [vmem:[#allocation5 + $0xb60] sm:$0xff]  ;;  %v2083_v8 = vld [vmem:[#allocation5 + $0xb10] sm:$0xff] }
 0x23b   : > { %3696 = vmatpush3.msra.mxu0 %v1508_v12  ;;  %3583 = vmatprep.subr.mxu1 %v2111_v32  ;;  %v1495_v12 = vld [vmem:[#allocation5 + $0x210] sm:$0xff]  ;;  %v2098_v32 = vld [vmem:[#allocation5 + $0xb88] sm:$0xff] }
 0x23c   : > { %3697 = vmatprep.subr.mxu0 %v1523_v14  ;;  %3584 = vmatpush3.msra.mxu1 %v2095_v19  ;;  %v1510_v14 = vld [vmem:[#allocation5 + $0x288] sm:$0xff] }
 0x23d   : > { %3698 = vmatpush3.msra.mxu0 %v1507_v21  ;;  %2258 = vmatmul.mubr.f32.gmra.mxu1 %v4409_v15  ;;  %v2082_v19 = vld [vmem:[#allocation5 + $0xb08] sm:$0xff] }
 0x23e   : > { %3585 = vmatprep.subr.mxu1 %v2110_v22  ;;  %2490 = vmatmul.mubr.f32.gmra.mxu0 %v4396_v41  ;;  %v2107_v41 = vld [vmem:[#allocation5 + $0xbd0] sm:$0xff]  ;;  %v1494_v21 = vld [vmem:[#allocation5 + $0x208] sm:$0xff]  ;;  %v2097_v22 = vld [vmem:[#allocation5 + $0xb80] sm:$0xff] }
 0x23f   : > { %3699 = vmatprep.subr.mxu0 %v1522_v10  ;;  %3586 = vmatpush3.msra.mxu1 %v2094_v23  ;;  %v1509_v10 = vld [vmem:[#allocation5 + $0x280] sm:$0xff] }
 0x240   : > { %2402 = vmatprep.mubr.f32.mxu1 %v4442_v62  ;;  %3700 = vmatpush3.msra.mxu0 %v1506_v24  ;;  %v2081_v23 = vld [vmem:[#allocation5 + $0xb00] sm:$0xff] }
 0x241   : > { %2634 = vmatprep.mubr.f32.mxu0 %v4419_v40  ;;  %3587 = vmatprep.subr.mxu1 %v2109_v25  ;;  %v2090_v40 = vld [vmem:[#allocation5 + $0xb48] sm:$0xff]  ;;  %v1493_v24 = vld [vmem:[#allocation5 + $0x200] sm:$0xff]  ;;  %v1492_v25 = vld [vmem:[#allocation5 + $0x1f8] sm:$0xff] }
 0x242   : > { %3701 = vmatprep.subr.mxu0 %v1521_v27  ;;  %3588 = vmatpush3.msra.mxu1 %v2093_v43  ;;  %v1476_v27 = vld [vmem:[#allocation5 + $0x178] sm:$0xff]  ;;  %v1491_v43 = vld [vmem:[#allocation5 + $0x1f0] sm:$0xff] }
 0x243   : > { %3702 = vmatpush3.msra.mxu0 %v1505_v28  ;;  %3589 = vmatprep.subr.mxu1 %v2108_v29  ;;  %v1475_v28 = vld [vmem:[#allocation5 + $0x170] sm:$0xff]  ;;  %v1490_v29 = vld [vmem:[#allocation5 + $0x1e8] sm:$0xff] }
 0x244   : > { %3703 = vmatprep.subr.mxu0 %v1520_v31  ;;  %3590 = vmatpush3.msra.mxu1 %v2092_v7  ;;  %v1474_v31 = vld [vmem:[#allocation5 + $0x168] sm:$0xff]  ;;  %v1489_v7 = vld [vmem:[#allocation5 + $0x1e0] sm:$0xff] }
 0x245   : > { %3704 = vmatpush3.msra.mxu0 %v1504_v9  ;;  %3591 = vmatprep.subr.mxu1 %v2107_v41  ;;  %v1473_v9 = vld [vmem:[#allocation5 + $0x160] sm:$0xff]  ;;  %v1488_v41 = vld [vmem:[#allocation5 + $0x1d8] sm:$0xff] }
 0x246   : > { %3705 = vmatprep.subr.mxu0 %v1519_v33  ;;  %3592 = vmatpush3.msra.mxu1 %v2091_v13  ;;  %v1487_v33 = vld [vmem:[#allocation5 + $0x1d0] sm:$0xff]  ;;  %v1486_v13 = vld [vmem:[#allocation5 + $0x1c8] sm:$0xff] }
 0x247   : > { %3706 = vmatpush3.msra.mxu0 %v1503_v35  ;;  %3593 = vmatprep.subr.mxu1 %v2106_v38  ;;  %v1470_v35 = vld [vmem:[#allocation5 + $0x148] sm:$0xff]  ;;  %v1485_v38 = vld [vmem:[#allocation5 + $0x1c0] sm:$0xff] }
 0x248   : > { %3707 = vmatprep.subr.mxu0 %v1518_v39  ;;  %3594 = vmatpush3.msra.mxu1 %v2090_v40  ;;  %v1469_v39 = vld [vmem:[#allocation5 + $0x140] sm:$0xff]  ;;  %v1468_v40 = vld [vmem:[#allocation5 + $0x138] sm:$0xff] }
 0x249   : > { %3708 = vmatpush3.msra.mxu0 %v1502_v36  ;;  %3595 = vmatprep.subr.mxu1 %v2105_v42  ;;  %v1467_v36 = vld [vmem:[#allocation5 + $0x130] sm:$0xff]  ;;  %v1482_v42 = vld [vmem:[#allocation5 + $0x1a8] sm:$0xff] }
 0x24a   : > { %3709 = vmatprep.subr.mxu0 %v1517_v44  ;;  %3596 = vmatpush3.msra.mxu1 %v2089_v45  ;;  %v1466_v44 = vld [vmem:[#allocation5 + $0x128] sm:$0xff]  ;;  %v1481_v45 = vld [vmem:[#allocation5 + $0x1a0] sm:$0xff] }
 0x24b   : > { %3710 = vmatpush3.msra.mxu0 %v1501_v26  ;;  %3597 = vmatprep.subr.mxu1 %v2104_v46  ;;  %v1465_v26 = vld [vmem:[#allocation5 + $0x120] sm:$0xff]  ;;  %v1480_v46 = vld [vmem:[#allocation5 + $0x198] sm:$0xff] }
 0x24c   : > { %3711 = vmatprep.subr.mxu0 %v1516_v47  ;;  %3598 = vmatpush3.msra.mxu1 %v2088_v48  ;;  %v1464_v47 = vld [vmem:[#allocation5 + $0x118] sm:$0xff]  ;;  %v1479_v48 = vld [vmem:[#allocation5 + $0x190] sm:$0xff] }
 0x24d   : > { %3712 = vmatpush3.msra.mxu0 %v1500_v49  ;;  %3599 = vmatprep.subr.mxu1 %v2103_v50  ;;  %v1463_v49 = vld [vmem:[#allocation5 + $0x110] sm:$0xff]  ;;  %v1478_v50 = vld [vmem:[#allocation5 + $0x188] sm:$0xff] }
 0x24e   : > { %3713 = vmatprep.subr.mxu0 %v1515_v1  ;;  %3600 = vmatpush3.msra.mxu1 %v2087_v51  ;;  %v1462_v1 = vld [vmem:[#allocation5 + $0x108] sm:$0xff]  ;;  %v1477_v51 = vld [vmem:[#allocation5 + $0x180] sm:$0xff] }
 0x24f   : > { %3714 = vmatpush3.msra.mxu0 %v1499_v4  ;;  %3601 = vmatprep.subr.mxu1 %v2102_v30  ;;  %v1461_v4 = vld [vmem:[#allocation5 + $0x100] sm:$0xff]  ;;  %v1556_v30 = vld [vmem:[#allocation5 + $0x3f8] sm:$0xff] }
 0x250   : > { %3715 = vmatprep.subr.mxu0 %v1514_v53  ;;  %3602 = vmatpush3.msra.mxu1 %v2086_v54  ;;  %v1540_v53 = vld [vmem:[#allocation5 + $0x378] sm:$0xff]  ;;  %v1555_v54 = vld [vmem:[#allocation5 + $0x3f0] sm:$0xff] }
 0x251   : > { %3716 = vmatpush3.msra.mxu0 %v1498_v55  ;;  %3603 = vmatprep.subr.mxu1 %v2101_v56  ;;  %v1539_v55 = vld [vmem:[#allocation5 + $0x370] sm:$0xff]  ;;  %v1554_v56 = vld [vmem:[#allocation5 + $0x3e8] sm:$0xff] }
 0x252   : > { %3717 = vmatprep.subr.mxu0 %v1513_v34  ;;  %3604 = vmatpush3.msra.mxu1 %v2085_v57  ;;  %v1538_v34 = vld [vmem:[#allocation5 + $0x368] sm:$0xff]  ;;  %v1553_v57 = vld [vmem:[#allocation5 + $0x3e0] sm:$0xff] }
 0x253   : > { %3718 = vmatpush3.msra.mxu0 %v1497_v60  ;;  %3605 = vmatprep.subr.mxu1 %v2100_v63  ;;  %v1537_v60 = vld [vmem:[#allocation5 + $0x360] sm:$0xff]  ;;  %v1552_v63 = vld [vmem:[#allocation5 + $0x3d8] sm:$0xff] }
 0x254   : > { %3719 = vmatprep.subr.mxu0 %v1512_v0  ;;  %3606 = vmatpush3.msra.mxu1 %v2084_v2  ;;  %v1551_v0 = vld [vmem:[#allocation5 + $0x3d0] sm:$0xff]  ;;  %v1550_v2 = vld [vmem:[#allocation5 + $0x3c8] sm:$0xff] }
 0x255   : > { %3720 = vmatpush3.msra.mxu0 %v1496_v3  ;;  %3607 = vmatprep.subr.mxu1 %v2099_v5  ;;  %v1534_v3 = vld [vmem:[#allocation5 + $0x348] sm:$0xff]  ;;  %v1549_v5 = vld [vmem:[#allocation5 + $0x3c0] sm:$0xff] }
 0x256   : > { %3721 = vmatprep.subr.mxu0 %v1511_v6  ;;  %3608 = vmatpush3.msra.mxu1 %v2083_v8  ;;  %v1548_v6 = vld [vmem:[#allocation5 + $0x3b8] sm:$0xff] }
 0x257   : > { %3722 = vmatpush3.msra.mxu0 %v1495_v12  ;;  %3609 = vmatprep.subr.mxu1 %v2098_v32  ;;  %v1532_v8 = vld [vmem:[#allocation5 + $0x338] sm:$0xff]  ;;  %v1531_v12 = vld [vmem:[#allocation5 + $0x330] sm:$0xff]  ;;  %v1546_v32 = vld [vmem:[#allocation5 + $0x3a8] sm:$0xff] }
 0x258   : > { %3723 = vmatprep.subr.mxu0 %v1510_v14  ;;  %3610 = vmatpush3.msra.mxu1 %v2082_v19  ;;  %v1530_v14 = vld [vmem:[#allocation5 + $0x328] sm:$0xff]  ;;  %v1545_v19 = vld [vmem:[#allocation5 + $0x3a0] sm:$0xff] }
 0x259   : > { %3724 = vmatpush3.msra.mxu0 %v1494_v21  ;;  %3611 = vmatprep.subr.mxu1 %v2097_v22  ;;  %v1529_v21 = vld [vmem:[#allocation5 + $0x320] sm:$0xff]  ;;  %v1544_v22 = vld [vmem:[#allocation5 + $0x398] sm:$0xff] }
 0x25a   : > { %3725 = vmatprep.subr.mxu0 %v1509_v10  ;;  %3612 = vmatpush3.msra.mxu1 %v2081_v23  ;;  %v1528_v10 = vld [vmem:[#allocation5 + $0x318] sm:$0xff]  ;;  %v1543_v23 = vld [vmem:[#allocation5 + $0x390] sm:$0xff] }
 0x25b   : > { %3726 = vmatpush3.msra.mxu0 %v1493_v24  ;;  %2403 = vmatmul.mubr.f32.vlgmr.msra.gmra.mxu1 %v4444_v52  ;;  %v1527_v24 = vld [vmem:[#allocation5 + $0x310] sm:$0xff] }
 0x25c   : > { %3657 = vmatprep.subr.mxu1 %v1492_v25  ;;  %2635 = vmatmul.mubr.f32.vlgmr.msra.gmra.mxu0 %v4421_v58  ;;  %v1472_v58 = vld [vmem:[#allocation5 + $0x158] sm:$0xff]  ;;  %v1542_v25 = vld [vmem:[#allocation5 + $0x388] sm:$0xff] }
 0x25d   : > { %2407 = vmatprep.mubr.f32.mxu1 %v4451_v61  ;;  %3658 = vmatpush3.msra.mxu1 %v1476_v27  ;;  %v1526_v27 = vld [vmem:[#allocation5 + $0x308] sm:$0xff] }
 0x25e   : > { %2639 = vmatprep.mubr.f32.mxu0 %v4427_v20  ;;  %3659 = vmatprep.subr.mxu1 %v1491_v43  ;;  %v1471_v20 = vld [vmem:[#allocation5 + $0x150] sm:$0xff]  ;;  %v1541_v43 = vld [vmem:[#allocation5 + $0x380] sm:$0xff] }
 0x25f   : > { %3660 = vmatpush3.msra.mxu1 %v1475_v28  ;;  %v1525_v28 = vld [vmem:[#allocation5 + $0x300] sm:$0xff] }
 0x260   : > { %2408 = vmatmul.mubr.f32.gmra.mxu1 %v4449_v59  ;;  %3661 = vmatprep.subr.mxu1 %v1490_v29  ;;  %v2773_v29 = vld [vmem:[#allocation5 + $0xd10] sm:$0xff] }
 0x261   : > { %2640 = vmatmul.mubr.f32.gmra.mxu0 %v4425_v16  ;;  %3662 = vmatpush3.msra.mxu1 %v1474_v31  ;;  %v1484_v16 = vld [vmem:[#allocation5 + $0x1b8] sm:$0xff]  ;;  %v2864_v31 = vld [vmem:[#allocation5 + $0xd90] sm:$0xff] }
 0x262   : > { %2559 = vmatprep.mubr.f32.mxu1 %v4403_v11  ;;  %3663 = vmatprep.subr.mxu1 %v1489_v7  ;;  %v1483_v11 = vld [vmem:[#allocation5 + $0x1b0] sm:$0xff]  ;;  %v2772_v7 = vld [vmem:[#allocation5 + $0xd08] sm:$0xff] }
 0x263   : > { %3664 = vmatpush3.msra.mxu1 %v1473_v9  ;;  %3859 = vmatprep.subr.mxu0 %v2773_v29  ;;  %v2863_v9 = vld [vmem:[#allocation5 + $0xd88] sm:$0xff] }
 0x264   : > { %3665 = vmatprep.subr.mxu1 %v1488_v41  ;;  %3860 = vmatpush3.msra.mxu0 %v2773_v29  ;;  %v2771_v41 = vld [vmem:[#allocation5 + $0xd00] sm:$0xff] }
 0x265   : > { %3666 = vmatpush3.msra.mxu1 %v1472_v58  ;;  %v2862_v58 = vld [vmem:[#allocation5 + $0xd80] sm:$0xff]  ;;  %3861 = vmatprep.subr.mxu0 %v2772_v7 }
 0x266   : > { %3667 = vmatprep.subr.mxu1 %v1487_v33  ;;  %3862 = vmatpush3.msra.mxu0 %v2772_v7  ;;  %v2770_v33 = vld [vmem:[#allocation5 + $0xcf8] sm:$0xff] }
 0x267   : > { %3668 = vmatpush3.msra.mxu1 %v1471_v20  ;;  %3863 = vmatprep.subr.mxu0 %v2771_v41  ;;  %v2768_v20 = vld [vmem:[#allocation5 + $0xce8] sm:$0xff] }
 0x268   : > { %3669 = vmatprep.subr.mxu1 %v1486_v13  ;;  %3864 = vmatpush3.msra.mxu0 %v2771_v41  ;;  %v2859_v13 = vld [vmem:[#allocation5 + $0xd68] sm:$0xff] }
 0x269   : > { %3670 = vmatpush3.msra.mxu1 %v1470_v35  ;;  %3865 = vmatprep.subr.mxu0 %v2770_v33  ;;  %v2767_v35 = vld [vmem:[#allocation5 + $0xce0] sm:$0xff] }
 0x26a   : > { %3671 = vmatprep.subr.mxu1 %v1485_v38  ;;  %3866 = vmatpush3.msra.mxu0 %v2770_v33  ;;  %v2858_v38 = vld [vmem:[#allocation5 + $0xd60] sm:$0xff] }
 0x26b   : > { %3672 = vmatpush3.msra.mxu1 %v1469_v39  ;;  %v2766_v39 = vld [vmem:[#allocation5 + $0xcd8] sm:$0xff] }
 0x26c   : > { %3673 = vmatprep.subr.mxu1 %v1484_v16  ;;  %v2857_v16 = vld [vmem:[#allocation5 + $0xd58] sm:$0xff] }
 0x26d   : > { %3674 = vmatpush3.msra.mxu1 %v1468_v40  ;;  %v2765_v40 = vld [vmem:[#allocation5 + $0xcd0] sm:$0xff] }
 0x26e   : > { %3675 = vmatprep.subr.mxu1 %v1483_v11  ;;  %v2856_v11 = vld [vmem:[#allocation5 + $0xd50] sm:$0xff] }
 0x26f   : > { %3676 = vmatpush3.msra.mxu1 %v1467_v36  ;;  %v2764_v36 = vld [vmem:[#allocation5 + $0xcc8] sm:$0xff] }
 0x270   : > { %3677 = vmatprep.subr.mxu1 %v1482_v42  ;;  %v2855_v42 = vld [vmem:[#allocation5 + $0xd48] sm:$0xff] }
 0x271   : > { %3678 = vmatpush3.msra.mxu1 %v1466_v44  ;;  %v2763_v44 = vld [vmem:[#allocation5 + $0xcc0] sm:$0xff] }
 0x272   : > { %3679 = vmatprep.subr.mxu1 %v1481_v45  ;;  %v2854_v45 = vld [vmem:[#allocation5 + $0xd40] sm:$0xff] }
 0x273   : > { %3680 = vmatpush3.msra.mxu1 %v1465_v26  ;;  %v2762_v26 = vld [vmem:[#allocation5 + $0xcb8] sm:$0xff] }
 0x274   : > { %3681 = vmatprep.subr.mxu1 %v1480_v46  ;;  %v2853_v46 = vld [vmem:[#allocation5 + $0xd38] sm:$0xff] }
 0x275   : > { %3682 = vmatpush3.msra.mxu1 %v1464_v47  ;;  %v2761_v47 = vld [vmem:[#allocation5 + $0xcb0] sm:$0xff] }
 0x276   : > { %3683 = vmatprep.subr.mxu1 %v1479_v48  ;;  %v2852_v48 = vld [vmem:[#allocation5 + $0xd30] sm:$0xff] }
 0x277   : > { %3684 = vmatpush3.msra.mxu1 %v1463_v49  ;;  %v2760_v49 = vld [vmem:[#allocation5 + $0xca8] sm:$0xff] }
 0x278   : > { %3685 = vmatprep.subr.mxu1 %v1478_v50  ;;  %v2851_v50 = vld [vmem:[#allocation5 + $0xd28] sm:$0xff] }
 0x279   : > { %3686 = vmatpush3.msra.mxu1 %v1462_v1  ;;  %v2759_v1 = vld [vmem:[#allocation5 + $0xca0] sm:$0xff] }
 0x27a   : > { %3687 = vmatprep.subr.mxu1 %v1477_v51  ;;  %v2850_v51 = vld [vmem:[#allocation5 + $0xd20] sm:$0xff] }
 0x27b   : > { %3688 = vmatpush3.msra.mxu1 %v1461_v4  ;;  %v2758_v4 = vld [vmem:[#allocation5 + $0xc98] sm:$0xff] }
 0x27c   : > { %2560 = vmatmul.mubr.f32.vlgmr.msra.gmra.mxu1 %v4405_v37  ;;  %3733 = vmatprep.subr.mxu1 %v1556_v30  ;;  %v1536_v37 = vld [vmem:[#allocation5 + $0x358] sm:$0xff] }
 0x27d   : > { %2564 = vmatprep.mubr.f32.mxu1 %v4411_v18  ;;  %3734 = vmatpush3.msra.mxu1 %v1540_v53  ;;  %v1535_v18 = vld [vmem:[#allocation5 + $0x350] sm:$0xff]  ;;  %v2849_v30 = vld [vmem:[#allocation5 + $0xd18] sm:$0xff] }
 0x27e   : > { %3735 = vmatprep.subr.mxu1 %v1555_v54  ;;  %v4479_v53 = vld [vmem:[#allocation5 + $0xc90] sm:$0xff]  ;;  %v3347_v54 = vpop.f32.mrf.mxu0 }
 0x27f   : > { %3736 = vmatpush3.msra.mxu1 %v1539_v55 }
 0x280   : > { %2565 = vmatmul.mubr.f32.gmra.mxu1 %v4409_v15  ;;  %3737 = vmatprep.subr.mxu1 %v1554_v56  ;;  %v1533_v15 = vld [vmem:[#allocation5 + $0x340] sm:$0xff]  ;;  %v3348_v55 = vpop.f32.mrf.mxu0 }
 0x281   : > { %3738 = vmatpush3.msra.mxu1 %v1538_v34  ;;  %2709 = vmatprep.mubr.f32.mxu1 %v4442_v62  ;;  %v1547_v62 = vld [vmem:[#allocation5 + $0x3b0] sm:$0xff]  ;;  %v3385_v34 = vpop.f32.mrf.mxu1 }
 0x282   : > { %3739 = vmatprep.subr.mxu1 %v1553_v57  ;;  %v3350_v56 = vpop.f32.mrf.mxu0 }
 0x283   : > { %3740 = vmatpush3.msra.mxu1 %v1537_v60  ;;  %v3386_v60 = vpop.f32.mrf.mxu1 }
 0x284   : > { %3741 = vmatprep.subr.mxu1 %v1552_v63  ;;  %v3351_v57 = vpop.f32.mrf.mxu0 }
 0x285   : > { %3742 = vmatpush3.msra.mxu1 %v1536_v37  ;;  %v3388_v37 = vpop.f32.mrf.mxu1  ;;  %v3352_v41 = vadd.f32 %v3351_v57, %v3350_v56 }
 0x286   : > { %3743 = vmatprep.subr.mxu1 %v1551_v0 }
 0x287   : > { %3744 = vmatpush3.msra.mxu1 %v1535_v18  ;;  %v3389_v18 = vpop.f32.mrf.mxu1 }
 0x288   : > { %3745 = vmatprep.subr.mxu1 %v1550_v2  ;;  %v3390_v7 = vadd.f32 %v3389_v18, %v3388_v37 }
 0x289   : > { %3746 = vmatpush3.msra.mxu1 %v1534_v3 }
 0x28a   : > { %3747 = vmatprep.subr.mxu1 %v1549_v5 }
 0x28b   : > { %3748 = vmatpush3.msra.mxu1 %v1533_v15 }
 0x28c   : > { %3749 = vmatprep.subr.mxu1 %v1548_v6 }
 0x28d   : > { %3750 = vmatpush3.msra.mxu1 %v1532_v8 }
 0x28e   : > { %3751 = vmatprep.subr.mxu1 %v1547_v62 }
 0x28f   : > { %3752 = vmatpush3.msra.mxu1 %v1531_v12 }
 0x290   : > { %3753 = vmatprep.subr.mxu1 %v1546_v32 }
 0x291   : > { %3754 = vmatpush3.msra.mxu1 %v1530_v14 }
 0x292   : > { %3755 = vmatprep.subr.mxu1 %v1545_v19 }
 0x293   : > { %3756 = vmatpush3.msra.mxu1 %v1529_v21  ;;  %v3423_v63 = vpop.f32.mrf.mxu0 }
 0x294   : > { %3757 = vmatprep.subr.mxu1 %v1544_v22 }
 0x295   : > { %3758 = vmatpush3.msra.mxu1 %v1528_v10  ;;  %v3424_v0 = vpop.f32.mrf.mxu0 }
 0x296   : > { %3759 = vmatprep.subr.mxu1 %v1543_v23 }
 0x297   : > { %3760 = vmatpush3.msra.mxu1 %v1527_v24 }
 0x298   : > { %3761 = vmatprep.subr.mxu1 %v1542_v25 }
 0x299   : > { %3762 = vmatpush3.msra.mxu1 %v1526_v27 }
 0x29a   : > { %3763 = vmatprep.subr.mxu1 %v1541_v43 }
 0x29b   : > { %3764 = vmatpush3.msra.mxu1 %v1525_v28  ;;  %v3426_v2 = vpop.f32.mrf.mxu0 }
 0x29c   : > { %2710 = vmatmul.mubr.f32.vlgmr.msra.gmra.mxu1 %v4444_v52  ;;  %3894 = vmatprep.subr.mxu1 %v2864_v31  ;;  %v2861_v52 = vld [vmem:[#allocation5 + $0xd78] sm:$0xff] }
 0x29d   : > { %2714 = vmatprep.mubr.f32.mxu1 %v4451_v61  ;;  %3895 = vmatpush3.msra.mxu1 %v2864_v31  ;;  %v2860_v61 = vld [vmem:[#allocation5 + $0xd70] sm:$0xff]  ;;  %v3427_v5 = vpop.f32.mrf.mxu0 }
 0x29e   : > { %3896 = vmatprep.subr.mxu1 %v2863_v9  ;;  %v3428_v33 = vadd.f32 %v3427_v5, %v3426_v2 }
 0x29f   : > { %3897 = vmatpush3.msra.mxu1 %v2863_v9 }
 0x2a0   : > { %2715 = vmatmul.mubr.f32.gmra.mxu1 %v4449_v59  ;;  %3898 = vmatprep.subr.mxu1 %v2862_v58  ;;  %v2769_v59 = vld [vmem:[#allocation5 + $0xcf0] sm:$0xff] }
 0x2a1   : > { %3899 = vmatpush3.msra.mxu1 %v2862_v58  ;;  %3867 = vmatprep.subr.mxu0 %v2769_v59  ;;  %v3387_v58 = vadd.f32 %v3386_v60, %v3385_v34 }
 0x2a2   : > { %3900 = vmatprep.subr.mxu1 %v2861_v52  ;;  %3868 = vmatpush3.msra.mxu0 %v2769_v59  ;;  %v3349_v59 = vadd.f32 %v3348_v55, %v3347_v54 }
 0x2a3   : > { %3901 = vmatpush3.msra.mxu1 %v2861_v52  ;;  %3869 = vmatprep.subr.mxu0 %v2768_v20 }
 0x2a4   : > { %3902 = vmatprep.subr.mxu1 %v2860_v61  ;;  %3870 = vmatpush3.msra.mxu0 %v2768_v20  ;;  %v3425_v20 = vadd.f32 %v3424_v0, %v3423_v63 }
 0x2a5   : > { %3903 = vmatpush3.msra.mxu1 %v2860_v61  ;;  %3871 = vmatprep.subr.mxu0 %v2767_v35  ;;  %v1832_v61 = vadd.f32 %v3390_v7, %v3352_v41 }
 0x2a6   : > { %3904 = vmatprep.subr.mxu1 %v2859_v13  ;;  %3872 = vmatpush3.msra.mxu0 %v2767_v35 }
 0x2a7   : > { %3905 = vmatpush3.msra.mxu1 %v2859_v13  ;;  %3873 = vmatprep.subr.mxu0 %v2766_v39 }
 0x2a8   : > { %3906 = vmatprep.subr.mxu1 %v2858_v38  ;;  %3874 = vmatpush3.msra.mxu0 %v2766_v39  ;;  %v1827_v39 = vadd.f32 %v3387_v58, %v3349_v59 }
 0x2a9   : > { %3907 = vmatpush3.msra.mxu1 %v2858_v38  ;;  %3875 = vmatprep.subr.mxu0 %v2765_v40 }
 0x2aa   : > { %3908 = vmatprep.subr.mxu1 %v2857_v16  ;;  %3876 = vmatpush3.msra.mxu0 %v2765_v40 }
 0x2ab   : > { %3909 = vmatpush3.msra.mxu1 %v2857_v16  ;;  %3877 = vmatprep.subr.mxu0 %v2764_v36  ;;  %v1907_v16 = vadd.f32 %v3428_v33, %v1832_v61 }
 0x2ac   : > { %3910 = vmatprep.subr.mxu1 %v2856_v11  ;;  %3878 = vmatpush3.msra.mxu0 %v2764_v36 }
 0x2ad   : > { %3911 = vmatpush3.msra.mxu1 %v2856_v11  ;;  %3879 = vmatprep.subr.mxu0 %v2763_v44  ;;  %v1902_v11 = vadd.f32 %v3425_v20, %v1827_v39 }
 0x2ae   : > { %3912 = vmatprep.subr.mxu1 %v2855_v42  ;;  %3880 = vmatpush3.msra.mxu0 %v2763_v44 }
 0x2af   : > { %3913 = vmatpush3.msra.mxu1 %v2855_v42  ;;  %3881 = vmatprep.subr.mxu0 %v2762_v26 }
 0x2b0   : > { %3914 = vmatprep.subr.mxu1 %v2854_v45  ;;  %3882 = vmatpush3.msra.mxu0 %v2762_v26 }
 0x2b1   : > { %3915 = vmatpush3.msra.mxu1 %v2854_v45  ;;  %3883 = vmatprep.subr.mxu0 %v2761_v47 }
 0x2b2   : > { %3916 = vmatprep.subr.mxu1 %v2853_v46  ;;  %3884 = vmatpush3.msra.mxu0 %v2761_v47 }
 0x2b3   : > { %3917 = vmatpush3.msra.mxu1 %v2853_v46  ;;  %3885 = vmatprep.subr.mxu0 %v2760_v49  ;;  %v3499_v6 = vpop.f32.mrf.mxu0 }
 0x2b4   : > { %3918 = vmatprep.subr.mxu1 %v2852_v48  ;;  %3886 = vmatpush3.msra.mxu0 %v2760_v49 }
 0x2b5   : > { %3919 = vmatpush3.msra.mxu1 %v2852_v48  ;;  %3887 = vmatprep.subr.mxu0 %v2759_v1  ;;  %v3500_v62 = vpop.f32.mrf.mxu0 }
 0x2b6   : > { %3920 = vmatprep.subr.mxu1 %v2851_v50  ;;  %3888 = vmatpush3.msra.mxu0 %v2759_v1  ;;  %v3501_v49 = vadd.f32 %v3500_v62, %v3499_v6 }
 0x2b7   : > { %3921 = vmatpush3.msra.mxu1 %v2851_v50  ;;  %3889 = vmatprep.subr.mxu0 %v2758_v4  ;;  %v3502_v32 = vpop.f32.mrf.mxu0 }
 0x2b8   : > { %3922 = vmatprep.subr.mxu1 %v2850_v51  ;;  %3890 = vmatpush3.msra.mxu0 %v2758_v4 }
 0x2b9   : > { %3923 = vmatpush3.msra.mxu1 %v2850_v51  ;;  %3929 = vmatprep.subr.mxu0 %v4479_v53  ;;  %v3503_v19 = vpop.f32.mrf.mxu0 }
 0x2ba   : > { %3924 = vmatprep.subr.mxu1 %v2849_v30  ;;  %v3504_v26 = vadd.f32 %v3503_v19, %v3502_v32 }
 0x2bb   : > { %3925 = vmatpush3.msra.mxu1 %v2849_v30 }
 0x2d3   : > { %v3575_v22 = vpop.f32.mrf.mxu0 }
 0x2d5   : > { %v3576_v23 = vpop.f32.mrf.mxu0 }
 0x2d6   : > { %v3577_v60 = vadd.f32 %v3576_v23, %v3575_v22 }
 0x2d7   : > { %v3461_v3 = vpop.f32.mrf.mxu1  ;;  %v3578_v25 = vpop.f32.mrf.mxu0 }
 0x2d9   : > { %v3462_v15 = vpop.f32.mrf.mxu1  ;;  %v3579_v43 = vpop.f32.mrf.mxu0 }
 0x2da   : > { %v3463_v40 = vadd.f32 %v3462_v15, %v3461_v3  ;;  %v3580_v54 = vadd.f32 %v3579_v43, %v3578_v25 }
 0x2dc   : > { %v3464_v8 = vpop.f32.mrf.mxu1  ;;  %v1977_v46 = vadd.f32 %v3463_v40, %v1902_v11 }
 0x2de   : > { %v3465_v12 = vpop.f32.mrf.mxu1  ;;  %v2413_v30 = vrot.slane %v1977_v46, 1  ;;  %v2754_v46 = vld [vmem:[#allocation5 + $0xc78] sm:$0xff] }
 0x2df   : > { %v3466_v13 = vadd.f32 %v3465_v12, %v3464_v8 }
 0x2e1   : > { %v1982_v36 = vadd.f32 %v3466_v13, %v1907_v16 }
 0x2e3   : > { %v2414_v50 = vrot.slane %v1982_v36, 1 }
 0x2e5   : > { %v2418_v63 = vsel %vm2417_vm0, %v2413_v30, %v2414_v50  ;;  %v2419_v12 = vsel %vm2417_vm0, %v2414_v50, %v2413_v30  ;;  %v2750_v50 = vld [vmem:[#allocation5 + $0xc58] sm:$0xff]  ;;  %v2745_v30 = vld [vmem:[#allocation5 + $0xc30] sm:$0xff] }
 0x2f7   : > { %v3651_v29 = vpop.f32.mrf.mxu0 }
 0x2f8   : > { %v3537_v14 = vpop.f32.mrf.mxu1 }
 0x2f9   : > { %v3652_v9 = vpop.f32.mrf.mxu0 }
 0x2fa   : > { %v3538_v21 = vpop.f32.mrf.mxu1  ;;  %v3653_v4 = vadd.f32 %v3652_v9, %v3651_v29 }
 0x2fb   : > { %v3539_v47 = vadd.f32 %v3538_v21, %v3537_v14 }
 0x2fc   : > { %v2487_v2 = vadd.f32 %v3653_v4, %v2418_v63  ;;  %v2746_v4 = vld [vmem:[#allocation5 + $0xc38] sm:$0xff]  ;;  %v3048_v63 = vld [vmem:[#allocation5 + $0xe08] sm:$0xff] }
 0x2fd   : > { %v3540_v10 = vpop.f32.mrf.mxu1  ;;  %v2255_v55 = vadd.f32 %v3539_v47, %v3501_v49  ;;  %v2753_v47 = vld [vmem:[#allocation5 + $0xc70] sm:$0xff]  ;;  %v2751_v49 = vld [vmem:[#allocation5 + $0xc60] sm:$0xff] }
 0x2fe   : > { %v3654_v35 = vpop.f32.mrf.mxu0 }
 0x2ff   : > { %v3541_v24 = vpop.f32.mrf.mxu1  ;;  %v2330_v5 = vadd.f32 %v3577_v60, %v2255_v55  ;;  %v2743_v55 = vld [vmem:[#allocation5 + $0xc20] sm:$0xff]  ;;  %v4187_v60 = vmov 0.0  }
 0x300   : > { %v3542_v42 = vadd.f32 %v3541_v24, %v3540_v10  ;;  %v3655_v44 = vpop.f32.mrf.mxu0  ;;  %3964 = vmatprep.subr.mxu1 %v4187_v60 }
 0x301   : > { %v3656_v3 = vadd.f32 %v3655_v44, %v3654_v35 }
 0x302   : > { %v2260_v1 = vadd.f32 %v3542_v42, %v3504_v26  ;;  %v2755_v26 = vld [vmem:[#allocation5 + $0xc80] sm:$0xff] }
 0x303   : > { %v2492_v19 = vadd.f32 %v3656_v3, %v2419_v12  ;;  %v3138_v3 = vld [vmem:[#allocation5 + $0xe78] sm:$0xff]  ;;  %v3135_v12 = vld [vmem:[#allocation5 + $0xe60] sm:$0xff] }
 0x304   : > { %v2335_v0 = vadd.f32 %v3580_v54, %v2260_v1  ;;  %v2748_v1 = vld [vmem:[#allocation5 + $0xc48] sm:$0xff] }
 0x305   : > { %v2744_v54 = vld [vmem:[#allocation5 + $0xc28] sm:$0xff] }
 0x31b   : > { %v3613_v27 = vpop.f32.mrf.mxu1 }
 0x31c   : > { %v3727_v48 = vpop.f32.mrf.mxu0 }
 0x31d   : > { %v3614_v28 = vpop.f32.mrf.mxu1 }
 0x31e   : > { %v3728_v56 = vpop.f32.mrf.mxu0  ;;  %v3615_v37 = vadd.f32 %v3614_v28, %v3613_v27 }
 0x31f   : > { %v3729_v21 = vadd.f32 %v3728_v56, %v3727_v48  ;;  %v2752_v48 = vld [vmem:[#allocation5 + $0xc68] sm:$0xff]  ;;  %v2742_v56 = vld [vmem:[#allocation5 + $0xc18] sm:$0xff] }
 0x320   : > { %v3616_v31 = vpop.f32.mrf.mxu1  ;;  %v2405_v32 = vadd.f32 %v3615_v37, %v2330_v5  ;;  %v3140_v37 = vld [vmem:[#allocation5 + $0xe88] sm:$0xff]  ;;  %v3045_v5 = vld [vmem:[#allocation5 + $0xdf0] sm:$0xff] }
 0x321   : > { %v3730_v15 = vpop.f32.mrf.mxu0 }
 0x322   : > { %v3617_v52 = vpop.f32.mrf.mxu1  ;;  %v2720_v43 = vrot.slane %v2405_v32, 2  ;;  %v3042_v32 = vld [vmem:[#allocation5 + $0xdd8] sm:$0xff] }
 0x323   : > { %v3618_v34 = vadd.f32 %v3617_v52, %v3616_v31  ;;  %v3731_v10 = vpop.f32.mrf.mxu0  ;;  %v3311_v52 = vld [vmem:[#allocation5 + $0xc00] ss:$0 sm:$0xff] }
 0x324   : > { %v3732_v29 = vadd.f32 %v3731_v10, %v3730_v15  ;;  %v3137_v15 = vld [vmem:[#allocation5 + $0xe70] sm:$0xff]  ;;  %v3039_v10 = vld [vmem:[#allocation5 + $0xdc0] sm:$0xff] }
 0x325   : > { %v2410_v6 = vadd.f32 %v3618_v34, %v2335_v0  ;;  %v3049_v34 = vld [vmem:[#allocation5 + $0xe10] sm:$0xff]  ;;  %v3047_v0 = vld [vmem:[#allocation5 + $0xe00] sm:$0xff] }
 0x327   : > { %v2721_v22 = vrot.slane %v2410_v6, 2  ;;  %v3044_v6 = vld [vmem:[#allocation5 + $0xde8] sm:$0xff] }
 0x329   : > { %v2723_v7 = vsel %vm2722_vm1, %v2720_v43, %v2721_v22  ;;  %v2724_v61 = vsel %vm2722_vm1, %v2721_v22, %v2720_v43  ;;  %v3133_v22 = vld [vmem:[#allocation5 + $0xe50] sm:$0xff]  ;;  %v3130_v43 = vld [vmem:[#allocation5 + $0xe38] sm:$0xff] }
 0x33c   : > { %v3689_v38 = vpop.f32.mrf.mxu1 }
 0x33e   : > { %v3690_v45 = vpop.f32.mrf.mxu1 }
 0x33f   : > { %v3691_v57 = vadd.f32 %v3690_v45, %v3689_v38  ;;  %v2756_v45 = vld [vmem:[#allocation5 + $0xc88] sm:$0xff] }
 0x340   : > { %v3692_v51 = vpop.f32.mrf.mxu1 }
 0x341   : > { %v2562_v8 = vadd.f32 %v3691_v57, %v2487_v2  ;;  %v3141_v57 = vld [vmem:[#allocation5 + $0xe90] sm:$0xff]  ;;  %v3046_v2 = vld [vmem:[#allocation5 + $0xdf8] sm:$0xff] }
 0x342   : > { %v3693_v18 = vpop.f32.mrf.mxu1 }
 0x343   : > { %v3694_v62 = vadd.f32 %v3693_v18, %v3692_v51  ;;  %v2637_v25 = vadd.f32 %v3729_v21, %v2562_v8  ;;  %v2747_v51 = vld [vmem:[#allocation5 + $0xc40] sm:$0xff]  ;;  %v3136_v8 = vld [vmem:[#allocation5 + $0xe68] sm:$0xff] }
 0x344   : > { %v3139_v18 = vld [vmem:[#allocation5 + $0xe80] sm:$0xff]  ;;  %v3040_v21 = vld [vmem:[#allocation5 + $0xdc8] sm:$0xff] }
 0x345   : > { %v2567_v24 = vadd.f32 %v3694_v62, %v2492_v19  ;;  %v3043_v62 = vld [vmem:[#allocation5 + $0xde0] sm:$0xff]  ;;  %v3134_v19 = vld [vmem:[#allocation5 + $0xe58] sm:$0xff] }
 0x347   : > { %v2642_v58 = vadd.f32 %v3732_v29, %v2567_v24  ;;  %v3038_v24 = vld [vmem:[#allocation5 + $0xdb8] sm:$0xff]  ;;  %v3129_v29 = vld [vmem:[#allocation5 + $0xe30] sm:$0xff] }
 0x35c   : > { %v3765_v14 = vpop.f32.mrf.mxu1 }
 0x35e   : > { %v3766_v23 = vpop.f32.mrf.mxu1 }
 0x35f   : > { %v3767_v27 = vadd.f32 %v3766_v23, %v3765_v14  ;;  %v3041_v14 = vld [vmem:[#allocation5 + $0xdd0] sm:$0xff]  ;;  %v3132_v23 = vld [vmem:[#allocation5 + $0xe48] sm:$0xff] }
 0x360   : > { %v3768_v28 = vpop.f32.mrf.mxu1 }
 0x361   : > { %v2712_v31 = vadd.f32 %v3767_v27, %v2637_v25  ;;  %v3131_v25 = vld [vmem:[#allocation5 + $0xe40] sm:$0xff]  ;;  %v3037_v27 = vld [vmem:[#allocation5 + $0xdb0] sm:$0xff] }
 0x362   : > { %v3769_v9 = vpop.f32.mrf.mxu1 }
 0x363   : > { %v2725_v41 = vadd.f32 %v2723_v7, %v2712_v31  ;;  %v3770_v33 = vadd.f32 %v3769_v9, %v3768_v28  ;;  %v3036_v28 = vld [vmem:[#allocation5 + $0xda8] sm:$0xff]  ;;  %v3035_v31 = vld [vmem:[#allocation5 + $0xda0] sm:$0xff]  ;;  %v3034_v9 = vld [vmem:[#allocation5 + $0xd98] sm:$0xff] }
 0x364   : > { %v3128_v7 = vld [vmem:[#allocation5 + $0xe28] sm:$0xff] }
 0x365   : > { %v2717_v59 = vadd.f32 %v3770_v33, %v2642_v58  ;;  %v2732_v13 = vadd.f32 %v3311_v52, %v2725_v41  ;;  %v3127_v41 = vld [vmem:[#allocation5 + $0xe20] sm:$0xff]  ;;  %v3126_v58 = vld [vmem:[#allocation5 + $0xe18] sm:$0xff] }
 0x367   : > { %v2726_v20 = vadd.f32 %v2724_v61, %v2717_v59  ;;  %v2734_v39 = vrot.slane %v2732_v13, 1 }
 0x369   : > { %v2733_v35 = vadd.f32 %v3311_v52, %v2726_v20 }
 0x36b   : > { %v2735_v38 = vrot.slane %v2733_v35, 1 }
 0x36d   : > { %v2736_v16 = vsel %vm2417_vm0, %v2734_v39, %v2735_v38  ;;  %v2737_v40 = vsel %vm2417_vm0, %v2735_v38, %v2734_v39 }
 0x36e   : > { %v2738_v11 = vmax.f32 %v2732_v13, %v2736_v16  ;;  %v2739_v36 = vmax.f32 %v2733_v35, %v2737_v40 }
 0x370   : > { %v2740_v42 = vmax.f32 %v2738_v11, 0.0  ;;  %v2741_v44 = vmax.f32 %v2739_v36, 0.0 }
 0x372   : > { %3891 = vmatprep.mubr.f32.mxu0 %v2740_v42  ;;  %3926 = vmatprep.mubr.f32.mxu1 %v2740_v42 }
 0x373   : > { %3892 = vmatmul.mubr.f32.vlgmr.msra.gmra.mxu0 %v2741_v44  ;;  %3927 = vmatmul.mubr.f32.vlgmr.msra.gmra.mxu1 %v2741_v44 }
 0x374   : > { %3930 = vmatpush3.msra.mxu0 %v4479_v53  ;;  %3961 = vmatprep.mubr.f32.mxu0 %v2740_v42  ;;  %v2749_v53 = vld [vmem:[#allocation5 + $0xc50] sm:$0xff] }
 0x375   : > { %3931 = vmatprep.subr.mxu0 %v2756_v45  ;;  %3965 = vmatpush3.msra.mxu1 %v3049_v34 }
 0x376   : > { %3932 = vmatpush3.msra.mxu0 %v2756_v45  ;;  %3966 = vmatprep.subr.mxu1 %v4187_v60 }
 0x377   : > { %3933 = vmatprep.subr.mxu0 %v2755_v26  ;;  %3967 = vmatpush3.msra.mxu1 %v3048_v63 }
 0x378   : > { %3934 = vmatpush3.msra.mxu0 %v2755_v26  ;;  %3968 = vmatprep.subr.mxu1 %v4187_v60 }
 0x379   : > { %3935 = vmatprep.subr.mxu0 %v2754_v46  ;;  %3969 = vmatpush3.msra.mxu1 %v3047_v0 }
 0x37a   : > { %3936 = vmatpush3.msra.mxu0 %v2754_v46  ;;  %3970 = vmatprep.subr.mxu1 %v4187_v60 }
 0x37b   : > { %3937 = vmatprep.subr.mxu0 %v2753_v47  ;;  %3971 = vmatpush3.msra.mxu1 %v3046_v2 }
 0x37c   : > { %3938 = vmatpush3.msra.mxu0 %v2753_v47  ;;  %3972 = vmatprep.subr.mxu1 %v4187_v60  ;;  %v3030_v47 = vld [vmem:[#allocation5 + $0xc08] sm:$0x1] }
 0x37d   : > { %3939 = vmatprep.subr.mxu0 %v2752_v48  ;;  %3973 = vmatpush3.msra.mxu1 %v3045_v5 }
 0x37e   : > { %3940 = vmatpush3.msra.mxu0 %v2752_v48  ;;  %3974 = vmatprep.subr.mxu1 %v4187_v60 }
 0x37f   : > { %3941 = vmatprep.subr.mxu0 %v2751_v49  ;;  %3975 = vmatpush3.msra.mxu1 %v3044_v6 }
 0x380   : > { %3942 = vmatpush3.msra.mxu0 %v2751_v49  ;;  %3976 = vmatprep.subr.mxu1 %v4187_v60 }
 0x381   : > { %3943 = vmatprep.subr.mxu0 %v2750_v50  ;;  %3977 = vmatpush3.msra.mxu1 %v3043_v62 }
 0x382   : > { %3944 = vmatpush3.msra.mxu0 %v2750_v50  ;;  %3978 = vmatprep.subr.mxu1 %v4187_v60  ;;  %v3122_v50 = vrot.slane %v3030_v47, 4 }
 0x383   : > { %3945 = vmatprep.subr.mxu0 %v2749_v53  ;;  %3979 = vmatpush3.msra.mxu1 %v3042_v32 }
 0x384   : > { %3946 = vmatpush3.msra.mxu0 %v2749_v53  ;;  %3980 = vmatprep.subr.mxu1 %v4187_v60 }
 0x385   : > { %3947 = vmatprep.subr.mxu0 %v2748_v1  ;;  %3981 = vmatpush3.msra.mxu1 %v3041_v14 }
 0x386   : > { %3948 = vmatpush3.msra.mxu0 %v2748_v1  ;;  %3982 = vmatprep.subr.mxu1 %v4187_v60 }
 0x387   : > { %3949 = vmatprep.subr.mxu0 %v2747_v51  ;;  %3983 = vmatpush3.msra.mxu1 %v3040_v21 }
 0x388   : > { %3950 = vmatpush3.msra.mxu0 %v2747_v51  ;;  %3984 = vmatprep.subr.mxu1 %v4187_v60 }
 0x389   : > { %3951 = vmatprep.subr.mxu0 %v2746_v4  ;;  %3985 = vmatpush3.msra.mxu1 %v3039_v10 }
 0x38a   : > { %3952 = vmatpush3.msra.mxu0 %v2746_v4  ;;  %3986 = vmatprep.subr.mxu1 %v4187_v60 }
 0x38b   : > { %3953 = vmatprep.subr.mxu0 %v2745_v30  ;;  %3987 = vmatpush3.msra.mxu1 %v3038_v24 }
 0x38c   : > { %3954 = vmatpush3.msra.mxu0 %v2745_v30  ;;  %3988 = vmatprep.subr.mxu1 %v4187_v60 }
 0x38d   : > { %3955 = vmatprep.subr.mxu0 %v2744_v54  ;;  %3989 = vmatpush3.msra.mxu1 %v3037_v27 }
 0x38e   : > { %3956 = vmatpush3.msra.mxu0 %v2744_v54  ;;  %3990 = vmatprep.subr.mxu1 %v4187_v60 }
 0x38f   : > { %3957 = vmatprep.subr.mxu0 %v2743_v55  ;;  %3991 = vmatpush3.msra.mxu1 %v3036_v28 }
 0x390   : > { %3958 = vmatpush3.msra.mxu0 %v2743_v55  ;;  %3992 = vmatprep.subr.mxu1 %v4187_v60 }
 0x391   : > { %3959 = vmatprep.subr.mxu0 %v2742_v56  ;;  %3993 = vmatpush3.msra.mxu1 %v3035_v31 }
 0x392   : > { %3960 = vmatpush3.msra.mxu0 %v2742_v56  ;;  %3994 = vmatprep.subr.mxu1 %v4187_v60  ;;  %v3031_v56 = vld [vmem:[#allocation5 + $0xc10] sm:$0x1] }
 0x393   : > { %3962 = vmatmul.mubr.f32.vlgmr.msra.gmra.mxu0 %v2741_v44  ;;  %3999 = vmatprep.subr.mxu0 %v4187_v60 }
 0x394   : > { %4000 = vmatpush3.msra.mxu0 %v3141_v57  ;;  %3995 = vmatpush3.msra.mxu1 %v3034_v9 }
 0x395   : > { %4001 = vmatprep.subr.mxu0 %v4187_v60  ;;  %3996 = vmatprep.mubr.msk.f32.mxu1 %vm4188_vm2, %v4187_v60 }
 0x396   : > { %4002 = vmatpush3.msra.mxu0 %v3140_v37  ;;  %4031 = vmatprep.mubr.msk.f32.mxu0 %vm4188_vm2, %v4187_v60 }
 0x397   : > { %4003 = vmatprep.subr.mxu0 %v4187_v60 }
 0x398   : > { %4004 = vmatpush3.msra.mxu0 %v3139_v18 }
 0x399   : > { %4005 = vmatprep.subr.mxu0 %v4187_v60 }
 0x39a   : > { %4006 = vmatpush3.msra.mxu0 %v3138_v3 }
 0x39b   : > { %4007 = vmatprep.subr.mxu0 %v4187_v60 }
 0x39c   : > { %4008 = vmatpush3.msra.mxu0 %v3137_v15 }
 0x39d   : > { %4009 = vmatprep.subr.mxu0 %v4187_v60 }
 0x39e   : > { %4010 = vmatpush3.msra.mxu0 %v3136_v8 }
 0x39f   : > { %4011 = vmatprep.subr.mxu0 %v4187_v60 }
 0x3a0   : > { %4012 = vmatpush3.msra.mxu0 %v3135_v12 }
 0x3a1   : > { %4013 = vmatprep.subr.mxu0 %v4187_v60 }
 0x3a2   : > { %4014 = vmatpush3.msra.mxu0 %v3134_v19 }
 0x3a3   : > { %4015 = vmatprep.subr.mxu0 %v4187_v60 }
 0x3a4   : > { %4016 = vmatpush3.msra.mxu0 %v3133_v22 }
 0x3a5   : > { %4017 = vmatprep.subr.mxu0 %v4187_v60 }
 0x3a6   : > { %4018 = vmatpush3.msra.mxu0 %v3132_v23 }
 0x3a7   : > { %4019 = vmatprep.subr.mxu0 %v4187_v60 }
 0x3a8   : > { %4020 = vmatpush3.msra.mxu0 %v3131_v25 }
 0x3a9   : > { %4021 = vmatprep.subr.mxu0 %v4187_v60 }
 0x3aa   : > { %4022 = vmatpush3.msra.mxu0 %v3130_v43 }
 0x3ab   : > { %4023 = vmatprep.subr.mxu0 %v4187_v60 }
 0x3ac   : > { %4024 = vmatpush3.msra.mxu0 %v3129_v29 }
 0x3ad   : > { %4025 = vmatprep.subr.mxu0 %v4187_v60 }
 0x3ae   : > { %4026 = vmatpush3.msra.mxu0 %v3128_v7 }
 0x3af   : > { %4027 = vmatprep.subr.mxu0 %v4187_v60 }
 0x3b0   : > { %4028 = vmatpush3.msra.mxu0 %v3127_v41 }
 0x3b1   : > { %4029 = vmatprep.subr.mxu0 %v4187_v60 }
 0x3b2   : > { %4030 = vmatpush3.msra.mxu0 %v3126_v58 }
 0x433   : > { %v3893_v33 = vpop.f32.mrf.mxu0  ;;  %v3928_v52 = vpop.f32.mrf.mxu1 }
 0x434   : > { %v2941_v13 = vrot.slane %v3893_v33, 2  ;;  %v3020_v38 = vrot.slane %v3928_v52, 4 }
 0x435   : > { %v2840_v59 = vpop.f32.mrf.mxu0  ;;  %v2931_v61 = vpop.f32.mrf.mxu1 }
 0x436   : > { %v2940_v20 = vrot.slane %v2840_v59, 2  ;;  %v3019_v35 = vrot.slane %v2931_v61, 4 }
 0x438   : > { %v2943_v39 = vsel %vm2722_vm1, %v2941_v13, %v2940_v20  ;;  %v3023_v11 = vsel %vm3021_vm3, %v3020_v38, %v3019_v35  ;;  %v2942_v36 = vsel %vm2722_vm1, %v2940_v20, %v2941_v13  ;;  %v3022_v26 = vsel %vm3021_vm3, %v3019_v35, %v3020_v38 }
 0x453   : > { %v3963_v16 = vpop.f32.mrf.mxu0 }
 0x454   : > { %v3016_v40 = vadd.f32 %v3963_v16, %v2943_v39 }
 0x455   : > { %v3010_v42 = vpop.f32.mrf.mxu0 }
 0x456   : > { %v3025_v44 = vadd.f32 %v3023_v11, %v3016_v40  ;;  %v3011_v45 = vadd.f32 %v3010_v42, %v2942_v36 }
 0x458   : > { %v3024_v46 = vadd.f32 %v3022_v26, %v3011_v45  ;;  %v3027_v48 = vrot.slane %v3025_v44, 2 }
 0x45a   : > { %v3026_v49 = vrot.slane %v3024_v46, 2 }
 0x45c   : > { %v3028_v53 = vsel %vm2722_vm1, %v3026_v49, %v3027_v48 }
 0x45d   : > { %v3029_v1 = vmax.f32 %v3024_v46, %v3028_v53 }
 0x45f   : > { %v3032_v51 = vadd.f32 %v3030_v47, %v3029_v1  ;;  %v3124_v4 = vadd.f32 %v3122_v50, %v3029_v1 }
 0x461   : > { %v3033_v30 = vmax.f32 %v3032_v51, 0.0  ;;  %v3125_v54 = vmax.f32 %v3124_v4, 0.0 }
 0x463   : > { %3997 = vmatmul.mubr.f32.vlgmr.msra.gmra.mxu1 %v3033_v30  ;;  %v3143_v55 = vrot.slane %v3125_v54, 4 }
 0x465   : > { %4032 = vmatmul.mubr.f32.vlgmr.msra.gmra.mxu0 %v3143_v55 }
 0x523   : > { %v3116_v34 = vpop.f32.mrf.mxu1 }
 0x524   : > { %v3120_v57 = vadd.f32 %v3116_v34, %v3031_v56 }
 0x525   : > { %v3998_v60 = vpop.f32.mrf.mxu1  ;;  %v3211_v63 = vpop.f32.mrf.mxu0 }
 0x526   : > { %v3215_v37 = vadd.f32 %v3211_v63, %v3120_v57 }
 0x527   : > { %v4033_v0 = vpop.f32.mrf.mxu0 }
 0x528   : > { %v3216_v18 = vsub.f32 0.0, %v3215_v37 }
 0x52a   : > { %v3217_v17 = vmul.f32 1.442695, %v3216_v18 }
 0x52c   : > { %4085 = vpow2.f32 %v3217_v17 }
 0x539   : > { %v4086_v2 = vpop.eup %4085 }
 0x53a   : > { %v3219_v3 = vadd.f32 1.0, %v4086_v2 }
 0x53c   : > { %4087 = vrcp.f32 %v3219_v3 }
 0x549   : > { %v4088_v5 = vpop.eup %4087 }
 0x54a   : > { %3222 = vst [vmem:[%s231_s26] sm:$0x1] %v4088_v5 }
 0x54b PF: > { %p12_p2 = scmp.ge.s32.totalorder %s4228_s16, 4   ;;  %s4565_s12 = smov %s4175_s13 }
 0x54c   : > { %s4566_s13 = smov %s4238_s19  ;;  %s4567_s14 = smov %s4228_s16 }
 0x54d   :  { %14 = sbr.rel (!%p12_p2) target bundleno = 3 (0x3), region = 100 }
 0x552   :  { %3240 = vsyncpa [#allocation4], 1 }
 0x553   :  { %3242 = vsyncpa [#allocation4 + $0x1], 1 }
 0x554   :  { %3243 = vsyncpa [#allocation6], 1 }

</bundles_post_ra>
